<compile_context>
chip_gen: v5e
topology: v5e:2x2
jax: 0.10.0
libtpu: 0.0.40
codegen_flags: <defaults>
</compile_context>

<pallas_src>
import math
import numpy as np
import jax
import jax.numpy as jnp
from jax import lax
from jax.experimental import pallas as pl
from jax.experimental.pallas import tpu as pltpu

LN_EPS = 1e-5
_INV_SQRT2 = 1.0 / math.sqrt(2.0)


# --------------------------------------------------------------- utilities

def _tpu_generation():
    try:
        kind = jax.devices()[0].device_kind.lower()
    except Exception:
        return 0
    for g in (7, 6, 5, 4):
        if f"v{g}" in kind:
            return g
    return 0


def _vmem_capacity_bytes():
    try:
        return int(pltpu.get_tpu_info().vmem_capacity_bytes)
    except Exception:
        # 128 MiB on v5e/v6e, 64 MiB on v7x; default conservative.
        return (128 << 20) if _tpu_generation() in (5, 6) else (64 << 20)


def _default_elementwise_bf16():
    # v6e/v7x VPU + EUP are bf16-native; v5e (and older) are not.
    return _tpu_generation() >= 6


def _round_up(x, m):
    return (x + m - 1) // m * m


def _nbytes(a):
    return int(np.prod(a.shape)) * a.dtype.itemsize


# ------------------------------------------------------------ compute bits

def _layernorm(h, gamma, beta):
    mu = jnp.mean(h, axis=-1, keepdims=True)
    var = jnp.mean((h - mu) ** 2, axis=-1, keepdims=True)
    return (h - mu) * lax.rsqrt(var + LN_EPS) * gamma + beta


def _gelu_exact(x, elementwise_bf16):
    # PyTorch nn.GELU() default (erf variant).  On bf16-native chips the GELU
    # chain runs in bf16 (halves VALU work + vreg footprint of the (TB, M)
    # intermediate); residual stream / LayerNorm stay f32.
    # (If profiling ever shows the VALU slot saturating, the tanh-approx GELU
    #  would move the transcendental to the otherwise-idle EUP slot.)
    if elementwise_bf16:
        x = x.astype(jnp.bfloat16)
    return 0.5 * x * (1.0 + lax.erf(x * _INV_SQRT2))


def _mm(act, w):
    # MXU matmul: activation operand cast to the weight storage dtype (bf16),
    # accumulation in f32.
    return jnp.dot(act.astype(w.dtype), w, preferred_element_type=jnp.float32)


def _mid_block(h, w1, b1, w2, b2, elementwise_bf16):
    m = _mm(h, w1) + b1
    m = _gelu_exact(m, elementwise_bf16)
    return _mm(m, w2) + b2 + h


# ----------------------------------------------------------------- kernels

def _make_resident_kernel(num_mid, use_fori, elementwise_bf16):
    """All weights resident in VMEM; single grid axis over batch tiles."""

    def kernel(x_ref, w_in_ref, b_in_ref, g1_ref, be1_ref,
               w1_ref, b1_ref, w2_ref, b2_ref,
               g2_ref, be2_ref, w_out_ref, b_out_ref, out_ref):
        x = x_ref[...].astype(jnp.float32)

        h = _mm(x, w_in_ref[...]) + b_in_ref[...]
        h = _layernorm(h, g1_ref[...], be1_ref[...])

        def block(l, hh):
            return _mid_block(hh, w1_ref[l], b1_ref[l], w2_ref[l], b2_ref[l],
                              elementwise_bf16)

        if use_fori:
            # Deep stacks: fori_loop keeps code size and vreg live ranges
            # bounded (dynamic leading-dim index into the stacked weights).
            h = lax.fori_loop(0, num_mid, block, h, unroll=2)
        else:
            for l in range(num_mid):
                h = block(l, h)

        h = _layernorm(h, g2_ref[...], be2_ref[...])
        out_ref[...] = (_mm(h, w_out_ref[...]) + b_out_ref[...]).astype(out_ref.dtype)

    return kernel


def _make_pipelined_kernel(elementwise_bf16):
    """Layer-pipelined fallback for weight sets that do not fit VMEM:
    grid = (batch_tiles, num_mid); only ~2 mid layers' weights are resident
    (double-buffered by the pipeline) and the activation h lives in a VMEM
    scratch across the (arbitrary) layer axis."""

    def kernel(x_ref, w_in_ref, b_in_ref, g1_ref, be1_ref,
               w1_ref, b1_ref, w2_ref, b2_ref,
               g2_ref, be2_ref, w_out_ref, b_out_ref, out_ref, h_ref):
        l = pl.program_id(1)

        @pl.when(l == 0)
        def _():
            x = x_ref[...].astype(jnp.float32)
            h0 = _mm(x, w_in_ref[...]) + b_in_ref[...]
            h_ref[...] = _layernorm(h0, g1_ref[...], be1_ref[...])

        h = _mid_block(h_ref[...], w1_ref[0], b1_ref[0], w2_ref[0], b2_ref[0],
                       elementwise_bf16)
        h_ref[...] = h

        @pl.when(l == pl.num_programs(1) - 1)
        def _():
            hh = _layernorm(h, g2_ref[...], be2_ref[...])
            out_ref[...] = (_mm(hh, w_out_ref[...]) + b_out_ref[...]
                            ).astype(out_ref.dtype)

    return kernel


# ----------------------------------------------------------------- wrapper

def clip_translator_forward(x, params, *,
                            max_batch_tile=None,
                            elementwise_bf16=None,
                            min_batch_tiles=None,
                            force_strategy=None):
    B, D = x.shape
    gen = _tpu_generation()
    if elementwise_bf16 is None:
        elementwise_bf16 = _default_elementwise_bf16()
    if max_batch_tile is None:
        # v5e: keep tiles <= 256; v6e/v7x: bigger tiles amortize per-step
        # overhead and the per-tile LN / bias / cast epilogue.
        max_batch_tile = 256 if (gen and gen <= 5) else 512
    if min_batch_tiles is None:
        # v7x has 2 TensorCores per chip -> make sure both get a batch tile.
        min_batch_tiles = 2 if gen >= 7 else 1

    w1, b1, w2, b2 = params["w1"], params["b1"], params["w2"], params["b2"]
    num_mid = w1.shape[0]
    if num_mid == 0:
        # Zero-weight mid block is an exact identity (GELU(0) @ W2 + 0 + h == h);
        # substitute one to keep shapes static and non-empty.
        wdt = params["w_in"].dtype
        w1 = jnp.zeros((1, D, 128), wdt)
        b1 = jnp.zeros((1, 1, 128), jnp.float32)
        w2 = jnp.zeros((1, 128, D), wdt)
        b2 = jnp.zeros((1, 1, D), jnp.float32)
    L, _, M = w1.shape

    stage_ws = (params["w_in"], params["b_in"], params["ln1_g"], params["ln1_b"],
                params["ln2_g"], params["ln2_b"], params["w_out"], params["b_out"])
    mid_ws = (w1, b1, w2, b2)
    stage_bytes = sum(_nbytes(a) for a in stage_ws)
    mid_bytes = sum(_nbytes(a) for a in mid_ws)
    per_layer_bytes = mid_bytes // L
    weight_bytes = stage_bytes + mid_bytes

    vmem_cap = _vmem_capacity_bytes()

    # --- batch tiling (sublane multiple of 8, capped, >=min_batch_tiles) ---
    TB = min(_round_up(B, 8), _round_up(max_batch_tile, 8))
    if min_batch_tiles > 1 and B >= 8 * min_batch_tiles:
        TB = min(TB, _round_up(-(-B // min_batch_tiles), 8))
    Bp = _round_up(B, TB)
    n_tiles = Bp // TB
    xp = jnp.pad(x, ((0, Bp - B), (0, 0))) if Bp != B else x

    # --- strategy selection: resident weights vs. layer pipeline ---
    if force_strategy is not None:
        strategy = force_strategy
    else:
        strategy = ("resident"
                    if weight_bytes <= vmem_cap - (10 << 20) else "pipelined")

    inputs = (xp,
              params["w_in"], params["b_in"], params["ln1_g"], params["ln1_b"],
              w1, b1, w2, b2,
              params["ln2_g"], params["ln2_b"], params["w_out"], params["b_out"])

    # Accurate per-tile VMEM accounting (not whole-array bytes_accessed).
    io_bytes = 2 * (TB * D * 4) * 2              # x tile + out tile, double-buffered
    act_bytes = 4 * TB * max(D, M) * 4           # live f32 intermediates (h, m, ...)

    flops = 2 * (2 * Bp * D * D) + L * (2 * Bp * D * M + 2 * Bp * M * D)
    cost = pl.CostEstimate(flops=int(flops),
                           transcendentals=int(Bp * M * L),
                           bytes_accessed=int(weight_bytes + 2 * Bp * D * 4))

    def run(single_buffer_weights):
        # Constant-index weights never change block index -> single-buffer them.
        sb = {"pipeline_mode": pl.Buffered(1)} if single_buffer_weights else {}
        wbuf = 1 if single_buffer_weights else 2

        if strategy == "resident":
            def const2(arr):
                return pl.BlockSpec(arr.shape, lambda i: (0, 0), **sb)

            def const3(arr):
                return pl.BlockSpec(arr.shape, lambda i: (0, 0, 0), **sb)

            in_specs = [
                pl.BlockSpec((TB, D), lambda i: (i, 0)),
                const2(params["w_in"]), const2(params["b_in"]),
                const2(params["ln1_g"]), const2(params["ln1_b"]),
                const3(w1), const3(b1), const3(w2), const3(b2),
                const2(params["ln2_g"]), const2(params["ln2_b"]),
                const2(params["w_out"]), const2(params["b_out"]),
            ]
            grid = (n_tiles,)
            out_specs = pl.BlockSpec((TB, D), lambda i: (i, 0))
            scratch_shapes = ()
            dims = ("parallel",)
            kernel = _make_resident_kernel(L, L > 8, elementwise_bf16)
            vmem_need = weight_bytes * wbuf + io_bytes + act_bytes + (2 << 20)
        else:
            def const2(arr):
                return pl.BlockSpec(arr.shape, lambda i, l: (0, 0), **sb)

            in_specs = [
                pl.BlockSpec((TB, D), lambda i, l: (i, 0)),
                const2(params["w_in"]), const2(params["b_in"]),
                const2(params["ln1_g"]), const2(params["ln1_b"]),
                pl.BlockSpec((1, D, M), lambda i, l: (l, 0, 0)),
                pl.BlockSpec((1, 1, M), lambda i, l: (l, 0, 0)),
                pl.BlockSpec((1, M, D), lambda i, l: (l, 0, 0)),
                pl.BlockSpec((1, 1, D), lambda i, l: (l, 0, 0)),
                const2(params["ln2_g"]), const2(params["ln2_b"]),
                const2(params["w_out"]), const2(params["b_out"]),
            ]
            grid = (n_tiles, L)
            out_specs = pl.BlockSpec((TB, D), lambda i, l: (i, 0))
            scratch_shapes = (pltpu.VMEM((TB, D), jnp.float32),)
            dims = ("parallel", "arbitrary")
            kernel = _make_pipelined_kernel(elementwise_bf16)
            vmem_need = (stage_bytes * wbuf + 2 * per_layer_bytes
                         + io_bytes + act_bytes + TB * D * 4 + (2 << 20))

        cp_kwargs = dict(dimension_semantics=dims)
        if vmem_need > (16 << 20):
            # Generation-aware cap: never request more than physical VMEM.
            cp_kwargs["vmem_limit_bytes"] = int(min(vmem_need, vmem_cap - (4 << 20)))

        grid_spec = pltpu.PrefetchScalarGridSpec(
            num_scalar_prefetch=0, grid=grid,
            in_specs=in_specs, out_specs=out_specs,
            scratch_shapes=scratch_shapes)

        return pl.pallas_call(
            kernel,
            out_shape=jax.ShapeDtypeStruct((Bp, D), jnp.float32),
            grid_spec=grid_spec,
            compiler_params=pltpu.CompilerParams(**cp_kwargs),
            cost_estimate=cost,
        )(*inputs)

    try:
        out = run(single_buffer_weights=True)
    except Exception:
        # pl.Buffered(1) (single-buffered constant weights) not supported on
        # this jax/Mosaic build -> fall back to default double-buffering.
        out = run(single_buffer_weights=False)

    return out[:B] if Bp != B else out


# --------------------------------------------------------------- reference

def reference_forward(x, p, elementwise_bf16=None):
    """Pure-JAX reference mirroring the PyTorch module (eval mode) with the
    identical bf16-weight / f32-accumulation compute recipe as the kernel."""
    if elementwise_bf16 is None:
        elementwise_bf16 = _default_elementwise_bf16()
    h = _mm(x.astype(jnp.float32), p["w_in"]) + p["b_in"]
    h = _layernorm(h, p["ln1_g"], p["ln1_b"])
    for l in range(p["w1"].shape[0]):
        h = _mid_block(h, p["w1"][l], p["b1"][l], p["w2"][l], p["b2"][l],
                       elementwise_bf16)
    h = _layernorm(h, p["ln2_g"], p["ln2_b"])
    return _mm(h, p["w_out"]) + p["b_out"]


def make_params(key, in_out_dim, mid_dim, num_mid, weight_dtype=jnp.bfloat16):
    D, M = in_out_dim, mid_dim
    ks = jax.random.split(key, 8)
    s_d = 1.0 / math.sqrt(D)
    s_m = 1.0 / math.sqrt(M)
    f32 = jnp.float32
    return {
        # Linear weights pre-transposed to (in, out); stored bf16.
        "w_in": (jax.random.normal(ks[0], (D, D), f32) * s_d).astype(weight_dtype),
        "b_in": jax.random.normal(ks[1], (1, D), f32) * 0.02,
        "ln1_g": jnp.ones((1, D), f32),
        "ln1_b": jnp.zeros((1, D), f32),
        "w1": (jax.random.normal(ks[2], (num_mid, D, M), f32) * s_d).astype(weight_dtype),
        "b1": jax.random.normal(ks[3], (num_mid, 1, M), f32) * 0.02,
        "w2": (jax.random.normal(ks[4], (num_mid, M, D), f32) * s_m).astype(weight_dtype),
        "b2": jax.random.normal(ks[5], (num_mid, 1, D), f32) * 0.02,
        "ln2_g": jnp.ones((1, D), f32),
        "ln2_b": jnp.zeros((1, D), f32),
        "w_out": (jax.random.normal(ks[6], (D, D), f32) * s_d).astype(weight_dtype),
        "b_out": jax.random.normal(ks[7], (1, D), f32) * 0.02,
    }


if __name__ == "__main__":
    key = jax.random.PRNGKey(0)
    D, M = 128, 256

    def check(B, num_mid, force_strategy=None, seed=0):
        kx, kp = jax.random.split(jax.random.fold_in(key, seed))
        x = jax.random.normal(kx, (B, D), jnp.float32)
        p = make_params(kp, D, M, num_mid)
        out = jax.block_until_ready(
            clip_translator_forward(x, p, force_strategy=force_strategy))
        ref = jax.block_until_ready(reference_forward(x, p))
        np.testing.assert_allclose(np.asarray(out), np.asarray(ref),
                                   rtol=2e-2, atol=2e-2)

    # 1) Small model: resident weights, statically unrolled mid blocks.
    check(B=8, num_mid=4, seed=0)
    # 2) Deeper stack (>8 mid blocks): resident weights + lax.fori_loop body.
    check(B=32, num_mid=10, seed=1)
    # 3) Layer-pipelined fallback (used automatically when stacked weights
    #    exceed this chip's VMEM, e.g. production sizes on v7x), exercised
    #    here at small shapes via force_strategy.
    check(B=16, num_mid=3, force_strategy="pipelined", seed=2)

    print("KERNEL_OK")
</pallas_src>

<mosaic_0001>
module attributes {stable_mosaic.version = 11 : i64} {
  func.func @kernel(%arg0: i32, %arg1: memref<8x128xf32, #tpu.memory_space<vmem>>, %arg2: memref<128x128xbf16, #tpu.memory_space<vmem>>, %arg3: memref<1x128xf32, #tpu.memory_space<vmem>>, %arg4: memref<1x128xf32, #tpu.memory_space<vmem>>, %arg5: memref<1x128xf32, #tpu.memory_space<vmem>>, %arg6: memref<4x128x256xbf16, #tpu.memory_space<vmem>>, %arg7: memref<4x1x256xf32, #tpu.memory_space<vmem>>, %arg8: memref<4x256x128xbf16, #tpu.memory_space<vmem>>, %arg9: memref<4x1x128xf32, #tpu.memory_space<vmem>>, %arg10: memref<1x128xf32, #tpu.memory_space<vmem>>, %arg11: memref<1x128xf32, #tpu.memory_space<vmem>>, %arg12: memref<128x128xbf16, #tpu.memory_space<vmem>>, %arg13: memref<1x128xf32, #tpu.memory_space<vmem>>, %arg14: memref<8x128xf32, #tpu.memory_space<vmem>>) attributes {dimension_semantics = [#tpu.dimension_semantics<parallel>], iteration_bounds = array<i64: 1>, scalar_prefetch = 0 : i64, scratch_operands = 0 : i64, tpu.core_type = #tpu.core_type<tc>, window_params = [{transform_indices = @transform_0, window_bounds = array<i64: 8, 128>}, {pipeline_mode = #tpu.pipeline_mode<synchronous>, transform_indices = @transform_1, window_bounds = array<i64: 128, 128>}, {pipeline_mode = #tpu.pipeline_mode<synchronous>, transform_indices = @transform_2, window_bounds = array<i64: 1, 128>}, {pipeline_mode = #tpu.pipeline_mode<synchronous>, transform_indices = @transform_3, window_bounds = array<i64: 1, 128>}, {pipeline_mode = #tpu.pipeline_mode<synchronous>, transform_indices = @transform_4, window_bounds = array<i64: 1, 128>}, {pipeline_mode = #tpu.pipeline_mode<synchronous>, transform_indices = @transform_5, window_bounds = array<i64: 4, 128, 256>}, {pipeline_mode = #tpu.pipeline_mode<synchronous>, transform_indices = @transform_6, window_bounds = array<i64: 4, 1, 256>}, {pipeline_mode = #tpu.pipeline_mode<synchronous>, transform_indices = @transform_7, window_bounds = array<i64: 4, 256, 128>}, {pipeline_mode = #tpu.pipeline_mode<synchronous>, transform_indices = @transform_8, window_bounds = array<i64: 4, 1, 128>}, {pipeline_mode = #tpu.pipeline_mode<synchronous>, transform_indices = @transform_9, window_bounds = array<i64: 1, 128>}, {pipeline_mode = #tpu.pipeline_mode<synchronous>, transform_indices = @transform_10, window_bounds = array<i64: 1, 128>}, {pipeline_mode = #tpu.pipeline_mode<synchronous>, transform_indices = @transform_11, window_bounds = array<i64: 128, 128>}, {pipeline_mode = #tpu.pipeline_mode<synchronous>, transform_indices = @transform_12, window_bounds = array<i64: 1, 128>}, {transform_indices = @transform_13, window_bounds = array<i64: 8, 128>}]} {
    %c0 = arith.constant 0 : index
    %c0_0 = arith.constant 0 : index
    %0 = vector.load %arg1[%c0, %c0_0] : memref<8x128xf32, #tpu.memory_space<vmem>>, vector<8x128xf32>
    %c0_1 = arith.constant 0 : index
    %c0_2 = arith.constant 0 : index
    %1 = vector.load %arg2[%c0_1, %c0_2] : memref<128x128xbf16, #tpu.memory_space<vmem>>, vector<128x128xbf16>
    %2 = arith.truncf %0 : vector<8x128xf32> to vector<8x128xbf16>
    %cst = arith.constant dense<0.000000e+00> : vector<8x128xf32>
    %3 = tpu.matmul %2, %1, %cst {dimension_numbers = #tpu.dot_dimension_numbers<[1], [0], [0], [1], [0, 0, 1, 1], [], []>} : vector<8x128xbf16>, vector<128x128xbf16>, vector<8x128xf32> -> vector<8x128xf32>
    %c0_3 = arith.constant 0 : index
    %c0_4 = arith.constant 0 : index
    %4 = vector.load %arg3[%c0_3, %c0_4] : memref<1x128xf32, #tpu.memory_space<vmem>>, vector<1x128xf32>
    %5 = vector.broadcast %4 : vector<1x128xf32> to vector<8x128xf32>
    %6 = arith.addf %3, %5 : vector<8x128xf32>
    %c0_5 = arith.constant 0 : index
    %c0_6 = arith.constant 0 : index
    %7 = vector.load %arg4[%c0_5, %c0_6] : memref<1x128xf32, #tpu.memory_space<vmem>>, vector<1x128xf32>
    %c0_7 = arith.constant 0 : index
    %c0_8 = arith.constant 0 : index
    %8 = vector.load %arg5[%c0_7, %c0_8] : memref<1x128xf32, #tpu.memory_space<vmem>>, vector<1x128xf32>
    %cst_9 = arith.constant dense<0.000000e+00> : vector<8xf32>
    %9 = vector.multi_reduction <add>, %6, %cst_9 [1] : vector<8x128xf32> to vector<8xf32>
    %10 = vector.shape_cast %9 : vector<8xf32> to vector<8x1xf32>
    %cst_10 = arith.constant 1.280000e+02 : f32
    %11 = vector.broadcast %cst_10 : f32 to vector<8x1xf32>
    %12 = arith.divf %10, %11 : vector<8x1xf32>
    %13 = vector.broadcast %12 : vector<8x1xf32> to vector<8x128xf32>
    %14 = arith.subf %6, %13 : vector<8x128xf32>
    %15 = arith.mulf %14, %14 : vector<8x128xf32>
    %cst_11 = arith.constant dense<0.000000e+00> : vector<8xf32>
    %16 = vector.multi_reduction <add>, %15, %cst_11 [1] : vector<8x128xf32> to vector<8xf32>
    %17 = vector.shape_cast %16 : vector<8xf32> to vector<8x1xf32>
    %cst_12 = arith.constant 1.280000e+02 : f32
    %18 = vector.broadcast %cst_12 : f32 to vector<8x1xf32>
    %19 = arith.divf %17, %18 : vector<8x1xf32>
    %20 = vector.broadcast %12 : vector<8x1xf32> to vector<8x128xf32>
    %21 = arith.subf %6, %20 : vector<8x128xf32>
    %cst_13 = arith.constant 9.99999974E-6 : f32
    %22 = vector.broadcast %cst_13 : f32 to vector<8x1xf32>
    %23 = arith.addf %19, %22 : vector<8x1xf32>
    %24 = math.rsqrt %23 : vector<8x1xf32>
    %25 = vector.broadcast %24 : vector<8x1xf32> to vector<8x128xf32>
    %26 = arith.mulf %21, %25 : vector<8x128xf32>
    %27 = vector.broadcast %7 : vector<1x128xf32> to vector<8x128xf32>
    %28 = arith.mulf %26, %27 : vector<8x128xf32>
    %29 = vector.broadcast %8 : vector<1x128xf32> to vector<8x128xf32>
    %30 = arith.addf %28, %29 : vector<8x128xf32>
    %c0_14 = arith.constant 0 : index
    %c0_15 = arith.constant 0 : index
    %c0_16 = arith.constant 0 : index
    %31 = vector.load %arg6[%c0_14, %c0_15, %c0_16] : memref<4x128x256xbf16, #tpu.memory_space<vmem>>, vector<1x128x256xbf16>
    %32 = vector.shape_cast %31 : vector<1x128x256xbf16> to vector<128x256xbf16>
    %c0_17 = arith.constant 0 : index
    %c0_18 = arith.constant 0 : index
    %c0_19 = arith.constant 0 : index
    %33 = vector.load %arg7[%c0_17, %c0_18, %c0_19] : memref<4x1x256xf32, #tpu.memory_space<vmem>>, vector<1x1x256xf32>
    %34 = vector.shape_cast %33 : vector<1x1x256xf32> to vector<1x256xf32>
    %c0_20 = arith.constant 0 : index
    %c0_21 = arith.constant 0 : index
    %c0_22 = arith.constant 0 : index
    %35 = vector.load %arg8[%c0_20, %c0_21, %c0_22] : memref<4x256x128xbf16, #tpu.memory_space<vmem>>, vector<1x256x128xbf16>
    %36 = vector.shape_cast %35 : vector<1x256x128xbf16> to vector<256x128xbf16>
    %c0_23 = arith.constant 0 : index
    %c0_24 = arith.constant 0 : index
    %c0_25 = arith.constant 0 : index
    %37 = vector.load %arg9[%c0_23, %c0_24, %c0_25] : memref<4x1x128xf32, #tpu.memory_space<vmem>>, vector<1x1x128xf32>
    %38 = vector.shape_cast %37 : vector<1x1x128xf32> to vector<1x128xf32>
    %39 = arith.truncf %30 : vector<8x128xf32> to vector<8x128xbf16>
    %cst_26 = arith.constant dense<0.000000e+00> : vector<8x256xf32>
    %40 = tpu.matmul %39, %32, %cst_26 {dimension_numbers = #tpu.dot_dimension_numbers<[1], [0], [0], [1], [0, 0, 1, 1], [], []>} : vector<8x128xbf16>, vector<128x256xbf16>, vector<8x256xf32> -> vector<8x256xf32>
    %41 = vector.broadcast %34 : vector<1x256xf32> to vector<8x256xf32>
    %42 = arith.addf %40, %41 : vector<8x256xf32>
    %cst_27 = arith.constant 5.000000e-01 : f32
    %43 = vector.broadcast %cst_27 : f32 to vector<8x256xf32>
    %44 = arith.mulf %43, %42 : vector<8x256xf32>
    %cst_28 = arith.constant 0.707106769 : f32
    %45 = vector.broadcast %cst_28 : f32 to vector<8x256xf32>
    %46 = arith.mulf %42, %45 : vector<8x256xf32>
    %47 = math.erf %46 : vector<8x256xf32>
    %cst_29 = arith.constant 1.000000e+00 : f32
    %48 = vector.broadcast %cst_29 : f32 to vector<8x256xf32>
    %49 = arith.addf %48, %47 : vector<8x256xf32>
    %50 = arith.mulf %44, %49 : vector<8x256xf32>
    %51 = arith.truncf %50 : vector<8x256xf32> to vector<8x256xbf16>
    %cst_30 = arith.constant dense<0.000000e+00> : vector<8x128xf32>
    %52 = tpu.matmul %51, %36, %cst_30 {dimension_numbers = #tpu.dot_dimension_numbers<[1], [0], [0], [1], [0, 0, 1, 1], [], []>} : vector<8x256xbf16>, vector<256x128xbf16>, vector<8x128xf32> -> vector<8x128xf32>
    %53 = vector.broadcast %38 : vector<1x128xf32> to vector<8x128xf32>
    %54 = arith.addf %52, %53 : vector<8x128xf32>
    %55 = arith.addf %54, %30 : vector<8x128xf32>
    %c1 = arith.constant 1 : index
    %c0_31 = arith.constant 0 : index
    %c0_32 = arith.constant 0 : index
    %56 = vector.load %arg6[%c1, %c0_31, %c0_32] : memref<4x128x256xbf16, #tpu.memory_space<vmem>>, vector<1x128x256xbf16>
    %57 = vector.shape_cast %56 : vector<1x128x256xbf16> to vector<128x256xbf16>
    %c1_33 = arith.constant 1 : index
    %c0_34 = arith.constant 0 : index
    %c0_35 = arith.constant 0 : index
    %58 = vector.load %arg7[%c1_33, %c0_34, %c0_35] : memref<4x1x256xf32, #tpu.memory_space<vmem>>, vector<1x1x256xf32>
    %59 = vector.shape_cast %58 : vector<1x1x256xf32> to vector<1x256xf32>
    %c1_36 = arith.constant 1 : index
    %c0_37 = arith.constant 0 : index
    %c0_38 = arith.constant 0 : index
    %60 = vector.load %arg8[%c1_36, %c0_37, %c0_38] : memref<4x256x128xbf16, #tpu.memory_space<vmem>>, vector<1x256x128xbf16>
    %61 = vector.shape_cast %60 : vector<1x256x128xbf16> to vector<256x128xbf16>
    %c1_39 = arith.constant 1 : index
    %c0_40 = arith.constant 0 : index
    %c0_41 = arith.constant 0 : index
    %62 = vector.load %arg9[%c1_39, %c0_40, %c0_41] : memref<4x1x128xf32, #tpu.memory_space<vmem>>, vector<1x1x128xf32>
    %63 = vector.shape_cast %62 : vector<1x1x128xf32> to vector<1x128xf32>
    %64 = arith.truncf %55 : vector<8x128xf32> to vector<8x128xbf16>
    %cst_42 = arith.constant dense<0.000000e+00> : vector<8x256xf32>
    %65 = tpu.matmul %64, %57, %cst_42 {dimension_numbers = #tpu.dot_dimension_numbers<[1], [0], [0], [1], [0, 0, 1, 1], [], []>} : vector<8x128xbf16>, vector<128x256xbf16>, vector<8x256xf32> -> vector<8x256xf32>
    %66 = vector.broadcast %59 : vector<1x256xf32> to vector<8x256xf32>
    %67 = arith.addf %65, %66 : vector<8x256xf32>
    %cst_43 = arith.constant 5.000000e-01 : f32
    %68 = vector.broadcast %cst_43 : f32 to vector<8x256xf32>
    %69 = arith.mulf %68, %67 : vector<8x256xf32>
    %cst_44 = arith.constant 0.707106769 : f32
    %70 = vector.broadcast %cst_44 : f32 to vector<8x256xf32>
    %71 = arith.mulf %67, %70 : vector<8x256xf32>
    %72 = math.erf %71 : vector<8x256xf32>
    %cst_45 = arith.constant 1.000000e+00 : f32
    %73 = vector.broadcast %cst_45 : f32 to vector<8x256xf32>
    %74 = arith.addf %73, %72 : vector<8x256xf32>
    %75 = arith.mulf %69, %74 : vector<8x256xf32>
    %76 = arith.truncf %75 : vector<8x256xf32> to vector<8x256xbf16>
    %cst_46 = arith.constant dense<0.000000e+00> : vector<8x128xf32>
    %77 = tpu.matmul %76, %61, %cst_46 {dimension_numbers = #tpu.dot_dimension_numbers<[1], [0], [0], [1], [0, 0, 1, 1], [], []>} : vector<8x256xbf16>, vector<256x128xbf16>, vector<8x128xf32> -> vector<8x128xf32>
    %78 = vector.broadcast %63 : vector<1x128xf32> to vector<8x128xf32>
    %79 = arith.addf %77, %78 : vector<8x128xf32>
    %80 = arith.addf %79, %55 : vector<8x128xf32>
    %c2 = arith.constant 2 : index
    %c0_47 = arith.constant 0 : index
    %c0_48 = arith.constant 0 : index
    %81 = vector.load %arg6[%c2, %c0_47, %c0_48] : memref<4x128x256xbf16, #tpu.memory_space<vmem>>, vector<1x128x256xbf16>
    %82 = vector.shape_cast %81 : vector<1x128x256xbf16> to vector<128x256xbf16>
    %c2_49 = arith.constant 2 : index
    %c0_50 = arith.constant 0 : index
    %c0_51 = arith.constant 0 : index
    %83 = vector.load %arg7[%c2_49, %c0_50, %c0_51] : memref<4x1x256xf32, #tpu.memory_space<vmem>>, vector<1x1x256xf32>
    %84 = vector.shape_cast %83 : vector<1x1x256xf32> to vector<1x256xf32>
    %c2_52 = arith.constant 2 : index
    %c0_53 = arith.constant 0 : index
    %c0_54 = arith.constant 0 : index
    %85 = vector.load %arg8[%c2_52, %c0_53, %c0_54] : memref<4x256x128xbf16, #tpu.memory_space<vmem>>, vector<1x256x128xbf16>
    %86 = vector.shape_cast %85 : vector<1x256x128xbf16> to vector<256x128xbf16>
    %c2_55 = arith.constant 2 : index
    %c0_56 = arith.constant 0 : index
    %c0_57 = arith.constant 0 : index
    %87 = vector.load %arg9[%c2_55, %c0_56, %c0_57] : memref<4x1x128xf32, #tpu.memory_space<vmem>>, vector<1x1x128xf32>
    %88 = vector.shape_cast %87 : vector<1x1x128xf32> to vector<1x128xf32>
    %89 = arith.truncf %80 : vector<8x128xf32> to vector<8x128xbf16>
    %cst_58 = arith.constant dense<0.000000e+00> : vector<8x256xf32>
    %90 = tpu.matmul %89, %82, %cst_58 {dimension_numbers = #tpu.dot_dimension_numbers<[1], [0], [0], [1], [0, 0, 1, 1], [], []>} : vector<8x128xbf16>, vector<128x256xbf16>, vector<8x256xf32> -> vector<8x256xf32>
    %91 = vector.broadcast %84 : vector<1x256xf32> to vector<8x256xf32>
    %92 = arith.addf %90, %91 : vector<8x256xf32>
    %cst_59 = arith.constant 5.000000e-01 : f32
    %93 = vector.broadcast %cst_59 : f32 to vector<8x256xf32>
    %94 = arith.mulf %93, %92 : vector<8x256xf32>
    %cst_60 = arith.constant 0.707106769 : f32
    %95 = vector.broadcast %cst_60 : f32 to vector<8x256xf32>
    %96 = arith.mulf %92, %95 : vector<8x256xf32>
    %97 = math.erf %96 : vector<8x256xf32>
    %cst_61 = arith.constant 1.000000e+00 : f32
    %98 = vector.broadcast %cst_61 : f32 to vector<8x256xf32>
    %99 = arith.addf %98, %97 : vector<8x256xf32>
    %100 = arith.mulf %94, %99 : vector<8x256xf32>
    %101 = arith.truncf %100 : vector<8x256xf32> to vector<8x256xbf16>
    %cst_62 = arith.constant dense<0.000000e+00> : vector<8x128xf32>
    %102 = tpu.matmul %101, %86, %cst_62 {dimension_numbers = #tpu.dot_dimension_numbers<[1], [0], [0], [1], [0, 0, 1, 1], [], []>} : vector<8x256xbf16>, vector<256x128xbf16>, vector<8x128xf32> -> vector<8x128xf32>
    %103 = vector.broadcast %88 : vector<1x128xf32> to vector<8x128xf32>
    %104 = arith.addf %102, %103 : vector<8x128xf32>
    %105 = arith.addf %104, %80 : vector<8x128xf32>
    %c3 = arith.constant 3 : index
    %c0_63 = arith.constant 0 : index
    %c0_64 = arith.constant 0 : index
    %106 = vector.load %arg6[%c3, %c0_63, %c0_64] : memref<4x128x256xbf16, #tpu.memory_space<vmem>>, vector<1x128x256xbf16>
    %107 = vector.shape_cast %106 : vector<1x128x256xbf16> to vector<128x256xbf16>
    %c3_65 = arith.constant 3 : index
    %c0_66 = arith.constant 0 : index
    %c0_67 = arith.constant 0 : index
    %108 = vector.load %arg7[%c3_65, %c0_66, %c0_67] : memref<4x1x256xf32, #tpu.memory_space<vmem>>, vector<1x1x256xf32>
    %109 = vector.shape_cast %108 : vector<1x1x256xf32> to vector<1x256xf32>
    %c3_68 = arith.constant 3 : index
    %c0_69 = arith.constant 0 : index
    %c0_70 = arith.constant 0 : index
    %110 = vector.load %arg8[%c3_68, %c0_69, %c0_70] : memref<4x256x128xbf16, #tpu.memory_space<vmem>>, vector<1x256x128xbf16>
    %111 = vector.shape_cast %110 : vector<1x256x128xbf16> to vector<256x128xbf16>
    %c3_71 = arith.constant 3 : index
    %c0_72 = arith.constant 0 : index
    %c0_73 = arith.constant 0 : index
    %112 = vector.load %arg9[%c3_71, %c0_72, %c0_73] : memref<4x1x128xf32, #tpu.memory_space<vmem>>, vector<1x1x128xf32>
    %113 = vector.shape_cast %112 : vector<1x1x128xf32> to vector<1x128xf32>
    %114 = arith.truncf %105 : vector<8x128xf32> to vector<8x128xbf16>
    %cst_74 = arith.constant dense<0.000000e+00> : vector<8x256xf32>
    %115 = tpu.matmul %114, %107, %cst_74 {dimension_numbers = #tpu.dot_dimension_numbers<[1], [0], [0], [1], [0, 0, 1, 1], [], []>} : vector<8x128xbf16>, vector<128x256xbf16>, vector<8x256xf32> -> vector<8x256xf32>
    %116 = vector.broadcast %109 : vector<1x256xf32> to vector<8x256xf32>
    %117 = arith.addf %115, %116 : vector<8x256xf32>
    %cst_75 = arith.constant 5.000000e-01 : f32
    %118 = vector.broadcast %cst_75 : f32 to vector<8x256xf32>
    %119 = arith.mulf %118, %117 : vector<8x256xf32>
    %cst_76 = arith.constant 0.707106769 : f32
    %120 = vector.broadcast %cst_76 : f32 to vector<8x256xf32>
    %121 = arith.mulf %117, %120 : vector<8x256xf32>
    %122 = math.erf %121 : vector<8x256xf32>
    %cst_77 = arith.constant 1.000000e+00 : f32
    %123 = vector.broadcast %cst_77 : f32 to vector<8x256xf32>
    %124 = arith.addf %123, %122 : vector<8x256xf32>
    %125 = arith.mulf %119, %124 : vector<8x256xf32>
    %126 = arith.truncf %125 : vector<8x256xf32> to vector<8x256xbf16>
    %cst_78 = arith.constant dense<0.000000e+00> : vector<8x128xf32>
    %127 = tpu.matmul %126, %111, %cst_78 {dimension_numbers = #tpu.dot_dimension_numbers<[1], [0], [0], [1], [0, 0, 1, 1], [], []>} : vector<8x256xbf16>, vector<256x128xbf16>, vector<8x128xf32> -> vector<8x128xf32>
    %128 = vector.broadcast %113 : vector<1x128xf32> to vector<8x128xf32>
    %129 = arith.addf %127, %128 : vector<8x128xf32>
    %130 = arith.addf %129, %105 : vector<8x128xf32>
    %c0_79 = arith.constant 0 : index
    %c0_80 = arith.constant 0 : index
    %131 = vector.load %arg10[%c0_79, %c0_80] : memref<1x128xf32, #tpu.memory_space<vmem>>, vector<1x128xf32>
    %c0_81 = arith.constant 0 : index
    %c0_82 = arith.constant 0 : index
    %132 = vector.load %arg11[%c0_81, %c0_82] : memref<1x128xf32, #tpu.memory_space<vmem>>, vector<1x128xf32>
    %cst_83 = arith.constant dense<0.000000e+00> : vector<8xf32>
    %133 = vector.multi_reduction <add>, %130, %cst_83 [1] : vector<8x128xf32> to vector<8xf32>
    %134 = vector.shape_cast %133 : vector<8xf32> to vector<8x1xf32>
    %cst_84 = arith.constant 1.280000e+02 : f32
    %135 = vector.broadcast %cst_84 : f32 to vector<8x1xf32>
    %136 = arith.divf %134, %135 : vector<8x1xf32>
    %137 = vector.broadcast %136 : vector<8x1xf32> to vector<8x128xf32>
    %138 = arith.subf %130, %137 : vector<8x128xf32>
    %139 = arith.mulf %138, %138 : vector<8x128xf32>
    %cst_85 = arith.constant dense<0.000000e+00> : vector<8xf32>
    %140 = vector.multi_reduction <add>, %139, %cst_85 [1] : vector<8x128xf32> to vector<8xf32>
    %141 = vector.shape_cast %140 : vector<8xf32> to vector<8x1xf32>
    %cst_86 = arith.constant 1.280000e+02 : f32
    %142 = vector.broadcast %cst_86 : f32 to vector<8x1xf32>
    %143 = arith.divf %141, %142 : vector<8x1xf32>
    %144 = vector.broadcast %136 : vector<8x1xf32> to vector<8x128xf32>
    %145 = arith.subf %130, %144 : vector<8x128xf32>
    %cst_87 = arith.constant 9.99999974E-6 : f32
    %146 = vector.broadcast %cst_87 : f32 to vector<8x1xf32>
    %147 = arith.addf %143, %146 : vector<8x1xf32>
    %148 = math.rsqrt %147 : vector<8x1xf32>
    %149 = vector.broadcast %148 : vector<8x1xf32> to vector<8x128xf32>
    %150 = arith.mulf %145, %149 : vector<8x128xf32>
    %151 = vector.broadcast %131 : vector<1x128xf32> to vector<8x128xf32>
    %152 = arith.mulf %150, %151 : vector<8x128xf32>
    %153 = vector.broadcast %132 : vector<1x128xf32> to vector<8x128xf32>
    %154 = arith.addf %152, %153 : vector<8x128xf32>
    %c0_88 = arith.constant 0 : index
    %c0_89 = arith.constant 0 : index
    %155 = vector.load %arg12[%c0_88, %c0_89] : memref<128x128xbf16, #tpu.memory_space<vmem>>, vector<128x128xbf16>
    %156 = arith.truncf %154 : vector<8x128xf32> to vector<8x128xbf16>
    %cst_90 = arith.constant dense<0.000000e+00> : vector<8x128xf32>
    %157 = tpu.matmul %156, %155, %cst_90 {dimension_numbers = #tpu.dot_dimension_numbers<[1], [0], [0], [1], [0, 0, 1, 1], [], []>} : vector<8x128xbf16>, vector<128x128xbf16>, vector<8x128xf32> -> vector<8x128xf32>
    %c0_91 = arith.constant 0 : index
    %c0_92 = arith.constant 0 : index
    %158 = vector.load %arg13[%c0_91, %c0_92] : memref<1x128xf32, #tpu.memory_space<vmem>>, vector<1x128xf32>
    %159 = vector.broadcast %158 : vector<1x128xf32> to vector<8x128xf32>
    %160 = arith.addf %157, %159 : vector<8x128xf32>
    %c0_93 = arith.constant 0 : index
    %c0_94 = arith.constant 0 : index
    %161 = vector.load %arg14[%c0_93, %c0_94] : memref<8x128xf32, #tpu.memory_space<vmem>>, vector<8x128xf32>
    tpu.vector_store %arg14[%c0_93, %c0_94], %160 {strides = array<i32>} : memref<8x128xf32, #tpu.memory_space<vmem>>, vector<8x128xf32>,
    return
  }
  func.func @transform_0(%arg0: i32) -> (i32, i32) {
    %c0_i32 = arith.constant 0 : i32
    %c0_i32_0 = arith.constant 0 : i32
    return %arg0, %c0_i32 : i32, i32
  }
  func.func @transform_1(%arg0: i32) -> (i32, i32) {
    %c0_i32 = arith.constant 0 : i32
    %c0_i32_0 = arith.constant 0 : i32
    %c0_i32_1 = arith.constant 0 : i32
    return %c0_i32, %c0_i32_0 : i32, i32
  }
  func.func @transform_2(%arg0: i32) -> (i32, i32) {
    %c0_i32 = arith.constant 0 : i32
    %c0_i32_0 = arith.constant 0 : i32
    %c0_i32_1 = arith.constant 0 : i32
    return %c0_i32, %c0_i32_0 : i32, i32
  }
  func.func @transform_3(%arg0: i32) -> (i32, i32) {
    %c0_i32 = arith.constant 0 : i32
    %c0_i32_0 = arith.constant 0 : i32
    %c0_i32_1 = arith.constant 0 : i32
    return %c0_i32, %c0_i32_0 : i32, i32
  }
  func.func @transform_4(%arg0: i32) -> (i32, i32) {
    %c0_i32 = arith.constant 0 : i32
    %c0_i32_0 = arith.constant 0 : i32
    %c0_i32_1 = arith.constant 0 : i32
    return %c0_i32, %c0_i32_0 : i32, i32
  }
  func.func @transform_5(%arg0: i32) -> (i32, i32, i32) {
    %c0_i32 = arith.constant 0 : i32
    %c0_i32_0 = arith.constant 0 : i32
    %c0_i32_1 = arith.constant 0 : i32
    %c0_i32_2 = arith.constant 0 : i32
    return %c0_i32, %c0_i32_0, %c0_i32_1 : i32, i32, i32
  }
  func.func @transform_6(%arg0: i32) -> (i32, i32, i32) {
    %c0_i32 = arith.constant 0 : i32
    %c0_i32_0 = arith.constant 0 : i32
    %c0_i32_1 = arith.constant 0 : i32
    %c0_i32_2 = arith.constant 0 : i32
    return %c0_i32, %c0_i32_0, %c0_i32_1 : i32, i32, i32
  }
  func.func @transform_7(%arg0: i32) -> (i32, i32, i32) {
    %c0_i32 = arith.constant 0 : i32
    %c0_i32_0 = arith.constant 0 : i32
    %c0_i32_1 = arith.constant 0 : i32
    %c0_i32_2 = arith.constant 0 : i32
    return %c0_i32, %c0_i32_0, %c0_i32_1 : i32, i32, i32
  }
  func.func @transform_8(%arg0: i32) -> (i32, i32, i32) {
    %c0_i32 = arith.constant 0 : i32
    %c0_i32_0 = arith.constant 0 : i32
    %c0_i32_1 = arith.constant 0 : i32
    %c0_i32_2 = arith.constant 0 : i32
    return %c0_i32, %c0_i32_0, %c0_i32_1 : i32, i32, i32
  }
  func.func @transform_9(%arg0: i32) -> (i32, i32) {
    %c0_i32 = arith.constant 0 : i32
    %c0_i32_0 = arith.constant 0 : i32
    %c0_i32_1 = arith.constant 0 : i32
    return %c0_i32, %c0_i32_0 : i32, i32
  }
  func.func @transform_10(%arg0: i32) -> (i32, i32) {
    %c0_i32 = arith.constant 0 : i32
    %c0_i32_0 = arith.constant 0 : i32
    %c0_i32_1 = arith.constant 0 : i32
    return %c0_i32, %c0_i32_0 : i32, i32
  }
  func.func @transform_11(%arg0: i32) -> (i32, i32) {
    %c0_i32 = arith.constant 0 : i32
    %c0_i32_0 = arith.constant 0 : i32
    %c0_i32_1 = arith.constant 0 : i32
    return %c0_i32, %c0_i32_0 : i32, i32
  }
  func.func @transform_12(%arg0: i32) -> (i32, i32) {
    %c0_i32 = arith.constant 0 : i32
    %c0_i32_0 = arith.constant 0 : i32
    %c0_i32_1 = arith.constant 0 : i32
    return %c0_i32, %c0_i32_0 : i32, i32
  }
  func.func @transform_13(%arg0: i32) -> (i32, i32) {
    %c0_i32 = arith.constant 0 : i32
    %c0_i32_0 = arith.constant 0 : i32
    return %arg0, %c0_i32 : i32, i32
  }
}

module attributes {stable_mosaic.version = 11 : i64} {
  func.func @kernel(%arg0: i32, %arg1: memref<8x128xf32, #tpu.memory_space<vmem>>, %arg2: memref<128x128xbf16, #tpu.memory_space<vmem>>, %arg3: memref<1x128xf32, #tpu.memory_space<vmem>>, %arg4: memref<1x128xf32, #tpu.memory_space<vmem>>, %arg5: memref<1x128xf32, #tpu.memory_space<vmem>>, %arg6: memref<4x128x256xbf16, #tpu.memory_space<vmem>>, %arg7: memref<4x1x256xf32, #tpu.memory_space<vmem>>, %arg8: memref<4x256x128xbf16, #tpu.memory_space<vmem>>, %arg9: memref<4x1x128xf32, #tpu.memory_space<vmem>>, %arg10: memref<1x128xf32, #tpu.memory_space<vmem>>, %arg11: memref<1x128xf32, #tpu.memory_space<vmem>>, %arg12: memref<128x128xbf16, #tpu.memory_space<vmem>>, %arg13: memref<1x128xf32, #tpu.memory_space<vmem>>, %arg14: memref<8x128xf32, #tpu.memory_space<vmem>>) attributes {dimension_semantics = [#tpu.dimension_semantics<parallel>], iteration_bounds = array<i64: 1>, scalar_prefetch = 0 : i64, scratch_operands = 0 : i64, tpu.core_type = #tpu.core_type<tc>, window_params = [{transform_indices = @transform_0, window_bounds = array<i64: 8, 128>}, {pipeline_mode = #tpu.pipeline_mode<synchronous>, transform_indices = @transform_1, window_bounds = array<i64: 128, 128>}, {pipeline_mode = #tpu.pipeline_mode<synchronous>, transform_indices = @transform_2, window_bounds = array<i64: 1, 128>}, {pipeline_mode = #tpu.pipeline_mode<synchronous>, transform_indices = @transform_3, window_bounds = array<i64: 1, 128>}, {pipeline_mode = #tpu.pipeline_mode<synchronous>, transform_indices = @transform_4, window_bounds = array<i64: 1, 128>}, {pipeline_mode = #tpu.pipeline_mode<synchronous>, transform_indices = @transform_5, window_bounds = array<i64: 4, 128, 256>}, {pipeline_mode = #tpu.pipeline_mode<synchronous>, transform_indices = @transform_6, window_bounds = array<i64: 4, 1, 256>}, {pipeline_mode = #tpu.pipeline_mode<synchronous>, transform_indices = @transform_7, window_bounds = array<i64: 4, 256, 128>}, {pipeline_mode = #tpu.pipeline_mode<synchronous>, transform_indices = @transform_8, window_bounds = array<i64: 4, 1, 128>}, {pipeline_mode = #tpu.pipeline_mode<synchronous>, transform_indices = @transform_9, window_bounds = array<i64: 1, 128>}, {pipeline_mode = #tpu.pipeline_mode<synchronous>, transform_indices = @transform_10, window_bounds = array<i64: 1, 128>}, {pipeline_mode = #tpu.pipeline_mode<synchronous>, transform_indices = @transform_11, window_bounds = array<i64: 128, 128>}, {pipeline_mode = #tpu.pipeline_mode<synchronous>, transform_indices = @transform_12, window_bounds = array<i64: 1, 128>}, {transform_indices = @transform_13, window_bounds = array<i64: 8, 128>}]} {
    %c0 = arith.constant 0 : index
    %c0_0 = arith.constant 0 : index
    %0 = vector.load %arg1[%c0, %c0_0] : memref<8x128xf32, #tpu.memory_space<vmem>>, vector<8x128xf32>
    %c0_1 = arith.constant 0 : index
    %c0_2 = arith.constant 0 : index
    %1 = vector.load %arg2[%c0_1, %c0_2] : memref<128x128xbf16, #tpu.memory_space<vmem>>, vector<128x128xbf16>
    %2 = arith.truncf %0 : vector<8x128xf32> to vector<8x128xbf16>
    %cst = arith.constant dense<0.000000e+00> : vector<8x128xf32>
    %3 = tpu.matmul %2, %1, %cst {dimension_numbers = #tpu.dot_dimension_numbers<[1], [0], [0], [1], [0, 0, 1, 1], [], []>} : vector<8x128xbf16>, vector<128x128xbf16>, vector<8x128xf32> -> vector<8x128xf32>
    %c0_3 = arith.constant 0 : index
    %c0_4 = arith.constant 0 : index
    %4 = vector.load %arg3[%c0_3, %c0_4] : memref<1x128xf32, #tpu.memory_space<vmem>>, vector<1x128xf32>
    %5 = vector.broadcast %4 : vector<1x128xf32> to vector<8x128xf32>
    %6 = arith.addf %3, %5 : vector<8x128xf32>
    %c0_5 = arith.constant 0 : index
    %c0_6 = arith.constant 0 : index
    %7 = vector.load %arg4[%c0_5, %c0_6] : memref<1x128xf32, #tpu.memory_space<vmem>>, vector<1x128xf32>
    %c0_7 = arith.constant 0 : index
    %c0_8 = arith.constant 0 : index
    %8 = vector.load %arg5[%c0_7, %c0_8] : memref<1x128xf32, #tpu.memory_space<vmem>>, vector<1x128xf32>
    %cst_9 = arith.constant dense<0.000000e+00> : vector<8xf32>
    %9 = vector.multi_reduction <add>, %6, %cst_9 [1] : vector<8x128xf32> to vector<8xf32>
    %10 = vector.shape_cast %9 : vector<8xf32> to vector<8x1xf32>
    %cst_10 = arith.constant 1.280000e+02 : f32
    %11 = vector.broadcast %cst_10 : f32 to vector<8x1xf32>
    %12 = arith.divf %10, %11 : vector<8x1xf32>
    %13 = vector.broadcast %12 : vector<8x1xf32> to vector<8x128xf32>
    %14 = arith.subf %6, %13 : vector<8x128xf32>
    %15 = arith.mulf %14, %14 : vector<8x128xf32>
    %cst_11 = arith.constant dense<0.000000e+00> : vector<8xf32>
    %16 = vector.multi_reduction <add>, %15, %cst_11 [1] : vector<8x128xf32> to vector<8xf32>
    %17 = vector.shape_cast %16 : vector<8xf32> to vector<8x1xf32>
    %cst_12 = arith.constant 1.280000e+02 : f32
    %18 = vector.broadcast %cst_12 : f32 to vector<8x1xf32>
    %19 = arith.divf %17, %18 : vector<8x1xf32>
    %20 = vector.broadcast %12 : vector<8x1xf32> to vector<8x128xf32>
    %21 = arith.subf %6, %20 : vector<8x128xf32>
    %cst_13 = arith.constant 9.99999974E-6 : f32
    %22 = vector.broadcast %cst_13 : f32 to vector<8x1xf32>
    %23 = arith.addf %19, %22 : vector<8x1xf32>
    %24 = math.rsqrt %23 : vector<8x1xf32>
    %25 = vector.broadcast %24 : vector<8x1xf32> to vector<8x128xf32>
    %26 = arith.mulf %21, %25 : vector<8x128xf32>
    %27 = vector.broadcast %7 : vector<1x128xf32> to vector<8x128xf32>
    %28 = arith.mulf %26, %27 : vector<8x128xf32>
    %29 = vector.broadcast %8 : vector<1x128xf32> to vector<8x128xf32>
    %30 = arith.addf %28, %29 : vector<8x128xf32>
    %c0_14 = arith.constant 0 : index
    %c0_15 = arith.constant 0 : index
    %c0_16 = arith.constant 0 : index
    %31 = vector.load %arg6[%c0_14, %c0_15, %c0_16] : memref<4x128x256xbf16, #tpu.memory_space<vmem>>, vector<1x128x256xbf16>
    %32 = vector.shape_cast %31 : vector<1x128x256xbf16> to vector<128x256xbf16>
    %c0_17 = arith.constant 0 : index
    %c0_18 = arith.constant 0 : index
    %c0_19 = arith.constant 0 : index
    %33 = vector.load %arg7[%c0_17, %c0_18, %c0_19] : memref<4x1x256xf32, #tpu.memory_space<vmem>>, vector<1x1x256xf32>
    %34 = vector.shape_cast %33 : vector<1x1x256xf32> to vector<1x256xf32>
    %c0_20 = arith.constant 0 : index
    %c0_21 = arith.constant 0 : index
    %c0_22 = arith.constant 0 : index
    %35 = vector.load %arg8[%c0_20, %c0_21, %c0_22] : memref<4x256x128xbf16, #tpu.memory_space<vmem>>, vector<1x256x128xbf16>
    %36 = vector.shape_cast %35 : vector<1x256x128xbf16> to vector<256x128xbf16>
    %c0_23 = arith.constant 0 : index
    %c0_24 = arith.constant 0 : index
    %c0_25 = arith.constant 0 : index
    %37 = vector.load %arg9[%c0_23, %c0_24, %c0_25] : memref<4x1x128xf32, #tpu.memory_space<vmem>>, vector<1x1x128xf32>
    %38 = vector.shape_cast %37 : vector<1x1x128xf32> to vector<1x128xf32>
    %39 = arith.truncf %30 : vector<8x128xf32> to vector<8x128xbf16>
    %cst_26 = arith.constant dense<0.000000e+00> : vector<8x256xf32>
    %40 = tpu.matmul %39, %32, %cst_26 {dimension_numbers = #tpu.dot_dimension_numbers<[1], [0], [0], [1], [0, 0, 1, 1], [], []>} : vector<8x128xbf16>, vector<128x256xbf16>, vector<8x256xf32> -> vector<8x256xf32>
    %41 = vector.broadcast %34 : vector<1x256xf32> to vector<8x256xf32>
    %42 = arith.addf %40, %41 : vector<8x256xf32>
    %cst_27 = arith.constant 5.000000e-01 : f32
    %43 = vector.broadcast %cst_27 : f32 to vector<8x256xf32>
    %44 = arith.mulf %43, %42 : vector<8x256xf32>
    %cst_28 = arith.constant 0.707106769 : f32
    %45 = vector.broadcast %cst_28 : f32 to vector<8x256xf32>
    %46 = arith.mulf %42, %45 : vector<8x256xf32>
    %47 = math.erf %46 : vector<8x256xf32>
    %cst_29 = arith.constant 1.000000e+00 : f32
    %48 = vector.broadcast %cst_29 : f32 to vector<8x256xf32>
    %49 = arith.addf %48, %47 : vector<8x256xf32>
    %50 = arith.mulf %44, %49 : vector<8x256xf32>
    %51 = arith.truncf %50 : vector<8x256xf32> to vector<8x256xbf16>
    %cst_30 = arith.constant dense<0.000000e+00> : vector<8x128xf32>
    %52 = tpu.matmul %51, %36, %cst_30 {dimension_numbers = #tpu.dot_dimension_numbers<[1], [0], [0], [1], [0, 0, 1, 1], [], []>} : vector<8x256xbf16>, vector<256x128xbf16>, vector<8x128xf32> -> vector<8x128xf32>
    %53 = vector.broadcast %38 : vector<1x128xf32> to vector<8x128xf32>
    %54 = arith.addf %52, %53 : vector<8x128xf32>
    %55 = arith.addf %54, %30 : vector<8x128xf32>
    %c1 = arith.constant 1 : index
    %c0_31 = arith.constant 0 : index
    %c0_32 = arith.constant 0 : index
    %56 = vector.load %arg6[%c1, %c0_31, %c0_32] : memref<4x128x256xbf16, #tpu.memory_space<vmem>>, vector<1x128x256xbf16>
    %57 = vector.shape_cast %56 : vector<1x128x256xbf16> to vector<128x256xbf16>
    %c1_33 = arith.constant 1 : index
    %c0_34 = arith.constant 0 : index
    %c0_35 = arith.constant 0 : index
    %58 = vector.load %arg7[%c1_33, %c0_34, %c0_35] : memref<4x1x256xf32, #tpu.memory_space<vmem>>, vector<1x1x256xf32>
    %59 = vector.shape_cast %58 : vector<1x1x256xf32> to vector<1x256xf32>
    %c1_36 = arith.constant 1 : index
    %c0_37 = arith.constant 0 : index
    %c0_38 = arith.constant 0 : index
    %60 = vector.load %arg8[%c1_36, %c0_37, %c0_38] : memref<4x256x128xbf16, #tpu.memory_space<vmem>>, vector<1x256x128xbf16>
    %61 = vector.shape_cast %60 : vector<1x256x128xbf16> to vector<256x128xbf16>
    %c1_39 = arith.constant 1 : index
    %c0_40 = arith.constant 0 : index
    %c0_41 = arith.constant 0 : index
    %62 = vector.load %arg9[%c1_39, %c0_40, %c0_41] : memref<4x1x128xf32, #tpu.memory_space<vmem>>, vector<1x1x128xf32>
    %63 = vector.shape_cast %62 : vector<1x1x128xf32> to vector<1x128xf32>
    %64 = arith.truncf %55 : vector<8x128xf32> to vector<8x128xbf16>
    %cst_42 = arith.constant dense<0.000000e+00> : vector<8x256xf32>
    %65 = tpu.matmul %64, %57, %cst_42 {dimension_numbers = #tpu.dot_dimension_numbers<[1], [0], [0], [1], [0, 0, 1, 1], [], []>} : vector<8x128xbf16>, vector<128x256xbf16>, vector<8x256xf32> -> vector<8x256xf32>
    %66 = vector.broadcast %59 : vector<1x256xf32> to vector<8x256xf32>
    %67 = arith.addf %65, %66 : vector<8x256xf32>
    %cst_43 = arith.constant 5.000000e-01 : f32
    %68 = vector.broadcast %cst_43 : f32 to vector<8x256xf32>
    %69 = arith.mulf %68, %67 : vector<8x256xf32>
    %cst_44 = arith.constant 0.707106769 : f32
    %70 = vector.broadcast %cst_44 : f32 to vector<8x256xf32>
    %71 = arith.mulf %67, %70 : vector<8x256xf32>
    %72 = math.erf %71 : vector<8x256xf32>
    %cst_45 = arith.constant 1.000000e+00 : f32
    %73 = vector.broadcast %cst_45 : f32 to vector<8x256xf32>
    %74 = arith.addf %73, %72 : vector<8x256xf32>
    %75 = arith.mulf %69, %74 : vector<8x256xf32>
    %76 = arith.truncf %75 : vector<8x256xf32> to vector<8x256xbf16>
    %cst_46 = arith.constant dense<0.000000e+00> : vector<8x128xf32>
    %77 = tpu.matmul %76, %61, %cst_46 {dimension_numbers = #tpu.dot_dimension_numbers<[1], [0], [0], [1], [0, 0, 1, 1], [], []>} : vector<8x256xbf16>, vector<256x128xbf16>, vector<8x128xf32> -> vector<8x128xf32>
    %78 = vector.broadcast %63 : vector<1x128xf32> to vector<8x128xf32>
    %79 = arith.addf %77, %78 : vector<8x128xf32>
    %80 = arith.addf %79, %55 : vector<8x128xf32>
    %c2 = arith.constant 2 : index
    %c0_47 = arith.constant 0 : index
    %c0_48 = arith.constant 0 : index
    %81 = vector.load %arg6[%c2, %c0_47, %c0_48] : memref<4x128x256xbf16, #tpu.memory_space<vmem>>, vector<1x128x256xbf16>
    %82 = vector.shape_cast %81 : vector<1x128x256xbf16> to vector<128x256xbf16>
    %c2_49 = arith.constant 2 : index
    %c0_50 = arith.constant 0 : index
    %c0_51 = arith.constant 0 : index
    %83 = vector.load %arg7[%c2_49, %c0_50, %c0_51] : memref<4x1x256xf32, #tpu.memory_space<vmem>>, vector<1x1x256xf32>
    %84 = vector.shape_cast %83 : vector<1x1x256xf32> to vector<1x256xf32>
    %c2_52 = arith.constant 2 : index
    %c0_53 = arith.constant 0 : index
    %c0_54 = arith.constant 0 : index
    %85 = vector.load %arg8[%c2_52, %c0_53, %c0_54] : memref<4x256x128xbf16, #tpu.memory_space<vmem>>, vector<1x256x128xbf16>
    %86 = vector.shape_cast %85 : vector<1x256x128xbf16> to vector<256x128xbf16>
    %c2_55 = arith.constant 2 : index
    %c0_56 = arith.constant 0 : index
    %c0_57 = arith.constant 0 : index
    %87 = vector.load %arg9[%c2_55, %c0_56, %c0_57] : memref<4x1x128xf32, #tpu.memory_space<vmem>>, vector<1x1x128xf32>
    %88 = vector.shape_cast %87 : vector<1x1x128xf32> to vector<1x128xf32>
    %89 = arith.truncf %80 : vector<8x128xf32> to vector<8x128xbf16>
    %cst_58 = arith.constant dense<0.000000e+00> : vector<8x256xf32>
    %90 = tpu.matmul %89, %82, %cst_58 {dimension_numbers = #tpu.dot_dimension_numbers<[1], [0], [0], [1], [0, 0, 1, 1], [], []>} : vector<8x128xbf16>, vector<128x256xbf16>, vector<8x256xf32> -> vector<8x256xf32>
    %91 = vector.broadcast %84 : vector<1x256xf32> to vector<8x256xf32>
    %92 = arith.addf %90, %91 : vector<8x256xf32>
    %cst_59 = arith.constant 5.000000e-01 : f32
    %93 = vector.broadcast %cst_59 : f32 to vector<8x256xf32>
    %94 = arith.mulf %93, %92 : vector<8x256xf32>
    %cst_60 = arith.constant 0.707106769 : f32
    %95 = vector.broadcast %cst_60 : f32 to vector<8x256xf32>
    %96 = arith.mulf %92, %95 : vector<8x256xf32>
    %97 = math.erf %96 : vector<8x256xf32>
    %cst_61 = arith.constant 1.000000e+00 : f32
    %98 = vector.broadcast %cst_61 : f32 to vector<8x256xf32>
    %99 = arith.addf %98, %97 : vector<8x256xf32>
    %100 = arith.mulf %94, %99 : vector<8x256xf32>
    %101 = arith.truncf %100 : vector<8x256xf32> to vector<8x256xbf16>
    %cst_62 = arith.constant dense<0.000000e+00> : vector<8x128xf32>
    %102 = tpu.matmul %101, %86, %cst_62 {dimension_numbers = #tpu.dot_dimension_numbers<[1], [0], [0], [1], [0, 0, 1, 1], [], []>} : vector<8x256xbf16>, vector<256x128xbf16>, vector<8x128xf32> -> vector<8x128xf32>
    %103 = vector.broadcast %88 : vector<1x128xf32> to vector<8x128xf32>
    %104 = arith.addf %102, %103 : vector<8x128xf32>
    %105 = arith.addf %104, %80 : vector<8x128xf32>
    %c3 = arith.constant 3 : index
    %c0_63 = arith.constant 0 : index
    %c0_64 = arith.constant 0 : index
    %106 = vector.load %arg6[%c3, %c0_63, %c0_64] : memref<4x128x256xbf16, #tpu.memory_space<vmem>>, vector<1x128x256xbf16>
    %107 = vector.shape_cast %106 : vector<1x128x256xbf16> to vector<128x256xbf16>
    %c3_65 = arith.constant 3 : index
    %c0_66 = arith.constant 0 : index
    %c0_67 = arith.constant 0 : index
    %108 = vector.load %arg7[%c3_65, %c0_66, %c0_67] : memref<4x1x256xf32, #tpu.memory_space<vmem>>, vector<1x1x256xf32>
    %109 = vector.shape_cast %108 : vector<1x1x256xf32> to vector<1x256xf32>
    %c3_68 = arith.constant 3 : index
    %c0_69 = arith.constant 0 : index
    %c0_70 = arith.constant 0 : index
    %110 = vector.load %arg8[%c3_68, %c0_69, %c0_70] : memref<4x256x128xbf16, #tpu.memory_space<vmem>>, vector<1x256x128xbf16>
    %111 = vector.shape_cast %110 : vector<1x256x128xbf16> to vector<256x128xbf16>
    %c3_71 = arith.constant 3 : index
    %c0_72 = arith.constant 0 : index
    %c0_73 = arith.constant 0 : index
    %112 = vector.load %arg9[%c3_71, %c0_72, %c0_73] : memref<4x1x128xf32, #tpu.memory_space<vmem>>, vector<1x1x128xf32>
    %113 = vector.shape_cast %112 : vector<1x1x128xf32> to vector<1x128xf32>
    %114 = arith.truncf %105 : vector<8x128xf32> to vector<8x128xbf16>
    %cst_74 = arith.constant dense<0.000000e+00> : vector<8x256xf32>
    %115 = tpu.matmul %114, %107, %cst_74 {dimension_numbers = #tpu.dot_dimension_numbers<[1], [0], [0], [1], [0, 0, 1, 1], [], []>} : vector<8x128xbf16>, vector<128x256xbf16>, vector<8x256xf32> -> vector<8x256xf32>
    %116 = vector.broadcast %109 : vector<1x256xf32> to vector<8x256xf32>
    %117 = arith.addf %115, %116 : vector<8x256xf32>
    %cst_75 = arith.constant 5.000000e-01 : f32
    %118 = vector.broadcast %cst_75 : f32 to vector<8x256xf32>
    %119 = arith.mulf %118, %117 : vector<8x256xf32>
    %cst_76 = arith.constant 0.707106769 : f32
    %120 = vector.broadcast %cst_76 : f32 to vector<8x256xf32>
    %121 = arith.mulf %117, %120 : vector<8x256xf32>
    %122 = math.erf %121 : vector<8x256xf32>
    %cst_77 = arith.constant 1.000000e+00 : f32
    %123 = vector.broadcast %cst_77 : f32 to vector<8x256xf32>
    %124 = arith.addf %123, %122 : vector<8x256xf32>
    %125 = arith.mulf %119, %124 : vector<8x256xf32>
    %126 = arith.truncf %125 : vector<8x256xf32> to vector<8x256xbf16>
    %cst_78 = arith.constant dense<0.000000e+00> : vector<8x128xf32>
    %127 = tpu.matmul %126, %111, %cst_78 {dimension_numbers = #tpu.dot_dimension_numbers<[1], [0], [0], [1], [0, 0, 1, 1], [], []>} : vector<8x256xbf16>, vector<256x128xbf16>, vector<8x128xf32> -> vector<8x128xf32>
    %128 = vector.broadcast %113 : vector<1x128xf32> to vector<8x128xf32>
    %129 = arith.addf %127, %128 : vector<8x128xf32>
    %130 = arith.addf %129, %105 : vector<8x128xf32>
    %c0_79 = arith.constant 0 : index
    %c0_80 = arith.constant 0 : index
    %131 = vector.load %arg10[%c0_79, %c0_80] : memref<1x128xf32, #tpu.memory_space<vmem>>, vector<1x128xf32>
    %c0_81 = arith.constant 0 : index
    %c0_82 = arith.constant 0 : index
    %132 = vector.load %arg11[%c0_81, %c0_82] : memref<1x128xf32, #tpu.memory_space<vmem>>, vector<1x128xf32>
    %cst_83 = arith.constant dense<0.000000e+00> : vector<8xf32>
    %133 = vector.multi_reduction <add>, %130, %cst_83 [1] : vector<8x128xf32> to vector<8xf32>
    %134 = vector.shape_cast %133 : vector<8xf32> to vector<8x1xf32>
    %cst_84 = arith.constant 1.280000e+02 : f32
    %135 = vector.broadcast %cst_84 : f32 to vector<8x1xf32>
    %136 = arith.divf %134, %135 : vector<8x1xf32>
    %137 = vector.broadcast %136 : vector<8x1xf32> to vector<8x128xf32>
    %138 = arith.subf %130, %137 : vector<8x128xf32>
    %139 = arith.mulf %138, %138 : vector<8x128xf32>
    %cst_85 = arith.constant dense<0.000000e+00> : vector<8xf32>
    %140 = vector.multi_reduction <add>, %139, %cst_85 [1] : vector<8x128xf32> to vector<8xf32>
    %141 = vector.shape_cast %140 : vector<8xf32> to vector<8x1xf32>
    %cst_86 = arith.constant 1.280000e+02 : f32
    %142 = vector.broadcast %cst_86 : f32 to vector<8x1xf32>
    %143 = arith.divf %141, %142 : vector<8x1xf32>
    %144 = vector.broadcast %136 : vector<8x1xf32> to vector<8x128xf32>
    %145 = arith.subf %130, %144 : vector<8x128xf32>
    %cst_87 = arith.constant 9.99999974E-6 : f32
    %146 = vector.broadcast %cst_87 : f32 to vector<8x1xf32>
    %147 = arith.addf %143, %146 : vector<8x1xf32>
    %148 = math.rsqrt %147 : vector<8x1xf32>
    %149 = vector.broadcast %148 : vector<8x1xf32> to vector<8x128xf32>
    %150 = arith.mulf %145, %149 : vector<8x128xf32>
    %151 = vector.broadcast %131 : vector<1x128xf32> to vector<8x128xf32>
    %152 = arith.mulf %150, %151 : vector<8x128xf32>
    %153 = vector.broadcast %132 : vector<1x128xf32> to vector<8x128xf32>
    %154 = arith.addf %152, %153 : vector<8x128xf32>
    %c0_88 = arith.constant 0 : index
    %c0_89 = arith.constant 0 : index
    %155 = vector.load %arg12[%c0_88, %c0_89] : memref<128x128xbf16, #tpu.memory_space<vmem>>, vector<128x128xbf16>
    %156 = arith.truncf %154 : vector<8x128xf32> to vector<8x128xbf16>
    %cst_90 = arith.constant dense<0.000000e+00> : vector<8x128xf32>
    %157 = tpu.matmul %156, %155, %cst_90 {dimension_numbers = #tpu.dot_dimension_numbers<[1], [0], [0], [1], [0, 0, 1, 1], [], []>} : vector<8x128xbf16>, vector<128x128xbf16>, vector<8x128xf32> -> vector<8x128xf32>
    %c0_91 = arith.constant 0 : index
    %c0_92 = arith.constant 0 : index
    %158 = vector.load %arg13[%c0_91, %c0_92] : memref<1x128xf32, #tpu.memory_space<vmem>>, vector<1x128xf32>
    %159 = vector.broadcast %158 : vector<1x128xf32> to vector<8x128xf32>
    %160 = arith.addf %157, %159 : vector<8x128xf32>
    %c0_93 = arith.constant 0 : index
    %c0_94 = arith.constant 0 : index
    %161 = vector.load %arg14[%c0_93, %c0_94] : memref<8x128xf32, #tpu.memory_space<vmem>>, vector<8x128xf32>
    tpu.vector_store %arg14[%c0_93, %c0_94], %160 {strides = array<i32>} : memref<8x128xf32, #tpu.memory_space<vmem>>, vector<8x128xf32>,
    return
  }
  func.func @transform_0(%arg0: i32) -> (i32, i32) {
    %c0_i32 = arith.constant 0 : i32
    %c0_i32_0 = arith.constant 0 : i32
    return %arg0, %c0_i32 : i32, i32
  }
  func.func @transform_1(%arg0: i32) -> (i32, i32) {
    %c0_i32 = arith.constant 0 : i32
    %c0_i32_0 = arith.constant 0 : i32
    %c0_i32_1 = arith.constant 0 : i32
    return %c0_i32, %c0_i32_0 : i32, i32
  }
  func.func @transform_2(%arg0: i32) -> (i32, i32) {
    %c0_i32 = arith.constant 0 : i32
    %c0_i32_0 = arith.constant 0 : i32
    %c0_i32_1 = arith.constant 0 : i32
    return %c0_i32, %c0_i32_0 : i32, i32
  }
  func.func @transform_3(%arg0: i32) -> (i32, i32) {
    %c0_i32 = arith.constant 0 : i32
    %c0_i32_0 = arith.constant 0 : i32
    %c0_i32_1 = arith.constant 0 : i32
    return %c0_i32, %c0_i32_0 : i32, i32
  }
  func.func @transform_4(%arg0: i32) -> (i32, i32) {
    %c0_i32 = arith.constant 0 : i32
    %c0_i32_0 = arith.constant 0 : i32
    %c0_i32_1 = arith.constant 0 : i32
    return %c0_i32, %c0_i32_0 : i32, i32
  }
  func.func @transform_5(%arg0: i32) -> (i32, i32, i32) {
    %c0_i32 = arith.constant 0 : i32
    %c0_i32_0 = arith.constant 0 : i32
    %c0_i32_1 = arith.constant 0 : i32
    %c0_i32_2 = arith.constant 0 : i32
    return %c0_i32, %c0_i32_0, %c0_i32_1 : i32, i32, i32
  }
  func.func @transform_6(%arg0: i32) -> (i32, i32, i32) {
    %c0_i32 = arith.constant 0 : i32
    %c0_i32_0 = arith.constant 0 : i32
    %c0_i32_1 = arith.constant 0 : i32
    %c0_i32_2 = arith.constant 0 : i32
    return %c0_i32, %c0_i32_0, %c0_i32_1 : i32, i32, i32
  }
  func.func @transform_7(%arg0: i32) -> (i32, i32, i32) {
    %c0_i32 = arith.constant 0 : i32
    %c0_i32_0 = arith.constant 0 : i32
    %c0_i32_1 = arith.constant 0 : i32
    %c0_i32_2 = arith.constant 0 : i32
    return %c0_i32, %c0_i32_0, %c0_i32_1 : i32, i32, i32
  }
  func.func @transform_8(%arg0: i32) -> (i32, i32, i32) {
    %c0_i32 = arith.constant 0 : i32
    %c0_i32_0 = arith.constant 0 : i32
    %c0_i32_1 = arith.constant 0 : i32
    %c0_i32_2 = arith.constant 0 : i32
    return %c0_i32, %c0_i32_0, %c0_i32_1 : i32, i32, i32
  }
  func.func @transform_9(%arg0: i32) -> (i32, i32) {
    %c0_i32 = arith.constant 0 : i32
    %c0_i32_0 = arith.constant 0 : i32
    %c0_i32_1 = arith.constant 0 : i32
    return %c0_i32, %c0_i32_0 : i32, i32
  }
  func.func @transform_10(%arg0: i32) -> (i32, i32) {
    %c0_i32 = arith.constant 0 : i32
    %c0_i32_0 = arith.constant 0 : i32
    %c0_i32_1 = arith.constant 0 : i32
    return %c0_i32, %c0_i32_0 : i32, i32
  }
  func.func @transform_11(%arg0: i32) -> (i32, i32) {
    %c0_i32 = arith.constant 0 : i32
    %c0_i32_0 = arith.constant 0 : i32
    %c0_i32_1 = arith.constant 0 : i32
    return %c0_i32, %c0_i32_0 : i32, i32
  }
  func.func @transform_12(%arg0: i32) -> (i32, i32) {
    %c0_i32 = arith.constant 0 : i32
    %c0_i32_0 = arith.constant 0 : i32
    %c0_i32_1 = arith.constant 0 : i32
    return %c0_i32, %c0_i32_0 : i32, i32
  }
  func.func @transform_13(%arg0: i32) -> (i32, i32) {
    %c0_i32 = arith.constant 0 : i32
    %c0_i32_0 = arith.constant 0 : i32
    return %arg0, %c0_i32 : i32, i32
  }
}

</mosaic_0001>

<bundles_post_ra>
// kernel: tpu_custom_call.1
= control target key start
LH: loop header
LB: loop body
LE: loop exit
PB: predicated region body
PF: predicated region fallthrough
CT: control target
= control target key end

     0   :  { %18 = vsyncpa [#allocation3], 0  ;;  %s3243_s0 = inlined_call_operand.hbm [shape: f32[8,128], index: 0, kind: input, shape index: {}]   ;;  %s3244_s1 = inlined_call_operand.hbm [shape: bf16[128,128], index: 1, kind: input, shape index: {}]   ;;  %s3245_s2 = inlined_call_operand.vmem [shape: f32[1,128], index: 2, kind: input, shape index: {}]   ;;  %s3246_s3 = inlined_call_operand.vmem [shape: f32[1,128], index: 3, kind: input, shape index: {}]   ;;  %s3247_s4 = inlined_call_operand.vmem [shape: f32[1,128], index: 4, kind: input, shape index: {}]   ;;  %s3248_s5 = inlined_call_operand.hbm [shape: bf16[4,128,256], index: 5, kind: input, shape index: {}]   ;;  %s3249_s6 = inlined_call_operand.hbm [shape: f32[4,1,256], index: 6, kind: input, shape index: {}]   ;;  %s3250_s7 = inlined_call_operand.hbm [shape: bf16[4,256,128], index: 7, kind: input, shape index: {}]   ;;  %s3251_s8 = inlined_call_operand.vmem [shape: f32[4,1,128], index: 8, kind: input, shape index: {}]   ;;  %s3252_s9 = inlined_call_operand.vmem [shape: f32[1,128], index: 9, kind: input, shape index: {}]   ;;  %s3253_s10 = inlined_call_operand.vmem [shape: f32[1,128], index: 10, kind: input, shape index: {}]   ;;  %s3254_s11 = inlined_call_operand.hbm [shape: bf16[128,128], index: 11, kind: input, shape index: {}]   ;;  %s3255_s12 = inlined_call_operand.vmem [shape: f32[1,128], index: 12, kind: input, shape index: {}]   ;;  %s3256_s13 = inlined_call_operand.hbm [shape: f32[8,128], index: 13, kind: output, shape index: {}]  }
   0x1   :  { %19 = vsyncpa [#allocation6], 0 }
   0x2   :  { %20 = vsyncpa [#allocation9], 0 }
   0x3   :  { %21 = vsyncpa [#allocation12], 0  ;;  %s38_s27 = sshll.u32 %s3244_s1, 4  ;;  %s39_s27 = int_to_ptr.hbm [resolvable:$true] %s38_s27 }
   0x4   :  { %22 = vsyncpa [#allocation4], 0  ;;  %s2869_s28 = smov [#allocation5]   ;;  %s70_s15 = sshll.u32 %s3249_s6, 4  ;;  %s71_s15 = int_to_ptr.hbm [resolvable:$true] %s70_s15 }
   0x5   :  { %s40_s29 = sshll.u32 %s2869_s28, 4  ;;  %s2870_s16 = smov 64   ;;  %s41_s29 = int_to_ptr.vmem [resolvable:$true] %s40_s29 }
   0x6   :  { %s2871_s17 = smov 4   ;;  %s2872_s18 = smov [#allocation8]  }
   0x7   :  { %46 = dma.hbm_to_vmem [thread:$0]  %s39_s27, 1024, %s41_s29, [#allocation6], %s2870_s16, %s2870_s16, %s2871_s17  }
   0x8   :  { %s72_s19 = sshll.u32 %s2872_s18, 4  ;;  %s2873_s1 = smov 32   ;;  %s73_s19 = int_to_ptr.vmem [resolvable:$true] %s72_s19 }
   0x9   :  { %s2874_s20 = smov 2   ;;  %s28_s23 = sshll.u32 %s3243_s0, 4  ;;  %s29_s23 = int_to_ptr.hbm [resolvable:$true] %s28_s23 }
   0xa   :  { %78 = dma.hbm_to_vmem [thread:$0]  %s71_s15, 128, %s73_s19, [#allocation9], %s2873_s1, %s2873_s1, %s2874_s20  }
   0xb   :  { %s2875_s24 = smov [#allocation2]   ;;  %s57_s28 = sshll.u32 %s3248_s5, 4  ;;  %s58_s28 = int_to_ptr.hbm [resolvable:$true] %s57_s28 }
   0xc   :  { %s30_s6 = sshll.u32 %s2875_s24, 4  ;;  %s2876_s27 = smov [#allocation7]   ;;  %s31_s6 = int_to_ptr.vmem [resolvable:$true] %s30_s6 }
   0xd   :  { %33 = dma.hbm_to_vmem [thread:$0]  %s29_s23, 128, %s31_s6, [#allocation3]  }
   0xe   :  { %s59_s29 = sshll.u32 %s2876_s27, 4  ;;  %s2877_s30 = smov 128   ;;  %s60_s29 = int_to_ptr.vmem [resolvable:$true] %s59_s29 }
   0xf   :  { %s2878_s14 = smov 8   ;;  %s83_s0 = sshll.u32 %s3250_s7, 4  ;;  %s84_s0 = int_to_ptr.hbm [resolvable:$true] %s83_s0 }
  0x10   :  { %65 = dma.hbm_to_vmem [thread:$0]  %s58_s28, 8192, %s60_s29, [#allocation6], %s2877_s30, %s2877_s30, %s2878_s14  }
  0x11   :  { %s2879_s19 = smov [#allocation10]   ;;  %s102_s5 = sshll.u32 %s3254_s11, 4  ;;  %s103_s5 = int_to_ptr.hbm [resolvable:$true] %s102_s5 }
  0x12   :  { %s85_s1 = sshll.u32 %s2879_s19, 4  ;;  %s2880_s22 = smov [#allocation11]   ;;  %s86_s1 = int_to_ptr.vmem [resolvable:$true] %s85_s1 }
  0x13   :  { %91 = dma.hbm_to_vmem [thread:$0]  %s84_s0, 8192, %s86_s1, [#allocation9], %s2870_s16, %s2870_s16, %s2871_s17  }
  0x14   :  { %s104_s23 = sshll.u32 %s2880_s22, 4  ;;  %s105_s23 = int_to_ptr.vmem [resolvable:$true] %s104_s23 }
  0x15   :  { %110 = dma.hbm_to_vmem [thread:$0]  %s103_s5, 1024, %s105_s23, [#allocation12], %s2870_s16, %s2870_s16, %s2871_s17  }
  0x16   :  { %2859 = dma.done.wait [#allocation3], 128  }
  0x17   :  { %2860 = vsyncadd [#allocation3], 4294967168 }
  0x18   :  { %2861 = dma.done.wait [#allocation6], 9216  }
  0x19   :  { %2862 = vsyncadd [#allocation6], 4294958080 }
  0x1a   :  { %2863 = dma.done.wait [#allocation9], 8320  }
  0x1b   :  { %2864 = vsyncadd [#allocation9], 4294958976 }
  0x1c   :  { %2865 = dma.done.wait [#allocation12], 1024  }
  0x1d   :  { %2866 = vsyncadd [#allocation12], 4294966272  ;;  %v2508_v0 = vld [vmem:[#allocation5 + $0x38] sm:$0xff]  ;;  %v2507_v1 = vld [vmem:[#allocation5 + $0x30] sm:$0xff]  ;;  %v2881_v14 = vmov 128.0   ;;  %s2882_s19 = smov [#allocation13]  }
  0x1e   :  { %207 = vmatpush.bf16.msra.mxu0 %v2508_v0  ;;  %v2506_v2 = vld [vmem:[#allocation5 + $0x28] sm:$0xff]  ;;  %v2505_v3 = vld [vmem:[#allocation5 + $0x20] sm:$0xff]  ;;  %v2504_v4 = vld [vmem:[#allocation5 + $0x18] sm:$0xff]  ;;  %2669 = vrcp.f32 %v2881_v14  ;;  %s1899_s1 = sshll.u32 %s2882_s19, 4  ;;  %s1900_s1 = int_to_ptr.vmem [resolvable:$true] %s1899_s1 }
  0x1f   :  { %v2503_v5 = vld [vmem:[#allocation5 + $0x10] sm:$0xff]  ;;  %v2502_v6 = vld [vmem:[#allocation5 + $0x8] sm:$0xff]  ;;  %v2501_v7 = vld [vmem:[#allocation5] sm:$0xff] }
  0x20   :  { %v137_v8 = vld [vmem:[#allocation2] sm:$0xff]  ;;  %v2004_v15 = vld [vmem:[#allocation7 + $0x70] sm:$0xf]  ;;  %v2523_v17 = vld [vmem:[#allocation7 + $0x74] sm:$0xf] }
  0x21   :  { %v154_v9 = vpack.c.bf16 %v137_v8, %v137_v8  ;;  %v2659_v10 = vld [vmem:[%s3245_s2] ss:$0 sm:$0xff]  ;;  %v2006_v19 = vld [vmem:[#allocation7 + $0x78] sm:$0xf0]  ;;  %v1996_v31 = vld [vmem:[#allocation7 + $0x60] sm:$0xf] }
  0x22   :  { %208 = vmatpush.bf16.msra.mxu0 %v2507_v1  ;;  %v2524_v16 = vld [vmem:[#allocation7 + $0x74] sm:$0xf0]  ;;  %v2009_v20 = vor.u32 %v2523_v17, %v2006_v19  ;;  %v2522_v32 = vld [vmem:[#allocation7 + $0x64] sm:$0xf0]  ;;  %v2521_v33 = vld [vmem:[#allocation7 + $0x64] sm:$0xf] }
  0x23   :  { %v2005_v18 = vor.u32 %v2524_v16, %v2004_v15  ;;  %v1997_v34 = vor.u32 %v2522_v32, %v1996_v31  ;;  %v1998_v35 = vld [vmem:[#allocation7 + $0x68] sm:$0xf0]  ;;  %v1988_v37 = vld [vmem:[#allocation7 + $0x50] sm:$0xf]  ;;  %v2520_v38 = vld [vmem:[#allocation7 + $0x54] sm:$0xf0] }
  0x24   :  { %v2670_v21 = vpop.eup %2669  ;;  %406 = vmatpush.bf16.msra.mxu2 %v2009_v20  ;;  %v2001_v36 = vor.u32 %v2521_v33, %v1998_v35  ;;  %v2519_v39 = vld [vmem:[#allocation7 + $0x54] sm:$0xf]  ;;  %v1989_v40 = vor.u32 %v2520_v38, %v1988_v37  ;;  %v1990_v41 = vld [vmem:[#allocation7 + $0x58] sm:$0xf0]  ;;  %v1980_v43 = vld [vmem:[#allocation7 + $0x40] sm:$0xf] }
  0x25   :  { %393 = vmatpush.bf16.msra.mxu1 %v2005_v18  ;;  %v225_v22 = vmul.f32 128.0, %v2670_v21  ;;  %vm229_vm0 = vweird.f32 %v2670_v21  ;;  %v1993_v42 = vor.u32 %v2519_v39, %v1990_v41  ;;  %v2518_v44 = vld [vmem:[#allocation7 + $0x44] sm:$0xf0]  ;;  %v2517_v45 = vld [vmem:[#allocation7 + $0x44] sm:$0xf]  ;;  %v2530_v32 = vld [vmem:[#allocation10 + $0x28] sm:$0xff] }
  0x26   :  { %209 = vmatpush.bf16.msra.mxu0 %v2506_v2  ;;  %v1981_v46 = vor.u32 %v2518_v44, %v1980_v43  ;;  %v1982_v47 = vld [vmem:[#allocation7 + $0x48] sm:$0xf0]  ;;  %v1972_v49 = vld [vmem:[#allocation7 + $0x30] sm:$0xf]  ;;  %v2516_v50 = vld [vmem:[#allocation7 + $0x34] sm:$0xf0] }
  0x27   :  { %v226_v23 = vsub.f32 1.0, %v225_v22  ;;  %v1985_v48 = vor.u32 %v2517_v45, %v1982_v47  ;;  %v2515_v51 = vld [vmem:[#allocation7 + $0x34] sm:$0xf]  ;;  %v1973_v52 = vor.u32 %v2516_v50, %v1972_v49  ;;  %v1974_v53 = vld [vmem:[#allocation7 + $0x38] sm:$0xf0]  ;;  %v2540_v31 = vld [vmem:[#allocation10 + $0x78] sm:$0xff] }
  0x28   :  { %407 = vmatpush.bf16.msra.mxu2 %v2001_v36  ;;  %v1977_v54 = vor.u32 %v2515_v51, %v1974_v53  ;;  %v1964_v55 = vld [vmem:[#allocation7 + $0x20] sm:$0xf]  ;;  %v2514_v56 = vld [vmem:[#allocation7 + $0x24] sm:$0xf0]  ;;  %v2513_v57 = vld [vmem:[#allocation7 + $0x24] sm:$0xf] }
  0x29   :  { %v227_v24 = vmul.f32 %v2670_v21, %v226_v23  ;;  %394 = vmatpush.bf16.msra.mxu1 %v1997_v34  ;;  %v1965_v58 = vor.u32 %v2514_v56, %v1964_v55  ;;  %v1966_v59 = vld [vmem:[#allocation7 + $0x28] sm:$0xf0]  ;;  %v1956_v61 = vld [vmem:[#allocation7 + $0x10] sm:$0xf]  ;;  %v2512_v62 = vld [vmem:[#allocation7 + $0x14] sm:$0xf0] }
  0x2a   :  { %210 = vmatpush.bf16.msra.mxu0 %v2505_v3  ;;  %v1969_v60 = vor.u32 %v2513_v57, %v1966_v59  ;;  %v2511_v63 = vld [vmem:[#allocation7 + $0x14] sm:$0xf]  ;;  %v1957_v0 = vor.u32 %v2512_v62, %v1956_v61  ;;  %v1958_v1 = vld [vmem:[#allocation7 + $0x18] sm:$0xf0]  ;;  %v1948_v2 = vld [vmem:[#allocation7] sm:$0xf] }
  0x2b   :  { %v228_v25 = vadd.f32 %v2670_v21, %v227_v24  ;;  %v2510_v3 = vld [vmem:[#allocation7 + $0x4] sm:$0xf0]  ;;  %v2660_v18 = vld [vmem:[%s3246_s3] ss:$0 sm:$0xff]  ;;  %v2528_v44 = vld [vmem:[#allocation10 + $0x18] sm:$0xff] }
  0x2c   :  { %408 = vmatpush.bf16.msra.mxu2 %v1993_v42  ;;  %v2539_v34 = vld [vmem:[#allocation10 + $0x70] sm:$0xff]  ;;  %v2529_v37 = vld [vmem:[#allocation10 + $0x20] sm:$0xff]  ;;  %v2536_v56 = vld [vmem:[#allocation10 + $0x58] sm:$0xff] }
  0x2d   :  { %v2983_v26 = vsel %vm229_vm0, %v2670_v21, %v228_v25  ;;  %395 = vmatpush.bf16.msra.mxu1 %v1989_v40  ;;  %v2661_v21 = vld [vmem:[%s3247_s4] ss:$0 sm:$0xff]  ;;  %v2532_v25 = vld [vmem:[#allocation10 + $0x38] sm:$0xff]  ;;  %v2538_v40 = vld [vmem:[#allocation10 + $0x68] sm:$0xff] }
  0x2e   :  { %211 = vmatpush.bf16.msra.mxu0 %v2504_v4  ;;  %v1961_v4 = vor.u32 %v2511_v63, %v1958_v1  ;;  %608 = vmatpush.bf16.msra.mxu3 %v2532_v25  ;;  %v2537_v47 = vld [vmem:[#allocation10 + $0x60] sm:$0xff]  ;;  %v2527_v51 = vld [vmem:[#allocation10 + $0x10] sm:$0xff]  ;;  %v2526_v61 = vld [vmem:[#allocation10 + $0x8] sm:$0xff] }
  0x30   :  { %409 = vmatpush.bf16.msra.mxu2 %v1985_v48 }
  0x31   :  { %396 = vmatpush.bf16.msra.mxu1 %v1981_v46 }
  0x32   :  { %212 = vmatpush.bf16.msra.mxu0 %v2503_v5  ;;  %v2509_v5 = vld [vmem:[#allocation7 + $0x4] sm:$0xf] }
  0x34   :  { %410 = vmatpush.bf16.msra.mxu2 %v1977_v54 }
  0x35   :  { %397 = vmatpush.bf16.msra.mxu1 %v1973_v52 }
  0x36   :  { %213 = vmatpush.bf16.msra.mxu0 %v2502_v6  ;;  %v1950_v6 = vld [vmem:[#allocation7 + $0x8] sm:$0xf0] }
  0x37   :  { %v1953_v8 = vor.u32 %v2509_v5, %v1950_v6  ;;  %v2525_v6 = vld [vmem:[#allocation10] sm:$0xff] }
  0x38   :  { %411 = vmatpush.bf16.msra.mxu2 %v1969_v60 }
  0x39   :  { %398 = vmatpush.bf16.msra.mxu1 %v1965_v58 }
  0x3a   :  { %214 = vmatpush.bf16.msra.mxu0 %v2501_v7  ;;  %v1949_v7 = vor.u32 %v2510_v3, %v1948_v2  ;;  %v2535_v2 = vld [vmem:[#allocation10 + $0x50] sm:$0xff] }
  0x3c   :  { %412 = vmatpush.bf16.msra.mxu2 %v1961_v4 }
  0x3d   :  { %215 = vmatmul.bf16.vlgmr.msra.gmra.mxu0 %v154_v9  ;;  %399 = vmatpush.bf16.msra.mxu1 %v1957_v0 }
  0x3e   :  { %621 = vmatpush.bf16.msrb.mxu0 %v2540_v31  ;;  %v2555_v31 = vld [vmem:[#allocation7 + $0xf4] sm:$0xf] }
  0x40   :  { %413 = vmatpush.bf16.msra.mxu2 %v1953_v8 }
  0x41   :  { %400 = vmatpush.bf16.msra.mxu1 %v1949_v7  ;;  %v2534_v7 = vld [vmem:[#allocation10 + $0x48] sm:$0xff] }
  0x42   :  { %622 = vmatpush.bf16.msrb.mxu0 %v2539_v34 }
  0x46   :  { %623 = vmatpush.bf16.msrb.mxu0 %v2538_v40  ;;  %v2553_v40 = vld [vmem:[#allocation7 + $0xe4] sm:$0xf] }
  0x4a   :  { %624 = vmatpush.bf16.msrb.mxu0 %v2537_v47  ;;  %v2119_v47 = vld [vmem:[#allocation7 + $0xd0] sm:$0xf] }
  0x4e   :  { %625 = vmatpush.bf16.msrb.mxu0 %v2536_v56 }
  0x52   :  { %626 = vmatpush.bf16.msrb.mxu0 %v2535_v2 }
  0x56   :  { %627 = vmatpush.bf16.msrb.mxu0 %v2534_v7  ;;  %v2103_v7 = vld [vmem:[#allocation7 + $0xb0] sm:$0xf] }
  0xba   :  { %v216_v11 = vpop.f32.mrf.mxu0 }
  0xbb   :  { %v217_v12 = vadd.f32 %v2659_v10, %v216_v11 }
  0xbd   :  { %222 = vadd.xlane.f32.xlu0 %v217_v12 }
  0xc2   :  { %v218_v13 = vpop.f32.mrf.mxu0 }
 0x130   :  { %v223_v27 = vpop.xlane.xlu0 %222 }
 0x131   :  { %v231_v28 = vmul.f32 %v2983_v26, %v223_v27  ;;  %v273_v27 = vld [vmem:[#allocation8] sm:$0x3] }
 0x132   :  { %v310_v36 = vperm.slane %v273_v27, 1 }
 0x133   :  { %v2986_v29 = vsub.f32 %v217_v12, %v231_v28  ;;  %v2531_v28 = vld [vmem:[#allocation10 + $0x30] sm:$0xff] }
 0x134   :  { %609 = vmatpush.bf16.msra.mxu3 %v2531_v28 }
 0x135   :  { %v233_v30 = vmul.f32 %v2986_v29, %v2986_v29 }
 0x137   :  { %234 = vadd.xlane.f32.xlu0 %v233_v30  ;;  %v309_v30 = vperm.slane %v273_v27, 0  ;;  %v2135_v27 = vld [vmem:[#allocation7 + $0xf0] sm:$0xf] }
 0x138   :  { %610 = vmatpush.bf16.msra.mxu3 %v2530_v32 }
 0x13c   :  { %611 = vmatpush.bf16.msra.mxu3 %v2529_v37  ;;  %v2127_v37 = vld [vmem:[#allocation7 + $0xe0] sm:$0xf] }
 0x140   :  { %612 = vmatpush.bf16.msra.mxu3 %v2528_v44 }
 0x144   :  { %613 = vmatpush.bf16.msra.mxu3 %v2527_v51 }
 0x148   :  { %614 = vmatpush.bf16.msra.mxu3 %v2526_v61  ;;  %v2549_v61 = vld [vmem:[#allocation7 + $0xc4] sm:$0xf] }
 0x14c   :  { %615 = vmatpush.bf16.msra.mxu3 %v2525_v6 }
 0x1aa   :  { %v235_v9 = vpop.xlane.xlu0 %234 }
 0x1ab   :  { %v236_v10 = vmul.f32 %v235_v9, %v2983_v26 }
 0x1ad   :  { %v237_v11 = vadd.f32 1e-05, %v236_v10 }
 0x1af   :  { %2671 = vrsqrt.f32 %v237_v11  ;;  %vm244_vm2 = vweird.f32 %v237_v11 }
 0x1b5   :  { %v2672_v12 = vpop.eup %2671 }
 0x1b6   :  { %v239_v13 = vmul.f32 %v2672_v12, %v237_v11  ;;  %vm245_vm1 = vweird.f32 %v2672_v12 }
 0x1b7   :  { %vm246_vm3 = vmor %vm244_vm2, %vm245_vm1 }
 0x1b8   :  { %v240_v14 = vmul.f32 %v2672_v12, %v239_v13 }
 0x1ba   :  { %v241_v15 = vmul.f32 0.5, %v240_v14 }
 0x1bc   :  { %v242_v16 = vsub.f32 1.5, %v241_v15 }
 0x1be   :  { %v243_v17 = vmul.f32 %v2672_v12, %v242_v16 }
 0x1c0   :  { %v247_v19 = vsel %vm246_vm3, %v2672_v12, %v243_v17  ;;  %v2533_v17 = vld [vmem:[#allocation10 + $0x40] sm:$0xff] }
 0x1c1   :  { %v248_v20 = vmul.f32 %v247_v19, %v2986_v29  ;;  %628 = vmatpush.bf16.msrb.mxu0 %v2533_v17 }
 0x1c3   :  { %v252_v22 = vmul.f32 %v2660_v18, %v248_v20 }
 0x1c5   :  { %v2998_v23 = vadd.f32 %v2661_v21, %v252_v22 }
 0x1c7   :  { %v307_v24 = vpack.c.bf16 %v2998_v23, %v2998_v23 }
 0x1c9   :  { %401 = vmatmul.bf16.vlgmr.msra.gmra.mxu1 %v307_v24  ;;  %414 = vmatmul.bf16.vlgmr.msra.gmra.mxu2 %v307_v24 }
 0x246   :  { %v402_v29 = vpop.f32.mrf.mxu1 }
 0x247   :  { %v3002_v33 = vadd.f32 %v402_v29, %v309_v30  ;;  %v2556_v30 = vld [vmem:[#allocation7 + $0xf4] sm:$0xf0]  ;;  %v2137_v29 = vld [vmem:[#allocation7 + $0xf8] sm:$0xf0] }
 0x248   :  { %v2136_v34 = vor.u32 %v2556_v30, %v2135_v27  ;;  %v2097_v27 = vld [vmem:[#allocation7 + $0xa8] sm:$0xf0] }
 0x249   :  { %v3005_v35 = vmul.f32 0.70710677, %v3002_v33 }
 0x24a   :  { %775 = vmatpush.bf16.msrb.mxu1 %v2136_v34 }
 0x24b   :  { %v423_v38 = vmul.f32 %v3005_v35, %v3005_v35 }
 0x24c   :  { %v415_v39 = vpop.f32.mrf.mxu2 }
 0x24d   :  { %v3009_v41 = vmin.f32 %v423_v38, 16.0  ;;  %v3011_v42 = vadd.f32 %v415_v39, %v310_v36  ;;  %v2140_v36 = vor.u32 %v2555_v31, %v2137_v29  ;;  %v2554_v38 = vld [vmem:[#allocation7 + $0xe4] sm:$0xf0] }
 0x24e   :  { %v404_v43 = vpop.f32.mrf.mxu1  ;;  %v2128_v44 = vor.u32 %v2554_v38, %v2127_v37  ;;  %v419_v37 = vmul.f32 0.5, %v3002_v33  ;;  %v2089_v33 = vld [vmem:[#allocation7 + $0x98] sm:$0xf0] }
 0x24f   :  { %v425_v45 = vmul.f32 2.1237322e-06, %v3009_v41  ;;  %v3015_v46 = vmul.f32 0.70710677, %v3011_v42  ;;  %v436_v48 = vmul.f32 3.8918573e-05, %v3009_v41  ;;  %788 = vmatpush.bf16.msrb.mxu2 %v2140_v36 }
 0x250   :  { %776 = vmatpush.bf16.msrb.mxu1 %v2128_v44 }
 0x251   :  { %v426_v49 = vadd.f32 0.00028619796, %v425_v45  ;;  %v463_v50 = vmul.f32 %v3015_v46, %v3015_v46  ;;  %v437_v52 = vadd.f32 0.001143296, %v436_v48  ;;  %v2129_v45 = vld [vmem:[#allocation7 + $0xe8] sm:$0xf0] }
 0x252   :  { %v2552_v48 = vld [vmem:[#allocation7 + $0xd4] sm:$0xf0] }
 0x253   :  { %v427_v53 = vmul.f32 %v426_v49, %v3009_v41  ;;  %v3021_v54 = vmin.f32 %v463_v50, 16.0  ;;  %v438_v57 = vmul.f32 %v437_v52, %v3009_v41  ;;  %v2551_v49 = vld [vmem:[#allocation7 + $0xd4] sm:$0xf]  ;;  %v2121_v50 = vld [vmem:[#allocation7 + $0xd8] sm:$0xf0] }
 0x254   :  { %v417_v55 = vpop.f32.mrf.mxu2 }
 0x255   :  { %v428_v58 = vadd.f32 0.0036580483, %v427_v53  ;;  %v465_v59 = vmul.f32 2.1237322e-06, %v3021_v54  ;;  %v476_v60 = vmul.f32 3.8918573e-05, %v3021_v54  ;;  %v2132_v53 = vor.u32 %v2553_v40, %v2129_v45 }
 0x256   :  { %v439_v62 = vadd.f32 0.014752088, %v438_v57  ;;  %v2120_v57 = vor.u32 %v2552_v48, %v2119_v47 }
 0x257   :  { %v466_v63 = vadd.f32 0.00028619796, %v465_v59  ;;  %v477_v0 = vadd.f32 0.001143296, %v476_v60  ;;  %v429_v1 = vmul.f32 %v428_v58, %v3009_v41  ;;  %789 = vmatpush.bf16.msrb.mxu2 %v2132_v53  ;;  %v2111_v58 = vld [vmem:[#allocation7 + $0xc0] sm:$0xf] }
 0x258   :  { %v440_v3 = vmul.f32 %v439_v62, %v3009_v41  ;;  %v2550_v59 = vld [vmem:[#allocation7 + $0xc4] sm:$0xf0]  ;;  %v2113_v62 = vld [vmem:[#allocation7 + $0xc8] sm:$0xf0]  ;;  %777 = vmatpush.bf16.msrb.mxu1 %v2120_v57 }
 0x259   :  { %v467_v4 = vmul.f32 %v466_v63, %v3021_v54  ;;  %v478_v5 = vmul.f32 %v477_v0, %v3021_v54  ;;  %v430_v11 = vadd.f32 0.05243302, %v429_v1  ;;  %v2116_v6 = vor.u32 %v2549_v61, %v2113_v62  ;;  %v2542_v57 = vld [vmem:[#allocation7 + $0x84] sm:$0xf0] }
 0x25a   :  { %v441_v8 = vadd.f32 0.112945676, %v440_v3 }
 0x25b   :  { %v468_v9 = vadd.f32 0.0036580483, %v467_v4  ;;  %v479_v10 = vadd.f32 0.014752088, %v478_v5  ;;  %v431_v18 = vmul.f32 %v430_v11, %v3009_v41  ;;  %v2112_v5 = vor.u32 %v2550_v59, %v2111_v58  ;;  %v2105_v11 = vld [vmem:[#allocation7 + $0xb8] sm:$0xf0] }
 0x25c   :  { %v442_v12 = vmul.f32 %v441_v8, %v3009_v41  ;;  %v2548_v8 = vld [vmem:[#allocation7 + $0xb4] sm:$0xf0]  ;;  %v2081_v59 = vld [vmem:[#allocation7 + $0x88] sm:$0xf0] }
 0x25d   :  { %v480_v13 = vmul.f32 %v479_v10, %v3021_v54  ;;  %v469_v14 = vmul.f32 %v468_v9, %v3021_v54  ;;  %v432_v25 = vadd.f32 0.18741608, %v431_v18  ;;  %v2104_v18 = vor.u32 %v2548_v8, %v2103_v7  ;;  %778 = vmatpush.bf16.msrb.mxu1 %v2112_v5  ;;  %v2564_v5 = vld [vmem:[#allocation10 + $0xb8] sm:$0xff]  ;;  %v2563_v8 = vld [vmem:[#allocation10 + $0xb0] sm:$0xff] }
 0x25e   :  { %v443_v15 = vadd.f32 0.4994258, %v442_v12  ;;  %990 = vmatpush.bf16.msrb.mxu3 %v2564_v5 }
 0x25f   :  { %v481_v16 = vadd.f32 0.112945676, %v480_v13  ;;  %v470_v21 = vadd.f32 0.05243302, %v469_v14  ;;  %v433_v43 = vmul.f32 %v432_v25, %v3009_v41  ;;  %v2545_v25 = vld [vmem:[#allocation7 + $0xa4] sm:$0xf] }
 0x260   :  { %v444_v19 = vmul.f32 %v443_v15, %v3009_v41  ;;  %v2124_v41 = vor.u32 %v2551_v49, %v2121_v50  ;;  %v2100_v36 = vor.u32 %v2545_v25, %v2097_v27  ;;  %v2087_v50 = vld [vmem:[#allocation7 + $0x90] sm:$0xf] }
 0x261   :  { %v482_v20 = vmul.f32 %v481_v16, %v3021_v54  ;;  %v471_v32 = vmul.f32 %v470_v21, %v3021_v54  ;;  %v434_v56 = vadd.f32 1.1283791, %v433_v43  ;;  %v2095_v21 = vld [vmem:[#allocation7 + $0xa0] sm:$0xf]  ;;  %779 = vmatpush.bf16.msrb.mxu1 %v2104_v18 }
 0x262   :  { %v3036_v22 = vadd.f32 1.0, %v444_v19  ;;  %790 = vmatpush.bf16.msrb.mxu2 %v2124_v41  ;;  %v2541_v41 = vld [vmem:[#allocation7 + $0x84] sm:$0xf]  ;;  %991 = vmatpush.bf16.msrb.mxu3 %v2563_v8 }
 0x263   :  { %v483_v24 = vadd.f32 0.4994258, %v482_v20  ;;  %v472_v52 = vadd.f32 0.18741608, %v471_v32  ;;  %v435_v9 = vmul.f32 %v434_v56, %v3005_v35  ;;  %v2079_v56 = vld [vmem:[#allocation7 + $0x80] sm:$0xf] }
 0x264   :  { %2673 = vrcp.f32 %v3036_v22  ;;  %v455_v0 = vand.u32 2147483647, %v3036_v22  ;;  %v457_v1 = vand.u32 2147483648, %v3036_v22  ;;  %vm451_vm5 = vweird.f32 %v3036_v22 }
 0x265   :  { %v484_v28 = vmul.f32 %v483_v24, %v3021_v54  ;;  %v473_v63 = vmul.f32 %v472_v52, %v3021_v54  ;;  %v2547_v54 = vld [vmem:[#allocation7 + $0xb4] sm:$0xf]  ;;  %v2546_v24 = vld [vmem:[#allocation7 + $0xa4] sm:$0xf0]  ;;  %v2080_v58 = vor.u32 %v2542_v57, %v2079_v56 }
 0x266   :  { %vm456_vm7 = vcmp.eq.f32.partialorder %v455_v0, 8.507059e+37  ;;  %v458_v14 = vor.u32 1.1754944e-38, %v457_v1  ;;  %791 = vmatpush.bf16.msrb.mxu2 %v2116_v6  ;;  %v2108_v20 = vor.u32 %v2547_v54, %v2105_v11  ;;  %v2096_v34 = vor.u32 %v2546_v24, %v2095_v21  ;;  %v2543_v52 = vld [vmem:[#allocation7 + $0x94] sm:$0xf]  ;;  %v653_v6 = vld [vmem:[#allocation8 + $0x2] sm:$0x3] }
 0x267   :  { %v3041_v39 = vadd.f32 1.0, %v484_v28  ;;  %v474_v12 = vadd.f32 1.1283791, %v473_v63  ;;  %v691_v7 = vperm.slane %v653_v6, 0 }
 0x268   :  { %780 = vmatpush.bf16.msrb.mxu1 %v2096_v34 }
 0x269   :  { %2675 = vrcp.f32 %v3041_v39  ;;  %v495_v15 = vand.u32 2147483647, %v3041_v39  ;;  %v497_v16 = vand.u32 2147483648, %v3041_v39  ;;  %vm491_vm9 = vweird.f32 %v3041_v39 }
 0x26a   :  { %v2674_v51 = vpop.eup %2673  ;;  %v475_v30 = vmul.f32 %v474_v12, %v3015_v46  ;;  %792 = vmatpush.bf16.msrb.mxu2 %v2108_v20  ;;  %v420_v46 = vmul.f32 0.5, %v3011_v42  ;;  %v2662_v42 = vld [vmem:[%s3251_s8] ss:$0 sm:$0xff]  ;;  %v692_v12 = vperm.slane %v653_v6, 1  ;;  %v2266_v6 = vld [vmem:[#allocation7 + $0x170] sm:$0xf] }
 0x26b   :  { %v447_v55 = vmul.f32 %v2674_v51, %v3036_v22  ;;  %vm452_vm4 = vweird.f32 %v2674_v51  ;;  %v498_v31 = vor.u32 1.1754944e-38, %v497_v16  ;;  %vm496_vm11 = vcmp.eq.f32.partialorder %v495_v15, 8.507059e+37  ;;  %v2561_v15 = vld [vmem:[#allocation10 + $0xa0] sm:$0xff] }
 0x26c   :  { %vm453_vm6 = vmor %vm451_vm5, %vm452_vm4 }
 0x26d   :  { %v448_v60 = vsub.f32 1.0, %v447_v55  ;;  %v2092_v55 = vor.u32 %v2543_v52, %v2089_v33  ;;  %v2557_v33 = vld [vmem:[#allocation10 + $0x80] sm:$0xff] }
 0x26e   :  { %793 = vmatpush.bf16.msrb.mxu2 %v2100_v36 }
 0x26f   :  { %v2676_v2 = vpop.eup %2675  ;;  %v449_v3 = vmul.f32 %v2674_v51, %v448_v60  ;;  %v2084_v60 = vor.u32 %v2541_v41, %v2081_v59 }
 0x270   :  { %v487_v4 = vmul.f32 %v2676_v2, %v3041_v39  ;;  %vm492_vm8 = vweird.f32 %v2676_v2 }
 0x271   :  { %v450_v10 = vadd.f32 %v2674_v51, %v449_v3  ;;  %vm493_vm10 = vmor %vm491_vm9, %vm492_vm8 }
 0x272   :  { %v488_v13 = vsub.f32 1.0, %v487_v4  ;;  %794 = vmatpush.bf16.msrb.mxu2 %v2092_v55 }
 0x273   :  { %v454_v17 = vsel %vm453_vm6, %v2674_v51, %v450_v10  ;;  %v2544_v51 = vld [vmem:[#allocation7 + $0x94] sm:$0xf0] }
 0x274   :  { %v489_v19 = vmul.f32 %v2676_v2, %v488_v13  ;;  %v459_v35 = vsel %vm456_vm7, %v458_v14, %v454_v17  ;;  %v2088_v53 = vor.u32 %v2544_v51, %v2087_v50  ;;  %v2571_v13 = vld [vmem:[#allocation10 + $0xf0] sm:$0xff] }
 0x275   :  { %v460_v22 = vmul.f32 %v459_v35, %v435_v9  ;;  %v2572_v9 = vld [vmem:[#allocation10 + $0xf8] sm:$0xff]  ;;  %v2567_v50 = vld [vmem:[#allocation10 + $0xd0] sm:$0xff] }
 0x276   :  { %v490_v28 = vadd.f32 %v2676_v2, %v489_v19  ;;  %781 = vmatpush.bf16.msrb.mxu1 %v2088_v53  ;;  %795 = vmatpush.bf16.msrb.mxu2 %v2084_v60  ;;  %v2570_v19 = vld [vmem:[#allocation10 + $0xe8] sm:$0xff] }
 0x277   :  { %v2010_v29 = vclamps-f32 %v460_v22, 1.0  ;;  %1003 = vmatpush.bf16.msra.mxu0 %v2572_v9  ;;  %v2560_v22 = vld [vmem:[#allocation10 + $0x98] sm:$0xff] }
 0x278   :  { %v494_v32 = vsel %vm493_vm10, %v2676_v2, %v490_v28  ;;  %v2569_v28 = vld [vmem:[#allocation10 + $0xe0] sm:$0xff] }
 0x279   :  { %v499_v38 = vsel %vm496_vm11, %v498_v31, %v494_v32  ;;  %v503_v40 = vadd.f32 1.0, %v2010_v29  ;;  %v2559_v32 = vld [vmem:[#allocation10 + $0x90] sm:$0xff] }
 0x27a   :  { %v500_v43 = vmul.f32 %v499_v38, %v475_v30  ;;  %782 = vmatpush.bf16.msrb.mxu1 %v2080_v58  ;;  %v2566_v58 = vld [vmem:[#allocation10 + $0xc8] sm:$0xff] }
 0x27b   :  { %v505_v44 = vmul.f32 %v503_v40, %v419_v37  ;;  %1004 = vmatpush.bf16.msra.mxu0 %v2571_v13  ;;  %v2568_v40 = vld [vmem:[#allocation10 + $0xd8] sm:$0xff] }
 0x27c   :  { %v2011_v45 = vclamps-f32 %v500_v43, 1.0  ;;  %v2258_v13 = vld [vmem:[#allocation7 + $0x160] sm:$0xf] }
 0x27d   :  { %v507_v39 = vpack.c.bf16 %v505_v44, %v505_v44 }
 0x27e   :  { %v504_v47 = vadd.f32 1.0, %v2011_v45 }
 0x27f   :  { %616 = vmatmul.bf16.vlgmr.msra.gmra.mxu3 %v507_v39  ;;  %1005 = vmatpush.bf16.msra.mxu0 %v2570_v19  ;;  %v2558_v39 = vld [vmem:[#allocation10 + $0x88] sm:$0xff] }
 0x280   :  { %v506_v48 = vmul.f32 %v504_v47, %v420_v46 }
 0x282   :  { %v508_v49 = vpack.c.bf16 %v506_v48, %v506_v48 }
 0x283   :  { %1006 = vmatpush.bf16.msra.mxu0 %v2569_v28  ;;  %v2584_v28 = vld [vmem:[#allocation7 + $0x154] sm:$0xf0] }
 0x284   :  { %629 = vmatmul.bf16.vlgmr.msrb.gmra.mxu0 %v508_v49 }
 0x287   :  { %1007 = vmatpush.bf16.msra.mxu0 %v2568_v40 }
 0x28b   :  { %1008 = vmatpush.bf16.msra.mxu0 %v2567_v50 }
 0x28f   :  { %1009 = vmatpush.bf16.msra.mxu0 %v2566_v58  ;;  %v2579_v58 = vld [vmem:[#allocation7 + $0x134] sm:$0xf] }
 0x301   :  { %v630_v61 = vpop.f32.mrf.mxu0 }
 0x302   :  { %v617_v62 = vpop.f32.mrf.mxu3 }
 0x303   :  { %v618_v63 = vadd.f32 %v2662_v42, %v617_v62 }
 0x305   :  { %v631_v0 = vadd.f32 %v630_v61, %v618_v63 }
 0x307   :  { %v3063_v1 = vadd.f32 %v631_v0, %v2998_v23  ;;  %v2562_v23 = vld [vmem:[#allocation10 + $0xa8] sm:$0xff]  ;;  %v2565_v0 = vld [vmem:[#allocation10 + $0xc0] sm:$0xff] }
 0x308   :  { %992 = vmatpush.bf16.msrb.mxu3 %v2562_v23  ;;  %1010 = vmatpush.bf16.msra.mxu0 %v2565_v0  ;;  %v2268_v23 = vld [vmem:[#allocation7 + $0x178] sm:$0xf0] }
 0x309   :  { %v632_v2 = vpop.f32.mrf.mxu0  ;;  %v689_v3 = vpack.c.bf16 %v3063_v1, %v3063_v1 }
 0x30a   :  { %v619_v4 = vpop.f32.mrf.mxu3 }
 0x30b   :  { %783 = vmatmul.bf16.vlgmr.msrb.gmra.mxu1 %v689_v3  ;;  %796 = vmatmul.bf16.vlgmr.msrb.gmra.mxu2 %v689_v3 }
 0x30c   :  { %993 = vmatpush.bf16.msrb.mxu3 %v2561_v15  ;;  %v2585_v15 = vld [vmem:[#allocation7 + $0x164] sm:$0xf] }
 0x310   :  { %994 = vmatpush.bf16.msrb.mxu3 %v2560_v22 }
 0x314   :  { %995 = vmatpush.bf16.msrb.mxu3 %v2559_v32 }
 0x318   :  { %996 = vmatpush.bf16.msrb.mxu3 %v2558_v39 }
 0x31c   :  { %997 = vmatpush.bf16.msrb.mxu3 %v2557_v33 }
 0x388   :  { %v784_v10 = vpop.f32.mrf.mxu1 }
 0x389   :  { %v3067_v54 = vadd.f32 %v784_v10, %v691_v7  ;;  %v2588_v7 = vld [vmem:[#allocation7 + $0x174] sm:$0xf0]  ;;  %v2587_v10 = vld [vmem:[#allocation7 + $0x174] sm:$0xf] }
 0x38a   :  { %v2267_v9 = vor.u32 %v2588_v7, %v2266_v6  ;;  %v2577_v6 = vld [vmem:[#allocation7 + $0x124] sm:$0xf]  ;;  %v2228_v7 = vld [vmem:[#allocation7 + $0x128] sm:$0xf0] }
 0x38b   :  { %v3070_v11 = vmul.f32 0.70710677, %v3067_v54 }
 0x38c   :  { %1157 = vmatpush.bf16.msra.mxu1 %v2267_v9  ;;  %v801_v9 = vmul.f32 0.5, %v3067_v54 }
 0x38d   :  { %v805_v14 = vmul.f32 %v3070_v11, %v3070_v11 }
 0x38e   :  { %v797_v16 = vpop.f32.mrf.mxu2 }
 0x38f   :  { %v3074_v17 = vmin.f32 %v805_v14, 16.0  ;;  %v3076_v18 = vadd.f32 %v797_v16, %v692_v12  ;;  %v2271_v12 = vor.u32 %v2587_v10, %v2268_v23  ;;  %v2586_v14 = vld [vmem:[#allocation7 + $0x164] sm:$0xf0] }
 0x390   :  { %v786_v35 = vpop.f32.mrf.mxu1 }
 0x391   :  { %v807_v20 = vmul.f32 2.1237322e-06, %v3074_v17  ;;  %v818_v21 = vmul.f32 3.8918573e-05, %v3074_v17  ;;  %v3081_v24 = vmul.f32 0.70710677, %v3076_v18  ;;  %1170 = vmatpush.bf16.msra.mxu2 %v2271_v12 }
 0x392   :  { %v802_v54 = vmul.f32 0.5, %v3076_v18  ;;  %v2663_v18 = vld [vmem:[%s3251_s8 + $0x1] ss:$0 sm:$0xff] }
 0x393   :  { %v808_v25 = vadd.f32 0.00028619796, %v807_v20  ;;  %v819_v27 = vadd.f32 0.001143296, %v818_v21  ;;  %v845_v30 = vmul.f32 %v3081_v24, %v3081_v24  ;;  %v2259_v20 = vor.u32 %v2586_v14, %v2258_v13  ;;  %v2260_v21 = vld [vmem:[#allocation7 + $0x168] sm:$0xf0] }
 0x395   :  { %v809_v31 = vmul.f32 %v808_v25, %v3074_v17  ;;  %v820_v29 = vmul.f32 %v819_v27, %v3074_v17  ;;  %v3087_v34 = vmin.f32 %v845_v30, 16.0  ;;  %v2263_v25 = vor.u32 %v2585_v15, %v2260_v21  ;;  %v2250_v27 = vld [vmem:[#allocation7 + $0x150] sm:$0xf]  ;;  %1158 = vmatpush.bf16.msra.mxu1 %v2259_v20 }
 0x396   :  { %v799_v36 = vpop.f32.mrf.mxu2  ;;  %v2231_v15 = vor.u32 %v2577_v6, %v2228_v7  ;;  %v2601_v7 = vld [vmem:[#allocation10 + $0x160] sm:$0xff] }
 0x397   :  { %v810_v37 = vadd.f32 0.0036580483, %v809_v31  ;;  %v821_v38 = vadd.f32 0.014752088, %v820_v29  ;;  %v847_v43 = vmul.f32 2.1237322e-06, %v3087_v34  ;;  %1171 = vmatpush.bf16.msra.mxu2 %v2263_v25 }
 0x398   :  { %v858_v44 = vmul.f32 3.8918573e-05, %v3087_v34  ;;  %v2583_v31 = vld [vmem:[#allocation7 + $0x154] sm:$0xf]  ;;  %v2252_v29 = vld [vmem:[#allocation7 + $0x158] sm:$0xf0] }
 0x399   :  { %v822_v45 = vmul.f32 %v821_v38, %v3074_v17  ;;  %v811_v46 = vmul.f32 %v810_v37, %v3074_v17  ;;  %v848_v47 = vadd.f32 0.00028619796, %v847_v43  ;;  %v2251_v37 = vor.u32 %v2584_v28, %v2250_v27  ;;  %v2242_v43 = vld [vmem:[#allocation7 + $0x140] sm:$0xf]  ;;  %v2218_v28 = vld [vmem:[#allocation7 + $0x110] sm:$0xf] }
 0x39a   :  { %v859_v48 = vadd.f32 0.001143296, %v858_v44  ;;  %v2255_v40 = vor.u32 %v2583_v31, %v2252_v29  ;;  %v2582_v44 = vld [vmem:[#allocation7 + $0x144] sm:$0xf0]  ;;  %v2220_v29 = vld [vmem:[#allocation7 + $0x118] sm:$0xf0] }
 0x39b   :  { %v823_v49 = vadd.f32 0.112945676, %v822_v45  ;;  %v849_v51 = vmul.f32 %v848_v47, %v3087_v34  ;;  %v812_v55 = vadd.f32 0.05243302, %v811_v46  ;;  %v2581_v46 = vld [vmem:[#allocation7 + $0x144] sm:$0xf]  ;;  %1159 = vmatpush.bf16.msra.mxu1 %v2251_v37 }
 0x39c   :  { %v860_v52 = vmul.f32 %v859_v48, %v3087_v34  ;;  %v2244_v47 = vld [vmem:[#allocation7 + $0x148] sm:$0xf0]  ;;  %1172 = vmatpush.bf16.msra.mxu2 %v2255_v40  ;;  %v2573_v37 = vld [vmem:[#allocation7 + $0x104] sm:$0xf] }
 0x39d   :  { %v824_v53 = vmul.f32 %v823_v49, %v3074_v17  ;;  %v850_v56 = vadd.f32 0.0036580483, %v849_v51  ;;  %v813_v42 = vmul.f32 %v812_v55, %v3074_v17  ;;  %v2243_v51 = vor.u32 %v2582_v44, %v2242_v43  ;;  %v2234_v55 = vld [vmem:[#allocation7 + $0x130] sm:$0xf]  ;;  %v2212_v40 = vld [vmem:[#allocation7 + $0x108] sm:$0xf0] }
 0x39e   :  { %v861_v57 = vadd.f32 0.014752088, %v860_v52  ;;  %v2247_v33 = vor.u32 %v2581_v46, %v2244_v47  ;;  %v2215_v43 = vor.u32 %v2573_v37, %v2212_v40 }
 0x39f   :  { %v825_v41 = vadd.f32 0.4994258, %v824_v53  ;;  %v851_v61 = vmul.f32 %v850_v56, %v3087_v34  ;;  %v814_v3 = vadd.f32 0.18741608, %v813_v42  ;;  %v2580_v56 = vld [vmem:[#allocation7 + $0x134] sm:$0xf0]  ;;  %1160 = vmatpush.bf16.msra.mxu1 %v2243_v51 }
 0x3a0   :  { %v862_v59 = vmul.f32 %v861_v57, %v3087_v34  ;;  %1173 = vmatpush.bf16.msra.mxu2 %v2247_v33  ;;  %v2596_v51 = vld [vmem:[#allocation10 + $0x138] sm:$0xff]  ;;  %v2595_v33 = vld [vmem:[#allocation10 + $0x130] sm:$0xff] }
 0x3a1   :  { %v826_v60 = vmul.f32 %v825_v41, %v3074_v17  ;;  %v852_v4 = vadd.f32 0.05243302, %v851_v61  ;;  %v815_v16 = vmul.f32 %v814_v3, %v3074_v17  ;;  %1372 = vmatpush.bf16.msra.mxu3 %v2596_v51 }
 0x3a2   :  { %v863_v62 = vadd.f32 0.112945676, %v862_v59  ;;  %v2236_v59 = vld [vmem:[#allocation7 + $0x138] sm:$0xf0] }
 0x3a3   :  { %v3100_v63 = vadd.f32 1.0, %v826_v60  ;;  %v853_v19 = vmul.f32 %v852_v4, %v3087_v34  ;;  %v816_v32 = vadd.f32 1.1283791, %v815_v16  ;;  %v2239_v3 = vor.u32 %v2579_v58, %v2236_v59  ;;  %v2226_v4 = vld [vmem:[#allocation7 + $0x120] sm:$0xf]  ;;  %v2603_v59 = vld [vmem:[#allocation10 + $0x170] sm:$0xff] }
 0x3a4   :  { %v864_v2 = vmul.f32 %v863_v62, %v3087_v34 }
 0x3a5   :  { %2677 = vrcp.f32 %v3100_v63  ;;  %v854_v36 = vadd.f32 0.18741608, %v853_v19  ;;  %v839_v38 = vand.u32 2147483648, %v3100_v63  ;;  %v837_v39 = vand.u32 2147483647, %v3100_v63  ;;  %1174 = vmatpush.bf16.msra.mxu2 %v2239_v3  ;;  %1373 = vmatpush.bf16.msra.mxu3 %v2595_v33 }
 0x3a6   :  { %v865_v5 = vadd.f32 0.4994258, %v864_v2  ;;  %vm833_vm13 = vweird.f32 %v3100_v63  ;;  %v817_v57 = vmul.f32 %v816_v32, %v3070_v11  ;;  %v2578_v11 = vld [vmem:[#allocation7 + $0x124] sm:$0xf0] }
 0x3a7   :  { %v855_v50 = vmul.f32 %v854_v36, %v3087_v34  ;;  %v840_v52 = vor.u32 1.1754944e-38, %v839_v38  ;;  %vm838_vm15 = vcmp.eq.f32.partialorder %v837_v39, 8.507059e+37  ;;  %v2227_v12 = vor.u32 %v2578_v11, %v2226_v4  ;;  %v2574_v36 = vld [vmem:[#allocation7 + $0x104] sm:$0xf0]  ;;  %v2592_v4 = vld [vmem:[#allocation10 + $0x118] sm:$0xff] }
 0x3a8   :  { %v866_v8 = vmul.f32 %v865_v5, %v3087_v34 }
 0x3a9   :  { %v856_v34 = vadd.f32 1.1283791, %v855_v50  ;;  %1175 = vmatpush.bf16.msra.mxu2 %v2231_v15 }
 0x3aa   :  { %v3107_v35 = vadd.f32 1.0, %v866_v8 }
 0x3ab   :  { %v2678_v22 = vpop.eup %2677  ;;  %v857_v13 = vmul.f32 %v856_v34, %v3081_v24  ;;  %v2576_v24 = vld [vmem:[#allocation7 + $0x114] sm:$0xf0] }
 0x3ac   :  { %v829_v30 = vmul.f32 %v2678_v22, %v3100_v63  ;;  %2679 = vrcp.f32 %v3107_v35  ;;  %vm834_vm12 = vweird.f32 %v2678_v22  ;;  %v879_v62 = vand.u32 2147483648, %v3107_v35 }
 0x3ad   :  { %vm835_vm14 = vmor %vm833_vm13, %vm834_vm12  ;;  %v2235_v63 = vor.u32 %v2580_v56, %v2234_v55  ;;  %v877_v2 = vand.u32 2147483647, %v3107_v35  ;;  %vm873_vm1 = vweird.f32 %v3107_v35  ;;  %v2219_v31 = vor.u32 %v2576_v24, %v2218_v28  ;;  %v2604_v55 = vld [vmem:[#allocation10 + $0x178] sm:$0xff]  ;;  %v2599_v28 = vld [vmem:[#allocation10 + $0x150] sm:$0xff] }
 0x3ae   :  { %v830_v17 = vsub.f32 1.0, %v829_v30  ;;  %v880_v10 = vor.u32 1.1754944e-38, %v879_v62  ;;  %v2575_v30 = vld [vmem:[#allocation7 + $0x114] sm:$0xf]  ;;  %1385 = vmatpush.bf16.msrb.mxu0 %v2604_v55 }
 0x3af   :  { %1161 = vmatpush.bf16.msra.mxu1 %v2235_v63  ;;  %vm878_vm3 = vcmp.eq.f32.partialorder %v877_v2, 8.507059e+37  ;;  %v2223_v32 = vor.u32 %v2575_v30, %v2220_v29  ;;  %v2602_v63 = vld [vmem:[#allocation10 + $0x168] sm:$0xff]  ;;  %v2589_v29 = vld [vmem:[#allocation10 + $0x100] sm:$0xff] }
 0x3b0   :  { %v831_v45 = vmul.f32 %v2678_v22, %v830_v17  ;;  %v2210_v17 = vld [vmem:[#allocation7 + $0x100] sm:$0xf] }
 0x3b1   :  { %1176 = vmatpush.bf16.msra.mxu2 %v2223_v32  ;;  %v2211_v38 = vor.u32 %v2574_v36, %v2210_v17 }
 0x3b2   :  { %v2680_v48 = vpop.eup %2679  ;;  %v832_v49 = vadd.f32 %v2678_v22, %v831_v45  ;;  %1386 = vmatpush.bf16.msrb.mxu0 %v2603_v59  ;;  %v2389_v59 = vld [vmem:[#allocation7 + $0x1e0] sm:$0xf] }
 0x3b3   :  { %v869_v53 = vmul.f32 %v2680_v48, %v3107_v35  ;;  %vm874_vm0 = vweird.f32 %v2680_v48  ;;  %1162 = vmatpush.bf16.msra.mxu1 %v2227_v12 }
 0x3b4   :  { %v836_v41 = vsel %vm835_vm14, %v2678_v22, %v832_v49  ;;  %vm875_vm2 = vmor %vm873_vm1, %vm874_vm0 }
 0x3b5   :  { %v841_v60 = vsel %vm838_vm15, %v840_v52, %v836_v41  ;;  %v870_v42 = vsub.f32 1.0, %v869_v53  ;;  %1177 = vmatpush.bf16.msra.mxu2 %v2215_v43  ;;  %v1035_v52 = vld [vmem:[#allocation8 + $0x4] sm:$0x3] }
 0x3b6   :  { %v842_v61 = vmul.f32 %v841_v60, %v817_v57  ;;  %v1073_v53 = vperm.slane %v1035_v52, 0  ;;  %v1074_v58 = vperm.slane %v1035_v52, 1  ;;  %1387 = vmatpush.bf16.msrb.mxu0 %v2602_v63  ;;  %v2397_v52 = vld [vmem:[#allocation7 + $0x1f0] sm:$0xf] }
 0x3b7   :  { %v871_v0 = vmul.f32 %v2680_v48, %v870_v42  ;;  %1163 = vmatpush.bf16.msra.mxu1 %v2219_v31  ;;  %v2593_v42 = vld [vmem:[#allocation10 + $0x120] sm:$0xff] }
 0x3b8   :  { %v2141_v5 = vclamps-f32 %v842_v61, 1.0 }
 0x3b9   :  { %v872_v8 = vadd.f32 %v2680_v48, %v871_v0 }
 0x3ba   :  { %v885_v23 = vadd.f32 1.0, %v2141_v5  ;;  %1388 = vmatpush.bf16.msrb.mxu0 %v2601_v7  ;;  %v2616_v7 = vld [vmem:[#allocation7 + $0x1d4] sm:$0xf0] }
 0x3bb   :  { %v876_v14 = vsel %vm875_vm2, %v2680_v48, %v872_v8  ;;  %1164 = vmatpush.bf16.msra.mxu1 %v2211_v38  ;;  %v2598_v38 = vld [vmem:[#allocation10 + $0x148] sm:$0xff] }
 0x3bc   :  { %v881_v16 = vsel %vm878_vm3, %v880_v10, %v876_v14  ;;  %v887_v19 = vmul.f32 %v885_v23, %v801_v9  ;;  %v2591_v23 = vld [vmem:[#allocation10 + $0x110] sm:$0xff] }
 0x3bd   :  { %v882_v20 = vmul.f32 %v881_v16, %v857_v13  ;;  %v2600_v16 = vld [vmem:[#allocation10 + $0x158] sm:$0xff] }
 0x3be   :  { %v889_v21 = vpack.c.bf16 %v887_v19, %v887_v19  ;;  %1389 = vmatpush.bf16.msrb.mxu0 %v2600_v16 }
 0x3bf   :  { %v2142_v22 = vclamps-f32 %v882_v20, 1.0 }
 0x3c0   :  { %998 = vmatmul.bf16.vlgmr.msrb.gmra.mxu3 %v889_v21 }
 0x3c1   :  { %v886_v35 = vadd.f32 1.0, %v2142_v22  ;;  %v2590_v22 = vld [vmem:[#allocation10 + $0x108] sm:$0xff] }
 0x3c2   :  { %1390 = vmatpush.bf16.msrb.mxu0 %v2599_v28 }
 0x3c3   :  { %v888_v25 = vmul.f32 %v886_v35, %v802_v54 }
 0x3c5   :  { %v890_v27 = vpack.c.bf16 %v888_v25, %v888_v25 }
 0x3c6   :  { %1391 = vmatpush.bf16.msrb.mxu0 %v2598_v38  ;;  %v2611_v38 = vld [vmem:[#allocation7 + $0x1b4] sm:$0xf] }
 0x3c7   :  { %1011 = vmatmul.bf16.vlgmr.msra.gmra.mxu0 %v890_v27 }
 0x443   :  { %v999_v44 = vpop.f32.mrf.mxu3 }
 0x444   :  { %v1000_v45 = vadd.f32 %v2663_v18, %v999_v44  ;;  %v1012_v39 = vpop.f32.mrf.mxu0 }
 0x446   :  { %v1013_v46 = vadd.f32 %v1012_v39, %v1000_v45 }
 0x448   :  { %v3127_v47 = vadd.f32 %v1013_v46, %v3063_v1  ;;  %v2594_v1 = vld [vmem:[#allocation10 + $0x128] sm:$0xff]  ;;  %v2597_v46 = vld [vmem:[#allocation10 + $0x140] sm:$0xff] }
 0x449   :  { %1374 = vmatpush.bf16.msra.mxu3 %v2594_v1  ;;  %1392 = vmatpush.bf16.msrb.mxu0 %v2597_v46  ;;  %v2399_v1 = vld [vmem:[#allocation7 + $0x1f8] sm:$0xf0] }
 0x44a   :  { %v1071_v48 = vpack.c.bf16 %v3127_v47, %v3127_v47 }
 0x44b   :  { %v1001_v49 = vpop.f32.mrf.mxu3 }
 0x44c   :  { %v1014_v50 = vpop.f32.mrf.mxu0  ;;  %1165 = vmatmul.bf16.vlgmr.msra.gmra.mxu1 %v1071_v48  ;;  %1178 = vmatmul.bf16.vlgmr.msra.gmra.mxu2 %v1071_v48 }
 0x44d   :  { %1375 = vmatpush.bf16.msra.mxu3 %v2593_v42  ;;  %v2617_v42 = vld [vmem:[#allocation7 + $0x1e4] sm:$0xf] }
 0x451   :  { %1376 = vmatpush.bf16.msra.mxu3 %v2592_v4 }
 0x455   :  { %1377 = vmatpush.bf16.msra.mxu3 %v2591_v23 }
 0x459   :  { %1378 = vmatpush.bf16.msra.mxu3 %v2590_v22 }
 0x45d   :  { %1379 = vmatpush.bf16.msra.mxu3 %v2589_v29 }
 0x4c9   :  { %v1166_v56 = vpop.f32.mrf.mxu1 }
 0x4ca   :  { %v3131_v57 = vadd.f32 %v1166_v56, %v1073_v53  ;;  %v2620_v53 = vld [vmem:[#allocation7 + $0x1f4] sm:$0xf0]  ;;  %v2619_v56 = vld [vmem:[#allocation7 + $0x1f4] sm:$0xf] }
 0x4cb   :  { %v2398_v55 = vor.u32 %v2620_v53, %v2397_v52  ;;  %v2609_v52 = vld [vmem:[#allocation7 + $0x1a4] sm:$0xf]  ;;  %v2359_v53 = vld [vmem:[#allocation7 + $0x1a8] sm:$0xf0] }
 0x4cc   :  { %v3134_v41 = vmul.f32 0.70710677, %v3131_v57 }
 0x4cd   :  { %1539 = vmatpush.bf16.msrb.mxu1 %v2398_v55  ;;  %v1183_v55 = vmul.f32 0.5, %v3131_v57 }
 0x4ce   :  { %v1187_v60 = vmul.f32 %v3134_v41, %v3134_v41 }
 0x4cf   :  { %v1179_v61 = vpop.f32.mrf.mxu2 }
 0x4d0   :  { %v3138_v34 = vmin.f32 %v1187_v60, 16.0  ;;  %v3140_v62 = vadd.f32 %v1179_v61, %v1074_v58  ;;  %v2402_v58 = vor.u32 %v2619_v56, %v2399_v1  ;;  %v2618_v60 = vld [vmem:[#allocation7 + $0x1e4] sm:$0xf0] }
 0x4d1   :  { %v1168_v0 = vpop.f32.mrf.mxu1 }
 0x4d2   :  { %v1189_v2 = vmul.f32 2.1237322e-06, %v3138_v34  ;;  %v1200_v3 = vmul.f32 3.8918573e-05, %v3138_v34  ;;  %v3145_v11 = vmul.f32 0.70710677, %v3140_v62  ;;  %1552 = vmatpush.bf16.msrb.mxu2 %v2402_v58 }
 0x4d3   :  { %v1184_v57 = vmul.f32 0.5, %v3140_v62  ;;  %v2664_v62 = vld [vmem:[%s3251_s8 + $0x2] ss:$0 sm:$0xff] }
 0x4d4   :  { %v1190_v5 = vadd.f32 0.00028619796, %v1189_v2  ;;  %v1201_v6 = vadd.f32 0.001143296, %v1200_v3  ;;  %v1227_v8 = vmul.f32 %v3145_v11, %v3145_v11  ;;  %v2390_v2 = vor.u32 %v2618_v60, %v2389_v59  ;;  %v2391_v3 = vld [vmem:[#allocation7 + $0x1e8] sm:$0xf0] }
 0x4d6   :  { %v1191_v9 = vmul.f32 %v1190_v5, %v3138_v34  ;;  %v1202_v10 = vmul.f32 %v1201_v6, %v3138_v34  ;;  %v3151_v12 = vmin.f32 %v1227_v8, 16.0  ;;  %v2394_v5 = vor.u32 %v2617_v42, %v2391_v3  ;;  %v2381_v6 = vld [vmem:[#allocation7 + $0x1d0] sm:$0xf]  ;;  %1540 = vmatpush.bf16.msrb.mxu1 %v2390_v2 }
 0x4d7   :  { %v1181_v13 = vpop.f32.mrf.mxu2  ;;  %v2362_v42 = vor.u32 %v2609_v52, %v2359_v53  ;;  %v2633_v53 = vld [vmem:[#allocation10 + $0x1e0] sm:$0xff] }
 0x4d8   :  { %v1192_v14 = vadd.f32 0.0036580483, %v1191_v9  ;;  %v1203_v15 = vadd.f32 0.014752088, %v1202_v10  ;;  %v1229_v19 = vmul.f32 2.1237322e-06, %v3151_v12  ;;  %1553 = vmatpush.bf16.msrb.mxu2 %v2394_v5 }
 0x4d9   :  { %v1240_v20 = vmul.f32 3.8918573e-05, %v3151_v12  ;;  %v2615_v9 = vld [vmem:[#allocation7 + $0x1d4] sm:$0xf]  ;;  %v2383_v10 = vld [vmem:[#allocation7 + $0x1d8] sm:$0xf0] }
 0x4da   :  { %v1204_v21 = vmul.f32 %v1203_v15, %v3138_v34  ;;  %v1193_v54 = vmul.f32 %v1192_v14, %v3138_v34  ;;  %v1230_v35 = vadd.f32 0.00028619796, %v1229_v19  ;;  %v2382_v14 = vor.u32 %v2616_v7, %v2381_v6  ;;  %v2373_v19 = vld [vmem:[#allocation7 + $0x1c0] sm:$0xf]  ;;  %v2349_v7 = vld [vmem:[#allocation7 + $0x190] sm:$0xf] }
 0x4db   :  { %v1241_v25 = vadd.f32 0.001143296, %v1240_v20  ;;  %v2386_v16 = vor.u32 %v2615_v9, %v2383_v10  ;;  %v2614_v20 = vld [vmem:[#allocation7 + $0x1c4] sm:$0xf0]  ;;  %v2351_v10 = vld [vmem:[#allocation7 + $0x198] sm:$0xf0] }
 0x4dc   :  { %v1205_v27 = vadd.f32 0.112945676, %v1204_v21  ;;  %v1231_v24 = vmul.f32 %v1230_v35, %v3151_v12  ;;  %v1194_v32 = vadd.f32 0.05243302, %v1193_v54  ;;  %v2613_v54 = vld [vmem:[#allocation7 + $0x1c4] sm:$0xf]  ;;  %1541 = vmatpush.bf16.msrb.mxu1 %v2382_v14 }
 0x4dd   :  { %v1242_v30 = vmul.f32 %v1241_v25, %v3151_v12  ;;  %v2375_v35 = vld [vmem:[#allocation7 + $0x1c8] sm:$0xf0]  ;;  %1554 = vmatpush.bf16.msrb.mxu2 %v2386_v16  ;;  %v2605_v14 = vld [vmem:[#allocation7 + $0x184] sm:$0xf] }
 0x4de   :  { %v1206_v31 = vmul.f32 %v1205_v27, %v3138_v34  ;;  %v1232_v17 = vadd.f32 0.0036580483, %v1231_v24  ;;  %v1195_v18 = vmul.f32 %v1194_v32, %v3138_v34  ;;  %v2374_v24 = vor.u32 %v2614_v20, %v2373_v19  ;;  %v2365_v32 = vld [vmem:[#allocation7 + $0x1b0] sm:$0xf]  ;;  %v2343_v16 = vld [vmem:[#allocation7 + $0x188] sm:$0xf0] }
 0x4df   :  { %v1243_v36 = vadd.f32 0.014752088, %v1242_v30  ;;  %v2378_v29 = vor.u32 %v2613_v54, %v2375_v35  ;;  %v2346_v19 = vor.u32 %v2605_v14, %v2343_v16  ;;  %v2630_v14 = vld [vmem:[#allocation10 + $0x1c8] sm:$0xff] }
 0x4e0   :  { %v1207_v37 = vadd.f32 0.4994258, %v1206_v31  ;;  %v1233_v44 = vmul.f32 %v1232_v17, %v3151_v12  ;;  %v1196_v49 = vadd.f32 0.18741608, %v1195_v18  ;;  %v2612_v17 = vld [vmem:[#allocation7 + $0x1b4] sm:$0xf0]  ;;  %1542 = vmatpush.bf16.msrb.mxu1 %v2374_v24 }
 0x4e1   :  { %v1244_v40 = vmul.f32 %v1243_v36, %v3151_v12  ;;  %1555 = vmatpush.bf16.msrb.mxu2 %v2378_v29  ;;  %v2628_v24 = vld [vmem:[#allocation10 + $0x1b8] sm:$0xff]  ;;  %v2627_v29 = vld [vmem:[#allocation10 + $0x1b0] sm:$0xff] }
 0x4e2   :  { %v1208_v43 = vmul.f32 %v1207_v37, %v3138_v34  ;;  %v1234_v50 = vadd.f32 0.05243302, %v1233_v44  ;;  %v1197_v61 = vmul.f32 %v1196_v49, %v3138_v34  ;;  %1754 = vmatpush.bf16.msrb.mxu3 %v2628_v24 }
 0x4e3   :  { %v1245_v45 = vadd.f32 0.112945676, %v1244_v40  ;;  %v2367_v40 = vld [vmem:[#allocation7 + $0x1b8] sm:$0xf0] }
 0x4e4   :  { %v3164_v39 = vadd.f32 1.0, %v1208_v43  ;;  %v1235_v63 = vmul.f32 %v1234_v50, %v3151_v12  ;;  %v1198_v23 = vadd.f32 1.1283791, %v1197_v61  ;;  %v2370_v49 = vor.u32 %v2611_v38, %v2367_v40  ;;  %v2357_v50 = vld [vmem:[#allocation7 + $0x1a0] sm:$0xf]  ;;  %v2635_v40 = vld [vmem:[#allocation10 + $0x1f0] sm:$0xff] }
 0x4e5   :  { %v1246_v48 = vmul.f32 %v1245_v45, %v3151_v12 }
 0x4e6   :  { %2681 = vrcp.f32 %v3164_v39  ;;  %v1236_v13 = vadd.f32 0.18741608, %v1235_v63  ;;  %v1221_v15 = vand.u32 2147483648, %v3164_v39  ;;  %v1219_v22 = vand.u32 2147483647, %v3164_v39  ;;  %1556 = vmatpush.bf16.msrb.mxu2 %v2370_v49  ;;  %1755 = vmatpush.bf16.msrb.mxu3 %v2627_v29 }
 0x4e7   :  { %v1247_v51 = vadd.f32 0.4994258, %v1246_v48  ;;  %vm1215_vm5 = vweird.f32 %v3164_v39  ;;  %v1199_v36 = vmul.f32 %v1198_v23, %v3134_v41  ;;  %v2610_v41 = vld [vmem:[#allocation7 + $0x1a4] sm:$0xf0] }
 0x4e8   :  { %v1237_v28 = vmul.f32 %v1236_v13, %v3151_v12  ;;  %v1222_v30 = vor.u32 1.1754944e-38, %v1221_v15  ;;  %vm1220_vm7 = vcmp.eq.f32.partialorder %v1219_v22, 8.507059e+37  ;;  %v2358_v58 = vor.u32 %v2610_v41, %v2357_v50  ;;  %v2606_v13 = vld [vmem:[#allocation7 + $0x184] sm:$0xf0]  ;;  %v2624_v50 = vld [vmem:[#allocation10 + $0x198] sm:$0xff] }
 0x4e9   :  { %v1248_v33 = vmul.f32 %v1247_v51, %v3151_v12 }
 0x4ea   :  { %v1238_v12 = vadd.f32 1.1283791, %v1237_v28  ;;  %1557 = vmatpush.bf16.msrb.mxu2 %v2362_v42  ;;  %v2632_v42 = vld [vmem:[#allocation10 + $0x1d8] sm:$0xff] }
 0x4eb   :  { %v3171_v0 = vadd.f32 1.0, %v1248_v33 }
 0x4ec   :  { %v2682_v4 = vpop.eup %2681  ;;  %v1239_v59 = vmul.f32 %v1238_v12, %v3145_v11  ;;  %v2608_v11 = vld [vmem:[#allocation7 + $0x194] sm:$0xf0] }
 0x4ed   :  { %v1211_v8 = vmul.f32 %v2682_v4, %v3164_v39  ;;  %2683 = vrcp.f32 %v3171_v0  ;;  %vm1216_vm4 = vweird.f32 %v2682_v4  ;;  %v1261_v45 = vand.u32 2147483648, %v3171_v0 }
 0x4ee   :  { %vm1217_vm6 = vmor %vm1215_vm5, %vm1216_vm4  ;;  %v2366_v39 = vor.u32 %v2612_v17, %v2365_v32  ;;  %v1259_v48 = vand.u32 2147483647, %v3171_v0  ;;  %vm1255_vm9 = vweird.f32 %v3171_v0  ;;  %v2350_v9 = vor.u32 %v2608_v11, %v2349_v7  ;;  %v2636_v32 = vld [vmem:[#allocation10 + $0x1f8] sm:$0xff] }
 0x4ef   :  { %v1212_v34 = vsub.f32 1.0, %v1211_v8  ;;  %v1262_v1 = vor.u32 1.1754944e-38, %v1261_v45  ;;  %v2607_v8 = vld [vmem:[#allocation7 + $0x194] sm:$0xf]  ;;  %1767 = vmatpush.bf16.msra.mxu0 %v2636_v32 }
 0x4f0   :  { %1543 = vmatpush.bf16.msrb.mxu1 %v2366_v39  ;;  %vm1260_vm11 = vcmp.eq.f32.partialorder %v1259_v48, 8.507059e+37  ;;  %v2354_v23 = vor.u32 %v2607_v8, %v2351_v10  ;;  %v2634_v39 = vld [vmem:[#allocation10 + $0x1e8] sm:$0xff]  ;;  %v2621_v10 = vld [vmem:[#allocation10 + $0x180] sm:$0xff] }
 0x4f1   :  { %v1213_v21 = vmul.f32 %v2682_v4, %v1212_v34  ;;  %v2341_v34 = vld [vmem:[#allocation7 + $0x180] sm:$0xf] }
 0x4f2   :  { %1558 = vmatpush.bf16.msrb.mxu2 %v2354_v23  ;;  %v2342_v15 = vor.u32 %v2606_v13, %v2341_v34 }
 0x4f3   :  { %v2684_v25 = vpop.eup %2683  ;;  %v1214_v27 = vadd.f32 %v2682_v4, %v1213_v21  ;;  %1768 = vmatpush.bf16.msra.mxu0 %v2635_v40 }
 0x4f4   :  { %v1251_v31 = vmul.f32 %v2684_v25, %v3171_v0  ;;  %vm1256_vm8 = vweird.f32 %v2684_v25  ;;  %1544 = vmatpush.bf16.msrb.mxu1 %v2358_v58 }
 0x4f5   :  { %v1218_v37 = vsel %vm1217_vm6, %v2682_v4, %v1214_v27  ;;  %vm1257_vm10 = vmor %vm1255_vm9, %vm1256_vm8 }
 0x4f6   :  { %v1223_v43 = vsel %vm1220_vm7, %v1222_v30, %v1218_v37  ;;  %v1252_v18 = vsub.f32 1.0, %v1251_v31  ;;  %1559 = vmatpush.bf16.msrb.mxu2 %v2346_v19  ;;  %v1417_v30 = vld [vmem:[#allocation8 + $0x6] sm:$0x3] }
 0x4f7   :  { %v1224_v44 = vmul.f32 %v1223_v43, %v1199_v36  ;;  %v1455_v31 = vperm.slane %v1417_v30, 0  ;;  %v1456_v38 = vperm.slane %v1417_v30, 1  ;;  %1769 = vmatpush.bf16.msra.mxu0 %v2634_v39 }
 0x4f8   :  { %v1253_v46 = vmul.f32 %v2684_v25, %v1252_v18  ;;  %1545 = vmatpush.bf16.msrb.mxu1 %v2350_v9  ;;  %v2625_v18 = vld [vmem:[#allocation10 + $0x1a0] sm:$0xff] }
 0x4f9   :  { %v2272_v51 = vclamps-f32 %v1224_v44, 1.0 }
 0x4fa   :  { %v1254_v33 = vadd.f32 %v2684_v25, %v1253_v46 }
 0x4fb   :  { %v1267_v56 = vadd.f32 1.0, %v2272_v51  ;;  %1770 = vmatpush.bf16.msra.mxu0 %v2633_v53 }
 0x4fc   :  { %v1258_v60 = vsel %vm1257_vm10, %v2684_v25, %v1254_v33  ;;  %1546 = vmatpush.bf16.msrb.mxu1 %v2342_v15 }
 0x4fd   :  { %v1269_v61 = vmul.f32 %v1267_v56, %v1183_v55  ;;  %v1263_v63 = vsel %vm1260_vm11, %v1262_v1, %v1258_v60  ;;  %v2623_v1 = vld [vmem:[#allocation10 + $0x190] sm:$0xff] }
 0x4fe   :  { %v1264_v2 = vmul.f32 %v1263_v63, %v1239_v59 }
 0x4ff   :  { %v1271_v3 = vpack.c.bf16 %v1269_v61, %v1269_v61  ;;  %1771 = vmatpush.bf16.msra.mxu0 %v2632_v42 }
 0x500   :  { %v2273_v4 = vclamps-f32 %v1264_v2, 1.0 }
 0x501   :  { %1380 = vmatmul.bf16.vlgmr.msra.gmra.mxu3 %v1271_v3 }
 0x502   :  { %v1268_v0 = vadd.f32 1.0, %v2273_v4  ;;  %v2622_v4 = vld [vmem:[#allocation10 + $0x188] sm:$0xff] }
 0x504   :  { %v1270_v5 = vmul.f32 %v1268_v0, %v1184_v57 }
 0x506   :  { %v1272_v6 = vpack.c.bf16 %v1270_v5, %v1270_v5 }
 0x508   :  { %1393 = vmatmul.bf16.vlgmr.msrb.gmra.mxu0 %v1272_v6  ;;  %v2631_v6 = vld [vmem:[#allocation10 + $0x1d0] sm:$0xff] }
 0x509   :  { %1772 = vmatpush.bf16.msra.mxu0 %v2631_v6 }
 0x50d   :  { %1773 = vmatpush.bf16.msra.mxu0 %v2630_v14 }
 0x584   :  { %v1381_v20 = vpop.f32.mrf.mxu3 }
 0x585   :  { %v1382_v21 = vadd.f32 %v2664_v62, %v1381_v20  ;;  %v1394_v22 = vpop.f32.mrf.mxu0 }
 0x587   :  { %v1395_v54 = vadd.f32 %v1394_v22, %v1382_v21  ;;  %v2629_v22 = vld [vmem:[#allocation10 + $0x1c0] sm:$0xff] }
 0x588   :  { %1774 = vmatpush.bf16.msra.mxu0 %v2629_v22  ;;  %v2642_v22 = vld [vmem:[#allocation11 + $0x28] sm:$0xff] }
 0x589   :  { %v3191_v35 = vadd.f32 %v1395_v54, %v3127_v47  ;;  %v2626_v47 = vld [vmem:[#allocation10 + $0x1a8] sm:$0xff] }
 0x58a   :  { %1756 = vmatpush.bf16.msrb.mxu3 %v2626_v47 }
 0x58b   :  { %v1453_v25 = vpack.c.bf16 %v3191_v35, %v3191_v35 }
 0x58c   :  { %v1383_v27 = vpop.f32.mrf.mxu3 }
 0x58d   :  { %v1396_v28 = vpop.f32.mrf.mxu0  ;;  %1547 = vmatmul.bf16.vlgmr.msrb.gmra.mxu1 %v1453_v25  ;;  %1560 = vmatmul.bf16.vlgmr.msrb.gmra.mxu2 %v1453_v25 }
 0x58e   :  { %1757 = vmatpush.bf16.msrb.mxu3 %v2625_v18 }
 0x592   :  { %1758 = vmatpush.bf16.msrb.mxu3 %v2624_v50 }
 0x596   :  { %1759 = vmatpush.bf16.msrb.mxu3 %v2623_v1 }
 0x59a   :  { %1760 = vmatpush.bf16.msrb.mxu3 %v2622_v4 }
 0x59e   :  { %1761 = vmatpush.bf16.msrb.mxu3 %v2621_v10 }
 0x60a   :  { %v1548_v17 = vpop.f32.mrf.mxu1 }
 0x60b   :  { %v3195_v36 = vadd.f32 %v1548_v17, %v1455_v31 }
 0x60d   :  { %v3198_v37 = vmul.f32 0.70710677, %v3195_v36 }
 0x60f   :  { %v1569_v43 = vmul.f32 %v3198_v37, %v3198_v37 }
 0x610   :  { %v1561_v44 = vpop.f32.mrf.mxu2 }
 0x611   :  { %v3202_v12 = vmin.f32 %v1569_v43, 16.0  ;;  %v3204_v45 = vadd.f32 %v1561_v44, %v1456_v38 }
 0x612   :  { %v1550_v46 = vpop.f32.mrf.mxu1 }
 0x613   :  { %v1571_v48 = vmul.f32 2.1237322e-06, %v3202_v12  ;;  %v1582_v49 = vmul.f32 3.8918573e-05, %v3202_v12  ;;  %v3209_v41 = vmul.f32 0.70710677, %v3204_v45 }
 0x615   :  { %v1572_v51 = vadd.f32 0.00028619796, %v1571_v48  ;;  %v1583_v52 = vadd.f32 0.001143296, %v1582_v49  ;;  %v1609_v33 = vmul.f32 %v3209_v41, %v3209_v41 }
 0x617   :  { %v1573_v55 = vmul.f32 %v1572_v51, %v3202_v12  ;;  %v1584_v56 = vmul.f32 %v1583_v52, %v3202_v12  ;;  %v1610_v58 = vmin.f32 %v1609_v33, 16.0 }
 0x618   :  { %v1563_v59 = vpop.f32.mrf.mxu2 }
 0x619   :  { %v1585_v60 = vadd.f32 0.014752088, %v1584_v56  ;;  %v1574_v61 = vadd.f32 0.0036580483, %v1573_v55  ;;  %v1611_v63 = vmul.f32 2.1237322e-06, %v1610_v58 }
 0x61a   :  { %v1622_v2 = vmul.f32 3.8918573e-05, %v1610_v58 }
 0x61b   :  { %v1586_v3 = vmul.f32 %v1585_v60, %v3202_v12  ;;  %v1612_v57 = vadd.f32 0.00028619796, %v1611_v63  ;;  %v1575_v7 = vmul.f32 %v1574_v61, %v3202_v12  ;;  %v1565_v63 = vmul.f32 0.5, %v3195_v36  ;;  %v2665_v36 = vld [vmem:[%s3251_s8 + $0x3] ss:$0 sm:$0xff] }
 0x61c   :  { %v1623_v0 = vadd.f32 0.001143296, %v1622_v2 }
 0x61d   :  { %v1587_v5 = vadd.f32 0.112945676, %v1586_v3  ;;  %v1613_v11 = vmul.f32 %v1612_v57, %v1610_v58  ;;  %v1576_v15 = vadd.f32 0.05243302, %v1575_v7  ;;  %v1566_v7 = vmul.f32 0.5, %v3204_v45 }
 0x61e   :  { %v1624_v8 = vmul.f32 %v1623_v0, %v1610_v58 }
 0x61f   :  { %v1588_v9 = vmul.f32 %v1587_v5, %v3202_v12  ;;  %v1614_v13 = vadd.f32 0.0036580483, %v1613_v11  ;;  %v1577_v54 = vmul.f32 %v1576_v15, %v3202_v12 }
 0x620   :  { %v1625_v23 = vadd.f32 0.014752088, %v1624_v8 }
 0x621   :  { %v1589_v34 = vadd.f32 0.4994258, %v1588_v9  ;;  %v1615_v21 = vmul.f32 %v1614_v13, %v1610_v58  ;;  %v1578_v24 = vadd.f32 0.18741608, %v1577_v54  ;;  %v2641_v54 = vld [vmem:[#allocation11 + $0x20] sm:$0xff] }
 0x622   :  { %v1626_v16 = vmul.f32 %v1625_v23, %v1610_v58 }
 0x623   :  { %v1590_v19 = vmul.f32 %v1589_v34, %v3202_v12  ;;  %v1616_v28 = vadd.f32 0.05243302, %v1615_v21  ;;  %v1579_v17 = vmul.f32 %v1578_v24, %v3202_v12  ;;  %v2643_v21 = vld [vmem:[#allocation11 + $0x30] sm:$0xff] }
 0x624   :  { %v1627_v62 = vadd.f32 0.112945676, %v1626_v16  ;;  %v2644_v16 = vld [vmem:[#allocation11 + $0x38] sm:$0xff] }
 0x625   :  { %v1591_v20 = vadd.f32 1.0, %v1590_v19  ;;  %v1617_v32 = vmul.f32 %v1616_v28, %v1610_v58  ;;  %v1580_v18 = vadd.f32 1.1283791, %v1579_v17  ;;  %1880 = vmatpush.bf16.msra.mxu1 %v2644_v16  ;;  %v2637_v28 = vld [vmem:[#allocation11] sm:$0xff] }
 0x626   :  { %v1628_v25 = vmul.f32 %v1627_v62, %v1610_v58 }
 0x627   :  { %2685 = vrcp.f32 %v1591_v20  ;;  %v1603_v40 = vand.u32 2147483648, %v1591_v20  ;;  %v1618_v43 = vadd.f32 0.18741608, %v1617_v32  ;;  %v1601_v39 = vand.u32 2147483647, %v1591_v20 }
 0x628   :  { %v1629_v27 = vadd.f32 0.4994258, %v1628_v25  ;;  %vm1597_vm13 = vweird.f32 %v1591_v20  ;;  %v1581_v52 = vmul.f32 %v1580_v18, %v3198_v37  ;;  %v2640_v25 = vld [vmem:[#allocation11 + $0x18] sm:$0xff] }
 0x629   :  { %v1604_v49 = vor.u32 1.1754944e-38, %v1603_v40  ;;  %v1619_v50 = vmul.f32 %v1618_v43, %v1610_v58  ;;  %vm1602_vm15 = vcmp.eq.f32.partialorder %v1601_v39, 8.507059e+37  ;;  %1881 = vmatpush.bf16.msra.mxu1 %v2643_v21  ;;  %v2666_v43 = vld [vmem:[%s3252_s9] ss:$0 sm:$0xff]  ;;  %s1901_s9 = sshll.u32 %s3256_s13, 4  ;;  %s1902_s9 = int_to_ptr.hbm [resolvable:$true] %s1901_s9 }
 0x62a   :  { %v1630_v30 = vmul.f32 %v1629_v27, %v1610_v58  ;;  %v2638_v27 = vld [vmem:[#allocation11 + $0x8] sm:$0xff] }
 0x62b   :  { %v1620_v1 = vadd.f32 1.1283791, %v1619_v50 }
 0x62c   :  { %v1631_v31 = vadd.f32 1.0, %v1630_v30 }
 0x62d   :  { %v2686_v29 = vpop.eup %2685  ;;  %v1621_v37 = vmul.f32 %v1620_v1, %v3209_v41  ;;  %1882 = vmatpush.bf16.msra.mxu1 %v2642_v22 }
 0x62e   :  { %v1593_v47 = vmul.f32 %v2686_v29, %v1591_v20  ;;  %2687 = vrcp.f32 %v1631_v31  ;;  %vm1598_vm12 = vweird.f32 %v2686_v29  ;;  %v1643_v56 = vand.u32 2147483648, %v1631_v31 }
 0x62f   :  { %vm1599_vm14 = vmor %vm1597_vm13, %vm1598_vm12  ;;  %v1641_v60 = vand.u32 2147483647, %v1631_v31  ;;  %vm1637_vm1 = vweird.f32 %v1631_v31 }
 0x630   :  { %v1594_v38 = vsub.f32 1.0, %v1593_v47  ;;  %v1644_v58 = vor.u32 1.1754944e-38, %v1643_v56 }
 0x631   :  { %vm1642_vm3 = vcmp.eq.f32.partialorder %v1641_v60, 8.507059e+37  ;;  %1883 = vmatpush.bf16.msra.mxu1 %v2641_v54 }
 0x632   :  { %v1595_v44 = vmul.f32 %v2686_v29, %v1594_v38 }
 0x634   :  { %v2688_v46 = vpop.eup %2687  ;;  %v1596_v48 = vadd.f32 %v2686_v29, %v1595_v44 }
 0x635   :  { %v1633_v51 = vmul.f32 %v2688_v46, %v1631_v31  ;;  %vm1638_vm0 = vweird.f32 %v2688_v46  ;;  %1884 = vmatpush.bf16.msra.mxu1 %v2640_v25 }
 0x636   :  { %v1600_v53 = vsel %vm1599_vm14, %v2686_v29, %v1596_v48  ;;  %vm1639_vm2 = vmor %vm1637_vm1, %vm1638_vm0 }
 0x637   :  { %v1605_v12 = vsel %vm1602_vm15, %v1604_v49, %v1600_v53  ;;  %v1634_v33 = vsub.f32 1.0, %v1633_v51  ;;  %v2668_v49 = vld [vmem:[%s3255_s12] ss:$0 sm:$0xff] }
 0x638   :  { %v1606_v55 = vmul.f32 %v1605_v12, %v1581_v52 }
 0x639   :  { %v1635_v59 = vmul.f32 %v2688_v46, %v1634_v33 }
 0x63a   :  { %v2403_v42 = vclamps-f32 %v1606_v55, 1.0 }
 0x63b   :  { %v1636_v61 = vadd.f32 %v2688_v46, %v1635_v59 }
 0x63c   :  { %v1649_v2 = vadd.f32 1.0, %v2403_v42 }
 0x63d   :  { %v1640_v3 = vsel %vm1639_vm2, %v2688_v46, %v1636_v61 }
 0x63e   :  { %v1651_v4 = vmul.f32 %v1649_v2, %v1565_v63  ;;  %v1645_v57 = vsel %vm1642_vm3, %v1644_v58, %v1640_v3 }
 0x63f   :  { %v1646_v0 = vmul.f32 %v1645_v57, %v1621_v37 }
 0x640   :  { %v1653_v5 = vpack.c.bf16 %v1651_v4, %v1651_v4 }
 0x641   :  { %v2404_v6 = vclamps-f32 %v1646_v0, 1.0 }
 0x642   :  { %1762 = vmatmul.bf16.vlgmr.msrb.gmra.mxu3 %v1653_v5 }
 0x643   :  { %v1650_v11 = vadd.f32 1.0, %v2404_v6 }
 0x645   :  { %v1652_v8 = vmul.f32 %v1650_v11, %v1566_v7 }
 0x647   :  { %v1654_v9 = vpack.c.bf16 %v1652_v8, %v1652_v8 }
 0x649   :  { %1775 = vmatmul.bf16.vlgmr.msra.gmra.mxu0 %v1654_v9 }
 0x6c5   :  { %v1763_v10 = vpop.f32.mrf.mxu3 }
 0x6c6   :  { %v1764_v41 = vadd.f32 %v2665_v36, %v1763_v10  ;;  %v1776_v23 = vpop.f32.mrf.mxu0 }
 0x6c8   :  { %v1777_v34 = vadd.f32 %v1776_v23, %v1764_v41 }
 0x6ca   :  { %v1780_v13 = vadd.f32 %v1777_v34, %v3191_v35  ;;  %v2639_v35 = vld [vmem:[#allocation11 + $0x10] sm:$0xff] }
 0x6cb   :  { %1885 = vmatpush.bf16.msra.mxu1 %v2639_v35 }
 0x6cc   :  { %1783 = vadd.xlane.f32.xlu1 %v1780_v13 }
 0x6cd   :  { %v1765_v14 = vpop.f32.mrf.mxu3 }
 0x6ce   :  { %v1778_v15 = vpop.f32.mrf.mxu0 }
 0x6cf   :  { %1886 = vmatpush.bf16.msra.mxu1 %v2638_v27 }
 0x6d3   :  { %1887 = vmatpush.bf16.msra.mxu1 %v2637_v28 }
 0x73f   :  { %v1784_v45 = vpop.xlane.xlu1 %1783 }
 0x740   :  { %v1785_v19 = vmul.f32 %v1784_v45, %v2983_v26 }
 0x742   :  { %v1786_v62 = vsub.f32 %v1780_v13, %v1785_v19 }
 0x744   :  { %v1787_v20 = vmul.f32 %v1786_v62, %v1786_v62 }
 0x746   :  { %1788 = vadd.xlane.f32.xlu1 %v1787_v20 }
 0x7b9   :  { %v1789_v24 = vpop.xlane.xlu1 %1788 }
 0x7ba   :  { %v1790_v30 = vmul.f32 %v1789_v24, %v2983_v26  ;;  %v2667_v26 = vld [vmem:[%s3253_s10] ss:$0 sm:$0xff] }
 0x7bc   :  { %v1791_v31 = vadd.f32 1e-05, %v1790_v30 }
 0x7be   :  { %2689 = vrsqrt.f32 %v1791_v31  ;;  %vm1798_vm5 = vweird.f32 %v1791_v31 }
 0x7c4   :  { %v2690_v29 = vpop.eup %2689 }
 0x7c5   :  { %v1793_v32 = vmul.f32 %v2690_v29, %v1791_v31  ;;  %vm1799_vm4 = vweird.f32 %v2690_v29 }
 0x7c6   :  { %vm1800_vm6 = vmor %vm1798_vm5, %vm1799_vm4 }
 0x7c7   :  { %v1794_v17 = vmul.f32 %v2690_v29, %v1793_v32 }
 0x7c9   :  { %v1795_v47 = vmul.f32 0.5, %v1794_v17 }
 0x7cb   :  { %v1796_v38 = vsub.f32 1.5, %v1795_v47 }
 0x7cd   :  { %v1797_v40 = vmul.f32 %v2690_v29, %v1796_v38 }
 0x7cf   :  { %v1801_v18 = vsel %vm1800_vm6, %v2690_v29, %v1797_v40 }
 0x7d0   :  { %v1802_v44 = vmul.f32 %v1801_v18, %v1786_v62 }
 0x7d2   :  { %v1806_v39 = vmul.f32 %v2666_v43, %v1802_v44 }
 0x7d4   :  { %v1810_v46 = vadd.f32 %v2667_v26, %v1806_v39 }
 0x7d6   :  { %v1827_v48 = vpack.c.bf16 %v1810_v46, %v1810_v46 }
 0x7d8   :  { %1888 = vmatmul.bf16.vlgmr.msra.gmra.mxu1 %v1827_v48 }
 0x855   :  { %v1889_v50 = vpop.f32.mrf.mxu1 }
 0x856   :  { %v1890_v51 = vadd.f32 %v2668_v49, %v1889_v50 }
 0x858   :  { %1893 = vst [vmem:[#allocation13] sm:$0xff] %v1890_v51 }
 0x859   :  { %1904 = dma.vmem_to_hbm [thread:$0]  %s1900_s1, 128, %s1902_s9, [#allocation4]  }
 0x85d   :  { %v1891_v52 = vpop.f32.mrf.mxu1 }
 0x85e   :  { %2867 = dma.done.wait [#allocation4], 128  }
 0x85f   :  { %2868 = vsyncadd [#allocation4], 4294967168 }
 0x860   :  { %1909 = vsyncpa [#allocation3], 1 }
 0x861   :  { %1910 = vsyncpa [#allocation6], 1 }
 0x862   :  { %1911 = vsyncpa [#allocation9], 1 }
 0x863   :  { %1912 = vsyncpa [#allocation12], 1 }
 0x864   :  { %1913 = vsyncpa [#allocation4], 1 }

// kernel: tpu_custom_call.1
= control target key start
LH: loop header
LB: loop body
LE: loop exit
PB: predicated region body
PF: predicated region fallthrough
CT: control target
= control target key end

     0   :  { %18 = vsyncpa [#allocation3], 0  ;;  %s3243_s0 = inlined_call_operand.hbm [shape: f32[8,128], index: 0, kind: input, shape index: {}]   ;;  %s3244_s1 = inlined_call_operand.hbm [shape: bf16[128,128], index: 1, kind: input, shape index: {}]   ;;  %s3245_s2 = inlined_call_operand.vmem [shape: f32[1,128], index: 2, kind: input, shape index: {}]   ;;  %s3246_s3 = inlined_call_operand.vmem [shape: f32[1,128], index: 3, kind: input, shape index: {}]   ;;  %s3247_s4 = inlined_call_operand.vmem [shape: f32[1,128], index: 4, kind: input, shape index: {}]   ;;  %s3248_s5 = inlined_call_operand.hbm [shape: bf16[4,128,256], index: 5, kind: input, shape index: {}]   ;;  %s3249_s6 = inlined_call_operand.hbm [shape: f32[4,1,256], index: 6, kind: input, shape index: {}]   ;;  %s3250_s7 = inlined_call_operand.hbm [shape: bf16[4,256,128], index: 7, kind: input, shape index: {}]   ;;  %s3251_s8 = inlined_call_operand.vmem [shape: f32[4,1,128], index: 8, kind: input, shape index: {}]   ;;  %s3252_s9 = inlined_call_operand.vmem [shape: f32[1,128], index: 9, kind: input, shape index: {}]   ;;  %s3253_s10 = inlined_call_operand.vmem [shape: f32[1,128], index: 10, kind: input, shape index: {}]   ;;  %s3254_s11 = inlined_call_operand.hbm [shape: bf16[128,128], index: 11, kind: input, shape index: {}]   ;;  %s3255_s12 = inlined_call_operand.vmem [shape: f32[1,128], index: 12, kind: input, shape index: {}]   ;;  %s3256_s13 = inlined_call_operand.hbm [shape: f32[8,128], index: 13, kind: output, shape index: {}]  }
   0x1   :  { %19 = vsyncpa [#allocation6], 0 }
   0x2   :  { %20 = vsyncpa [#allocation9], 0 }
   0x3   :  { %21 = vsyncpa [#allocation12], 0  ;;  %s38_s27 = sshll.u32 %s3244_s1, 4  ;;  %s39_s27 = int_to_ptr.hbm [resolvable:$true] %s38_s27 }
   0x4   :  { %22 = vsyncpa [#allocation4], 0  ;;  %s2869_s28 = smov [#allocation5]   ;;  %s70_s15 = sshll.u32 %s3249_s6, 4  ;;  %s71_s15 = int_to_ptr.hbm [resolvable:$true] %s70_s15 }
   0x5   :  { %s40_s29 = sshll.u32 %s2869_s28, 4  ;;  %s2870_s16 = smov 64   ;;  %s41_s29 = int_to_ptr.vmem [resolvable:$true] %s40_s29 }
   0x6   :  { %s2871_s17 = smov 4   ;;  %s2872_s18 = smov [#allocation8]  }
   0x7   :  { %46 = dma.hbm_to_vmem [thread:$0]  %s39_s27, 1024, %s41_s29, [#allocation6], %s2870_s16, %s2870_s16, %s2871_s17  }
   0x8   :  { %s72_s19 = sshll.u32 %s2872_s18, 4  ;;  %s2873_s1 = smov 32   ;;  %s73_s19 = int_to_ptr.vmem [resolvable:$true] %s72_s19 }
   0x9   :  { %s2874_s20 = smov 2   ;;  %s28_s23 = sshll.u32 %s3243_s0, 4  ;;  %s29_s23 = int_to_ptr.hbm [resolvable:$true] %s28_s23 }
   0xa   :  { %78 = dma.hbm_to_vmem [thread:$0]  %s71_s15, 128, %s73_s19, [#allocation9], %s2873_s1, %s2873_s1, %s2874_s20  }
   0xb   :  { %s2875_s24 = smov [#allocation2]   ;;  %s57_s28 = sshll.u32 %s3248_s5, 4  ;;  %s58_s28 = int_to_ptr.hbm [resolvable:$true] %s57_s28 }
   0xc   :  { %s30_s6 = sshll.u32 %s2875_s24, 4  ;;  %s2876_s27 = smov [#allocation7]   ;;  %s31_s6 = int_to_ptr.vmem [resolvable:$true] %s30_s6 }
   0xd   :  { %33 = dma.hbm_to_vmem [thread:$0]  %s29_s23, 128, %s31_s6, [#allocation3]  }
   0xe   :  { %s59_s29 = sshll.u32 %s2876_s27, 4  ;;  %s2877_s30 = smov 128   ;;  %s60_s29 = int_to_ptr.vmem [resolvable:$true] %s59_s29 }
   0xf   :  { %s2878_s14 = smov 8   ;;  %s83_s0 = sshll.u32 %s3250_s7, 4  ;;  %s84_s0 = int_to_ptr.hbm [resolvable:$true] %s83_s0 }
  0x10   :  { %65 = dma.hbm_to_vmem [thread:$0]  %s58_s28, 8192, %s60_s29, [#allocation6], %s2877_s30, %s2877_s30, %s2878_s14  }
  0x11   :  { %s2879_s19 = smov [#allocation10]   ;;  %s102_s5 = sshll.u32 %s3254_s11, 4  ;;  %s103_s5 = int_to_ptr.hbm [resolvable:$true] %s102_s5 }
  0x12   :  { %s85_s1 = sshll.u32 %s2879_s19, 4  ;;  %s2880_s22 = smov [#allocation11]   ;;  %s86_s1 = int_to_ptr.vmem [resolvable:$true] %s85_s1 }
  0x13   :  { %91 = dma.hbm_to_vmem [thread:$0]  %s84_s0, 8192, %s86_s1, [#allocation9], %s2870_s16, %s2870_s16, %s2871_s17  }
  0x14   :  { %s104_s23 = sshll.u32 %s2880_s22, 4  ;;  %s105_s23 = int_to_ptr.vmem [resolvable:$true] %s104_s23 }
  0x15   :  { %110 = dma.hbm_to_vmem [thread:$0]  %s103_s5, 1024, %s105_s23, [#allocation12], %s2870_s16, %s2870_s16, %s2871_s17  }
  0x16   :  { %2859 = dma.done.wait [#allocation3], 128  }
  0x17   :  { %2860 = vsyncadd [#allocation3], 4294967168 }
  0x18   :  { %2861 = dma.done.wait [#allocation6], 9216  }
  0x19   :  { %2862 = vsyncadd [#allocation6], 4294958080 }
  0x1a   :  { %2863 = dma.done.wait [#allocation9], 8320  }
  0x1b   :  { %2864 = vsyncadd [#allocation9], 4294958976 }
  0x1c   :  { %2865 = dma.done.wait [#allocation12], 1024  }
  0x1d   :  { %2866 = vsyncadd [#allocation12], 4294966272  ;;  %v2508_v0 = vld [vmem:[#allocation5 + $0x38] sm:$0xff]  ;;  %v2507_v1 = vld [vmem:[#allocation5 + $0x30] sm:$0xff]  ;;  %v2881_v14 = vmov 128.0   ;;  %s2882_s19 = smov [#allocation13]  }
  0x1e   :  { %207 = vmatpush.bf16.msra.mxu0 %v2508_v0  ;;  %v2506_v2 = vld [vmem:[#allocation5 + $0x28] sm:$0xff]  ;;  %v2505_v3 = vld [vmem:[#allocation5 + $0x20] sm:$0xff]  ;;  %v2504_v4 = vld [vmem:[#allocation5 + $0x18] sm:$0xff]  ;;  %2669 = vrcp.f32 %v2881_v14  ;;  %s1899_s1 = sshll.u32 %s2882_s19, 4  ;;  %s1900_s1 = int_to_ptr.vmem [resolvable:$true] %s1899_s1 }
  0x1f   :  { %v2503_v5 = vld [vmem:[#allocation5 + $0x10] sm:$0xff]  ;;  %v2502_v6 = vld [vmem:[#allocation5 + $0x8] sm:$0xff]  ;;  %v2501_v7 = vld [vmem:[#allocation5] sm:$0xff] }
  0x20   :  { %v137_v8 = vld [vmem:[#allocation2] sm:$0xff]  ;;  %v2004_v15 = vld [vmem:[#allocation7 + $0x70] sm:$0xf]  ;;  %v2523_v17 = vld [vmem:[#allocation7 + $0x74] sm:$0xf] }
  0x21   :  { %v154_v9 = vpack.c.bf16 %v137_v8, %v137_v8  ;;  %v2659_v10 = vld [vmem:[%s3245_s2] ss:$0 sm:$0xff]  ;;  %v2006_v19 = vld [vmem:[#allocation7 + $0x78] sm:$0xf0]  ;;  %v1996_v31 = vld [vmem:[#allocation7 + $0x60] sm:$0xf] }
  0x22   :  { %208 = vmatpush.bf16.msra.mxu0 %v2507_v1  ;;  %v2524_v16 = vld [vmem:[#allocation7 + $0x74] sm:$0xf0]  ;;  %v2009_v20 = vor.u32 %v2523_v17, %v2006_v19  ;;  %v2522_v32 = vld [vmem:[#allocation7 + $0x64] sm:$0xf0]  ;;  %v2521_v33 = vld [vmem:[#allocation7 + $0x64] sm:$0xf] }
  0x23   :  { %v2005_v18 = vor.u32 %v2524_v16, %v2004_v15  ;;  %v1997_v34 = vor.u32 %v2522_v32, %v1996_v31  ;;  %v1998_v35 = vld [vmem:[#allocation7 + $0x68] sm:$0xf0]  ;;  %v1988_v37 = vld [vmem:[#allocation7 + $0x50] sm:$0xf]  ;;  %v2520_v38 = vld [vmem:[#allocation7 + $0x54] sm:$0xf0] }
  0x24   :  { %v2670_v21 = vpop.eup %2669  ;;  %406 = vmatpush.bf16.msra.mxu2 %v2009_v20  ;;  %v2001_v36 = vor.u32 %v2521_v33, %v1998_v35  ;;  %v2519_v39 = vld [vmem:[#allocation7 + $0x54] sm:$0xf]  ;;  %v1989_v40 = vor.u32 %v2520_v38, %v1988_v37  ;;  %v1990_v41 = vld [vmem:[#allocation7 + $0x58] sm:$0xf0]  ;;  %v1980_v43 = vld [vmem:[#allocation7 + $0x40] sm:$0xf] }
  0x25   :  { %393 = vmatpush.bf16.msra.mxu1 %v2005_v18  ;;  %v225_v22 = vmul.f32 128.0, %v2670_v21  ;;  %vm229_vm0 = vweird.f32 %v2670_v21  ;;  %v1993_v42 = vor.u32 %v2519_v39, %v1990_v41  ;;  %v2518_v44 = vld [vmem:[#allocation7 + $0x44] sm:$0xf0]  ;;  %v2517_v45 = vld [vmem:[#allocation7 + $0x44] sm:$0xf]  ;;  %v2530_v32 = vld [vmem:[#allocation10 + $0x28] sm:$0xff] }
  0x26   :  { %209 = vmatpush.bf16.msra.mxu0 %v2506_v2  ;;  %v1981_v46 = vor.u32 %v2518_v44, %v1980_v43  ;;  %v1982_v47 = vld [vmem:[#allocation7 + $0x48] sm:$0xf0]  ;;  %v1972_v49 = vld [vmem:[#allocation7 + $0x30] sm:$0xf]  ;;  %v2516_v50 = vld [vmem:[#allocation7 + $0x34] sm:$0xf0] }
  0x27   :  { %v226_v23 = vsub.f32 1.0, %v225_v22  ;;  %v1985_v48 = vor.u32 %v2517_v45, %v1982_v47  ;;  %v2515_v51 = vld [vmem:[#allocation7 + $0x34] sm:$0xf]  ;;  %v1973_v52 = vor.u32 %v2516_v50, %v1972_v49  ;;  %v1974_v53 = vld [vmem:[#allocation7 + $0x38] sm:$0xf0]  ;;  %v2540_v31 = vld [vmem:[#allocation10 + $0x78] sm:$0xff] }
  0x28   :  { %407 = vmatpush.bf16.msra.mxu2 %v2001_v36  ;;  %v1977_v54 = vor.u32 %v2515_v51, %v1974_v53  ;;  %v1964_v55 = vld [vmem:[#allocation7 + $0x20] sm:$0xf]  ;;  %v2514_v56 = vld [vmem:[#allocation7 + $0x24] sm:$0xf0]  ;;  %v2513_v57 = vld [vmem:[#allocation7 + $0x24] sm:$0xf] }
  0x29   :  { %v227_v24 = vmul.f32 %v2670_v21, %v226_v23  ;;  %394 = vmatpush.bf16.msra.mxu1 %v1997_v34  ;;  %v1965_v58 = vor.u32 %v2514_v56, %v1964_v55  ;;  %v1966_v59 = vld [vmem:[#allocation7 + $0x28] sm:$0xf0]  ;;  %v1956_v61 = vld [vmem:[#allocation7 + $0x10] sm:$0xf]  ;;  %v2512_v62 = vld [vmem:[#allocation7 + $0x14] sm:$0xf0] }
  0x2a   :  { %210 = vmatpush.bf16.msra.mxu0 %v2505_v3  ;;  %v1969_v60 = vor.u32 %v2513_v57, %v1966_v59  ;;  %v2511_v63 = vld [vmem:[#allocation7 + $0x14] sm:$0xf]  ;;  %v1957_v0 = vor.u32 %v2512_v62, %v1956_v61  ;;  %v1958_v1 = vld [vmem:[#allocation7 + $0x18] sm:$0xf0]  ;;  %v1948_v2 = vld [vmem:[#allocation7] sm:$0xf] }
  0x2b   :  { %v228_v25 = vadd.f32 %v2670_v21, %v227_v24  ;;  %v2510_v3 = vld [vmem:[#allocation7 + $0x4] sm:$0xf0]  ;;  %v2660_v18 = vld [vmem:[%s3246_s3] ss:$0 sm:$0xff]  ;;  %v2528_v44 = vld [vmem:[#allocation10 + $0x18] sm:$0xff] }
  0x2c   :  { %408 = vmatpush.bf16.msra.mxu2 %v1993_v42  ;;  %v2539_v34 = vld [vmem:[#allocation10 + $0x70] sm:$0xff]  ;;  %v2529_v37 = vld [vmem:[#allocation10 + $0x20] sm:$0xff]  ;;  %v2536_v56 = vld [vmem:[#allocation10 + $0x58] sm:$0xff] }
  0x2d   :  { %v2983_v26 = vsel %vm229_vm0, %v2670_v21, %v228_v25  ;;  %395 = vmatpush.bf16.msra.mxu1 %v1989_v40  ;;  %v2661_v21 = vld [vmem:[%s3247_s4] ss:$0 sm:$0xff]  ;;  %v2532_v25 = vld [vmem:[#allocation10 + $0x38] sm:$0xff]  ;;  %v2538_v40 = vld [vmem:[#allocation10 + $0x68] sm:$0xff] }
  0x2e   :  { %211 = vmatpush.bf16.msra.mxu0 %v2504_v4  ;;  %v1961_v4 = vor.u32 %v2511_v63, %v1958_v1  ;;  %608 = vmatpush.bf16.msra.mxu3 %v2532_v25  ;;  %v2537_v47 = vld [vmem:[#allocation10 + $0x60] sm:$0xff]  ;;  %v2527_v51 = vld [vmem:[#allocation10 + $0x10] sm:$0xff]  ;;  %v2526_v61 = vld [vmem:[#allocation10 + $0x8] sm:$0xff] }
  0x30   :  { %409 = vmatpush.bf16.msra.mxu2 %v1985_v48 }
  0x31   :  { %396 = vmatpush.bf16.msra.mxu1 %v1981_v46 }
  0x32   :  { %212 = vmatpush.bf16.msra.mxu0 %v2503_v5  ;;  %v2509_v5 = vld [vmem:[#allocation7 + $0x4] sm:$0xf] }
  0x34   :  { %410 = vmatpush.bf16.msra.mxu2 %v1977_v54 }
  0x35   :  { %397 = vmatpush.bf16.msra.mxu1 %v1973_v52 }
  0x36   :  { %213 = vmatpush.bf16.msra.mxu0 %v2502_v6  ;;  %v1950_v6 = vld [vmem:[#allocation7 + $0x8] sm:$0xf0] }
  0x37   :  { %v1953_v8 = vor.u32 %v2509_v5, %v1950_v6  ;;  %v2525_v6 = vld [vmem:[#allocation10] sm:$0xff] }
  0x38   :  { %411 = vmatpush.bf16.msra.mxu2 %v1969_v60 }
  0x39   :  { %398 = vmatpush.bf16.msra.mxu1 %v1965_v58 }
  0x3a   :  { %214 = vmatpush.bf16.msra.mxu0 %v2501_v7  ;;  %v1949_v7 = vor.u32 %v2510_v3, %v1948_v2  ;;  %v2535_v2 = vld [vmem:[#allocation10 + $0x50] sm:$0xff] }
  0x3c   :  { %412 = vmatpush.bf16.msra.mxu2 %v1961_v4 }
  0x3d   :  { %215 = vmatmul.bf16.vlgmr.msra.gmra.mxu0 %v154_v9  ;;  %399 = vmatpush.bf16.msra.mxu1 %v1957_v0 }
  0x3e   :  { %621 = vmatpush.bf16.msrb.mxu0 %v2540_v31  ;;  %v2555_v31 = vld [vmem:[#allocation7 + $0xf4] sm:$0xf] }
  0x40   :  { %413 = vmatpush.bf16.msra.mxu2 %v1953_v8 }
  0x41   :  { %400 = vmatpush.bf16.msra.mxu1 %v1949_v7  ;;  %v2534_v7 = vld [vmem:[#allocation10 + $0x48] sm:$0xff] }
  0x42   :  { %622 = vmatpush.bf16.msrb.mxu0 %v2539_v34 }
  0x46   :  { %623 = vmatpush.bf16.msrb.mxu0 %v2538_v40  ;;  %v2553_v40 = vld [vmem:[#allocation7 + $0xe4] sm:$0xf] }
  0x4a   :  { %624 = vmatpush.bf16.msrb.mxu0 %v2537_v47  ;;  %v2119_v47 = vld [vmem:[#allocation7 + $0xd0] sm:$0xf] }
  0x4e   :  { %625 = vmatpush.bf16.msrb.mxu0 %v2536_v56 }
  0x52   :  { %626 = vmatpush.bf16.msrb.mxu0 %v2535_v2 }
  0x56   :  { %627 = vmatpush.bf16.msrb.mxu0 %v2534_v7  ;;  %v2103_v7 = vld [vmem:[#allocation7 + $0xb0] sm:$0xf] }
  0xba   :  { %v216_v11 = vpop.f32.mrf.mxu0 }
  0xbb   :  { %v217_v12 = vadd.f32 %v2659_v10, %v216_v11 }
  0xbd   :  { %222 = vadd.xlane.f32.xlu0 %v217_v12 }
  0xc2   :  { %v218_v13 = vpop.f32.mrf.mxu0 }
 0x130   :  { %v223_v27 = vpop.xlane.xlu0 %222 }
 0x131   :  { %v231_v28 = vmul.f32 %v2983_v26, %v223_v27  ;;  %v273_v27 = vld [vmem:[#allocation8] sm:$0x3] }
 0x132   :  { %v310_v36 = vperm.slane %v273_v27, 1 }
 0x133   :  { %v2986_v29 = vsub.f32 %v217_v12, %v231_v28  ;;  %v2531_v28 = vld [vmem:[#allocation10 + $0x30] sm:$0xff] }
 0x134   :  { %609 = vmatpush.bf16.msra.mxu3 %v2531_v28 }
 0x135   :  { %v233_v30 = vmul.f32 %v2986_v29, %v2986_v29 }
 0x137   :  { %234 = vadd.xlane.f32.xlu0 %v233_v30  ;;  %v309_v30 = vperm.slane %v273_v27, 0  ;;  %v2135_v27 = vld [vmem:[#allocation7 + $0xf0] sm:$0xf] }
 0x138   :  { %610 = vmatpush.bf16.msra.mxu3 %v2530_v32 }
 0x13c   :  { %611 = vmatpush.bf16.msra.mxu3 %v2529_v37  ;;  %v2127_v37 = vld [vmem:[#allocation7 + $0xe0] sm:$0xf] }
 0x140   :  { %612 = vmatpush.bf16.msra.mxu3 %v2528_v44 }
 0x144   :  { %613 = vmatpush.bf16.msra.mxu3 %v2527_v51 }
 0x148   :  { %614 = vmatpush.bf16.msra.mxu3 %v2526_v61  ;;  %v2549_v61 = vld [vmem:[#allocation7 + $0xc4] sm:$0xf] }
 0x14c   :  { %615 = vmatpush.bf16.msra.mxu3 %v2525_v6 }
 0x1aa   :  { %v235_v9 = vpop.xlane.xlu0 %234 }
 0x1ab   :  { %v236_v10 = vmul.f32 %v235_v9, %v2983_v26 }
 0x1ad   :  { %v237_v11 = vadd.f32 1e-05, %v236_v10 }
 0x1af   :  { %2671 = vrsqrt.f32 %v237_v11  ;;  %vm244_vm2 = vweird.f32 %v237_v11 }
 0x1b5   :  { %v2672_v12 = vpop.eup %2671 }
 0x1b6   :  { %v239_v13 = vmul.f32 %v2672_v12, %v237_v11  ;;  %vm245_vm1 = vweird.f32 %v2672_v12 }
 0x1b7   :  { %vm246_vm3 = vmor %vm244_vm2, %vm245_vm1 }
 0x1b8   :  { %v240_v14 = vmul.f32 %v2672_v12, %v239_v13 }
 0x1ba   :  { %v241_v15 = vmul.f32 0.5, %v240_v14 }
 0x1bc   :  { %v242_v16 = vsub.f32 1.5, %v241_v15 }
 0x1be   :  { %v243_v17 = vmul.f32 %v2672_v12, %v242_v16 }
 0x1c0   :  { %v247_v19 = vsel %vm246_vm3, %v2672_v12, %v243_v17  ;;  %v2533_v17 = vld [vmem:[#allocation10 + $0x40] sm:$0xff] }
 0x1c1   :  { %v248_v20 = vmul.f32 %v247_v19, %v2986_v29  ;;  %628 = vmatpush.bf16.msrb.mxu0 %v2533_v17 }
 0x1c3   :  { %v252_v22 = vmul.f32 %v2660_v18, %v248_v20 }
 0x1c5   :  { %v2998_v23 = vadd.f32 %v2661_v21, %v252_v22 }
 0x1c7   :  { %v307_v24 = vpack.c.bf16 %v2998_v23, %v2998_v23 }
 0x1c9   :  { %401 = vmatmul.bf16.vlgmr.msra.gmra.mxu1 %v307_v24  ;;  %414 = vmatmul.bf16.vlgmr.msra.gmra.mxu2 %v307_v24 }
 0x246   :  { %v402_v29 = vpop.f32.mrf.mxu1 }
 0x247   :  { %v3002_v33 = vadd.f32 %v402_v29, %v309_v30  ;;  %v2556_v30 = vld [vmem:[#allocation7 + $0xf4] sm:$0xf0]  ;;  %v2137_v29 = vld [vmem:[#allocation7 + $0xf8] sm:$0xf0] }
 0x248   :  { %v2136_v34 = vor.u32 %v2556_v30, %v2135_v27  ;;  %v2097_v27 = vld [vmem:[#allocation7 + $0xa8] sm:$0xf0] }
 0x249   :  { %v3005_v35 = vmul.f32 0.70710677, %v3002_v33 }
 0x24a   :  { %775 = vmatpush.bf16.msrb.mxu1 %v2136_v34 }
 0x24b   :  { %v423_v38 = vmul.f32 %v3005_v35, %v3005_v35 }
 0x24c   :  { %v415_v39 = vpop.f32.mrf.mxu2 }
 0x24d   :  { %v3009_v41 = vmin.f32 %v423_v38, 16.0  ;;  %v3011_v42 = vadd.f32 %v415_v39, %v310_v36  ;;  %v2140_v36 = vor.u32 %v2555_v31, %v2137_v29  ;;  %v2554_v38 = vld [vmem:[#allocation7 + $0xe4] sm:$0xf0] }
 0x24e   :  { %v404_v43 = vpop.f32.mrf.mxu1  ;;  %v2128_v44 = vor.u32 %v2554_v38, %v2127_v37  ;;  %v419_v37 = vmul.f32 0.5, %v3002_v33  ;;  %v2089_v33 = vld [vmem:[#allocation7 + $0x98] sm:$0xf0] }
 0x24f   :  { %v425_v45 = vmul.f32 2.1237322e-06, %v3009_v41  ;;  %v3015_v46 = vmul.f32 0.70710677, %v3011_v42  ;;  %v436_v48 = vmul.f32 3.8918573e-05, %v3009_v41  ;;  %788 = vmatpush.bf16.msrb.mxu2 %v2140_v36 }
 0x250   :  { %776 = vmatpush.bf16.msrb.mxu1 %v2128_v44 }
 0x251   :  { %v426_v49 = vadd.f32 0.00028619796, %v425_v45  ;;  %v463_v50 = vmul.f32 %v3015_v46, %v3015_v46  ;;  %v437_v52 = vadd.f32 0.001143296, %v436_v48  ;;  %v2129_v45 = vld [vmem:[#allocation7 + $0xe8] sm:$0xf0] }
 0x252   :  { %v2552_v48 = vld [vmem:[#allocation7 + $0xd4] sm:$0xf0] }
 0x253   :  { %v427_v53 = vmul.f32 %v426_v49, %v3009_v41  ;;  %v3021_v54 = vmin.f32 %v463_v50, 16.0  ;;  %v438_v57 = vmul.f32 %v437_v52, %v3009_v41  ;;  %v2551_v49 = vld [vmem:[#allocation7 + $0xd4] sm:$0xf]  ;;  %v2121_v50 = vld [vmem:[#allocation7 + $0xd8] sm:$0xf0] }
 0x254   :  { %v417_v55 = vpop.f32.mrf.mxu2 }
 0x255   :  { %v428_v58 = vadd.f32 0.0036580483, %v427_v53  ;;  %v465_v59 = vmul.f32 2.1237322e-06, %v3021_v54  ;;  %v476_v60 = vmul.f32 3.8918573e-05, %v3021_v54  ;;  %v2132_v53 = vor.u32 %v2553_v40, %v2129_v45 }
 0x256   :  { %v439_v62 = vadd.f32 0.014752088, %v438_v57  ;;  %v2120_v57 = vor.u32 %v2552_v48, %v2119_v47 }
 0x257   :  { %v466_v63 = vadd.f32 0.00028619796, %v465_v59  ;;  %v477_v0 = vadd.f32 0.001143296, %v476_v60  ;;  %v429_v1 = vmul.f32 %v428_v58, %v3009_v41  ;;  %789 = vmatpush.bf16.msrb.mxu2 %v2132_v53  ;;  %v2111_v58 = vld [vmem:[#allocation7 + $0xc0] sm:$0xf] }
 0x258   :  { %v440_v3 = vmul.f32 %v439_v62, %v3009_v41  ;;  %v2550_v59 = vld [vmem:[#allocation7 + $0xc4] sm:$0xf0]  ;;  %v2113_v62 = vld [vmem:[#allocation7 + $0xc8] sm:$0xf0]  ;;  %777 = vmatpush.bf16.msrb.mxu1 %v2120_v57 }
 0x259   :  { %v467_v4 = vmul.f32 %v466_v63, %v3021_v54  ;;  %v478_v5 = vmul.f32 %v477_v0, %v3021_v54  ;;  %v430_v11 = vadd.f32 0.05243302, %v429_v1  ;;  %v2116_v6 = vor.u32 %v2549_v61, %v2113_v62  ;;  %v2542_v57 = vld [vmem:[#allocation7 + $0x84] sm:$0xf0] }
 0x25a   :  { %v441_v8 = vadd.f32 0.112945676, %v440_v3 }
 0x25b   :  { %v468_v9 = vadd.f32 0.0036580483, %v467_v4  ;;  %v479_v10 = vadd.f32 0.014752088, %v478_v5  ;;  %v431_v18 = vmul.f32 %v430_v11, %v3009_v41  ;;  %v2112_v5 = vor.u32 %v2550_v59, %v2111_v58  ;;  %v2105_v11 = vld [vmem:[#allocation7 + $0xb8] sm:$0xf0] }
 0x25c   :  { %v442_v12 = vmul.f32 %v441_v8, %v3009_v41  ;;  %v2548_v8 = vld [vmem:[#allocation7 + $0xb4] sm:$0xf0]  ;;  %v2081_v59 = vld [vmem:[#allocation7 + $0x88] sm:$0xf0] }
 0x25d   :  { %v480_v13 = vmul.f32 %v479_v10, %v3021_v54  ;;  %v469_v14 = vmul.f32 %v468_v9, %v3021_v54  ;;  %v432_v25 = vadd.f32 0.18741608, %v431_v18  ;;  %v2104_v18 = vor.u32 %v2548_v8, %v2103_v7  ;;  %778 = vmatpush.bf16.msrb.mxu1 %v2112_v5  ;;  %v2564_v5 = vld [vmem:[#allocation10 + $0xb8] sm:$0xff]  ;;  %v2563_v8 = vld [vmem:[#allocation10 + $0xb0] sm:$0xff] }
 0x25e   :  { %v443_v15 = vadd.f32 0.4994258, %v442_v12  ;;  %990 = vmatpush.bf16.msrb.mxu3 %v2564_v5 }
 0x25f   :  { %v481_v16 = vadd.f32 0.112945676, %v480_v13  ;;  %v470_v21 = vadd.f32 0.05243302, %v469_v14  ;;  %v433_v43 = vmul.f32 %v432_v25, %v3009_v41  ;;  %v2545_v25 = vld [vmem:[#allocation7 + $0xa4] sm:$0xf] }
 0x260   :  { %v444_v19 = vmul.f32 %v443_v15, %v3009_v41  ;;  %v2124_v41 = vor.u32 %v2551_v49, %v2121_v50  ;;  %v2100_v36 = vor.u32 %v2545_v25, %v2097_v27  ;;  %v2087_v50 = vld [vmem:[#allocation7 + $0x90] sm:$0xf] }
 0x261   :  { %v482_v20 = vmul.f32 %v481_v16, %v3021_v54  ;;  %v471_v32 = vmul.f32 %v470_v21, %v3021_v54  ;;  %v434_v56 = vadd.f32 1.1283791, %v433_v43  ;;  %v2095_v21 = vld [vmem:[#allocation7 + $0xa0] sm:$0xf]  ;;  %779 = vmatpush.bf16.msrb.mxu1 %v2104_v18 }
 0x262   :  { %v3036_v22 = vadd.f32 1.0, %v444_v19  ;;  %790 = vmatpush.bf16.msrb.mxu2 %v2124_v41  ;;  %v2541_v41 = vld [vmem:[#allocation7 + $0x84] sm:$0xf]  ;;  %991 = vmatpush.bf16.msrb.mxu3 %v2563_v8 }
 0x263   :  { %v483_v24 = vadd.f32 0.4994258, %v482_v20  ;;  %v472_v52 = vadd.f32 0.18741608, %v471_v32  ;;  %v435_v9 = vmul.f32 %v434_v56, %v3005_v35  ;;  %v2079_v56 = vld [vmem:[#allocation7 + $0x80] sm:$0xf] }
 0x264   :  { %2673 = vrcp.f32 %v3036_v22  ;;  %v455_v0 = vand.u32 2147483647, %v3036_v22  ;;  %v457_v1 = vand.u32 2147483648, %v3036_v22  ;;  %vm451_vm5 = vweird.f32 %v3036_v22 }
 0x265   :  { %v484_v28 = vmul.f32 %v483_v24, %v3021_v54  ;;  %v473_v63 = vmul.f32 %v472_v52, %v3021_v54  ;;  %v2547_v54 = vld [vmem:[#allocation7 + $0xb4] sm:$0xf]  ;;  %v2546_v24 = vld [vmem:[#allocation7 + $0xa4] sm:$0xf0]  ;;  %v2080_v58 = vor.u32 %v2542_v57, %v2079_v56 }
 0x266   :  { %vm456_vm7 = vcmp.eq.f32.partialorder %v455_v0, 8.507059e+37  ;;  %v458_v14 = vor.u32 1.1754944e-38, %v457_v1  ;;  %791 = vmatpush.bf16.msrb.mxu2 %v2116_v6  ;;  %v2108_v20 = vor.u32 %v2547_v54, %v2105_v11  ;;  %v2096_v34 = vor.u32 %v2546_v24, %v2095_v21  ;;  %v2543_v52 = vld [vmem:[#allocation7 + $0x94] sm:$0xf]  ;;  %v653_v6 = vld [vmem:[#allocation8 + $0x2] sm:$0x3] }
 0x267   :  { %v3041_v39 = vadd.f32 1.0, %v484_v28  ;;  %v474_v12 = vadd.f32 1.1283791, %v473_v63  ;;  %v691_v7 = vperm.slane %v653_v6, 0 }
 0x268   :  { %780 = vmatpush.bf16.msrb.mxu1 %v2096_v34 }
 0x269   :  { %2675 = vrcp.f32 %v3041_v39  ;;  %v495_v15 = vand.u32 2147483647, %v3041_v39  ;;  %v497_v16 = vand.u32 2147483648, %v3041_v39  ;;  %vm491_vm9 = vweird.f32 %v3041_v39 }
 0x26a   :  { %v2674_v51 = vpop.eup %2673  ;;  %v475_v30 = vmul.f32 %v474_v12, %v3015_v46  ;;  %792 = vmatpush.bf16.msrb.mxu2 %v2108_v20  ;;  %v420_v46 = vmul.f32 0.5, %v3011_v42  ;;  %v2662_v42 = vld [vmem:[%s3251_s8] ss:$0 sm:$0xff]  ;;  %v692_v12 = vperm.slane %v653_v6, 1  ;;  %v2266_v6 = vld [vmem:[#allocation7 + $0x170] sm:$0xf] }
 0x26b   :  { %v447_v55 = vmul.f32 %v2674_v51, %v3036_v22  ;;  %vm452_vm4 = vweird.f32 %v2674_v51  ;;  %v498_v31 = vor.u32 1.1754944e-38, %v497_v16  ;;  %vm496_vm11 = vcmp.eq.f32.partialorder %v495_v15, 8.507059e+37  ;;  %v2561_v15 = vld [vmem:[#allocation10 + $0xa0] sm:$0xff] }
 0x26c   :  { %vm453_vm6 = vmor %vm451_vm5, %vm452_vm4 }
 0x26d   :  { %v448_v60 = vsub.f32 1.0, %v447_v55  ;;  %v2092_v55 = vor.u32 %v2543_v52, %v2089_v33  ;;  %v2557_v33 = vld [vmem:[#allocation10 + $0x80] sm:$0xff] }
 0x26e   :  { %793 = vmatpush.bf16.msrb.mxu2 %v2100_v36 }
 0x26f   :  { %v2676_v2 = vpop.eup %2675  ;;  %v449_v3 = vmul.f32 %v2674_v51, %v448_v60  ;;  %v2084_v60 = vor.u32 %v2541_v41, %v2081_v59 }
 0x270   :  { %v487_v4 = vmul.f32 %v2676_v2, %v3041_v39  ;;  %vm492_vm8 = vweird.f32 %v2676_v2 }
 0x271   :  { %v450_v10 = vadd.f32 %v2674_v51, %v449_v3  ;;  %vm493_vm10 = vmor %vm491_vm9, %vm492_vm8 }
 0x272   :  { %v488_v13 = vsub.f32 1.0, %v487_v4  ;;  %794 = vmatpush.bf16.msrb.mxu2 %v2092_v55 }
 0x273   :  { %v454_v17 = vsel %vm453_vm6, %v2674_v51, %v450_v10  ;;  %v2544_v51 = vld [vmem:[#allocation7 + $0x94] sm:$0xf0] }
 0x274   :  { %v489_v19 = vmul.f32 %v2676_v2, %v488_v13  ;;  %v459_v35 = vsel %vm456_vm7, %v458_v14, %v454_v17  ;;  %v2088_v53 = vor.u32 %v2544_v51, %v2087_v50  ;;  %v2571_v13 = vld [vmem:[#allocation10 + $0xf0] sm:$0xff] }
 0x275   :  { %v460_v22 = vmul.f32 %v459_v35, %v435_v9  ;;  %v2572_v9 = vld [vmem:[#allocation10 + $0xf8] sm:$0xff]  ;;  %v2567_v50 = vld [vmem:[#allocation10 + $0xd0] sm:$0xff] }
 0x276   :  { %v490_v28 = vadd.f32 %v2676_v2, %v489_v19  ;;  %781 = vmatpush.bf16.msrb.mxu1 %v2088_v53  ;;  %795 = vmatpush.bf16.msrb.mxu2 %v2084_v60  ;;  %v2570_v19 = vld [vmem:[#allocation10 + $0xe8] sm:$0xff] }
 0x277   :  { %v2010_v29 = vclamps-f32 %v460_v22, 1.0  ;;  %1003 = vmatpush.bf16.msra.mxu0 %v2572_v9  ;;  %v2560_v22 = vld [vmem:[#allocation10 + $0x98] sm:$0xff] }
 0x278   :  { %v494_v32 = vsel %vm493_vm10, %v2676_v2, %v490_v28  ;;  %v2569_v28 = vld [vmem:[#allocation10 + $0xe0] sm:$0xff] }
 0x279   :  { %v499_v38 = vsel %vm496_vm11, %v498_v31, %v494_v32  ;;  %v503_v40 = vadd.f32 1.0, %v2010_v29  ;;  %v2559_v32 = vld [vmem:[#allocation10 + $0x90] sm:$0xff] }
 0x27a   :  { %v500_v43 = vmul.f32 %v499_v38, %v475_v30  ;;  %782 = vmatpush.bf16.msrb.mxu1 %v2080_v58  ;;  %v2566_v58 = vld [vmem:[#allocation10 + $0xc8] sm:$0xff] }
 0x27b   :  { %v505_v44 = vmul.f32 %v503_v40, %v419_v37  ;;  %1004 = vmatpush.bf16.msra.mxu0 %v2571_v13  ;;  %v2568_v40 = vld [vmem:[#allocation10 + $0xd8] sm:$0xff] }
 0x27c   :  { %v2011_v45 = vclamps-f32 %v500_v43, 1.0  ;;  %v2258_v13 = vld [vmem:[#allocation7 + $0x160] sm:$0xf] }
 0x27d   :  { %v507_v39 = vpack.c.bf16 %v505_v44, %v505_v44 }
 0x27e   :  { %v504_v47 = vadd.f32 1.0, %v2011_v45 }
 0x27f   :  { %616 = vmatmul.bf16.vlgmr.msra.gmra.mxu3 %v507_v39  ;;  %1005 = vmatpush.bf16.msra.mxu0 %v2570_v19  ;;  %v2558_v39 = vld [vmem:[#allocation10 + $0x88] sm:$0xff] }
 0x280   :  { %v506_v48 = vmul.f32 %v504_v47, %v420_v46 }
 0x282   :  { %v508_v49 = vpack.c.bf16 %v506_v48, %v506_v48 }
 0x283   :  { %1006 = vmatpush.bf16.msra.mxu0 %v2569_v28  ;;  %v2584_v28 = vld [vmem:[#allocation7 + $0x154] sm:$0xf0] }
 0x284   :  { %629 = vmatmul.bf16.vlgmr.msrb.gmra.mxu0 %v508_v49 }
 0x287   :  { %1007 = vmatpush.bf16.msra.mxu0 %v2568_v40 }
 0x28b   :  { %1008 = vmatpush.bf16.msra.mxu0 %v2567_v50 }
 0x28f   :  { %1009 = vmatpush.bf16.msra.mxu0 %v2566_v58  ;;  %v2579_v58 = vld [vmem:[#allocation7 + $0x134] sm:$0xf] }
 0x301   :  { %v630_v61 = vpop.f32.mrf.mxu0 }
 0x302   :  { %v617_v62 = vpop.f32.mrf.mxu3 }
 0x303   :  { %v618_v63 = vadd.f32 %v2662_v42, %v617_v62 }
 0x305   :  { %v631_v0 = vadd.f32 %v630_v61, %v618_v63 }
 0x307   :  { %v3063_v1 = vadd.f32 %v631_v0, %v2998_v23  ;;  %v2562_v23 = vld [vmem:[#allocation10 + $0xa8] sm:$0xff]  ;;  %v2565_v0 = vld [vmem:[#allocation10 + $0xc0] sm:$0xff] }
 0x308   :  { %992 = vmatpush.bf16.msrb.mxu3 %v2562_v23  ;;  %1010 = vmatpush.bf16.msra.mxu0 %v2565_v0  ;;  %v2268_v23 = vld [vmem:[#allocation7 + $0x178] sm:$0xf0] }
 0x309   :  { %v632_v2 = vpop.f32.mrf.mxu0  ;;  %v689_v3 = vpack.c.bf16 %v3063_v1, %v3063_v1 }
 0x30a   :  { %v619_v4 = vpop.f32.mrf.mxu3 }
 0x30b   :  { %783 = vmatmul.bf16.vlgmr.msrb.gmra.mxu1 %v689_v3  ;;  %796 = vmatmul.bf16.vlgmr.msrb.gmra.mxu2 %v689_v3 }
 0x30c   :  { %993 = vmatpush.bf16.msrb.mxu3 %v2561_v15  ;;  %v2585_v15 = vld [vmem:[#allocation7 + $0x164] sm:$0xf] }
 0x310   :  { %994 = vmatpush.bf16.msrb.mxu3 %v2560_v22 }
 0x314   :  { %995 = vmatpush.bf16.msrb.mxu3 %v2559_v32 }
 0x318   :  { %996 = vmatpush.bf16.msrb.mxu3 %v2558_v39 }
 0x31c   :  { %997 = vmatpush.bf16.msrb.mxu3 %v2557_v33 }
 0x388   :  { %v784_v10 = vpop.f32.mrf.mxu1 }
 0x389   :  { %v3067_v54 = vadd.f32 %v784_v10, %v691_v7  ;;  %v2588_v7 = vld [vmem:[#allocation7 + $0x174] sm:$0xf0]  ;;  %v2587_v10 = vld [vmem:[#allocation7 + $0x174] sm:$0xf] }
 0x38a   :  { %v2267_v9 = vor.u32 %v2588_v7, %v2266_v6  ;;  %v2577_v6 = vld [vmem:[#allocation7 + $0x124] sm:$0xf]  ;;  %v2228_v7 = vld [vmem:[#allocation7 + $0x128] sm:$0xf0] }
 0x38b   :  { %v3070_v11 = vmul.f32 0.70710677, %v3067_v54 }
 0x38c   :  { %1157 = vmatpush.bf16.msra.mxu1 %v2267_v9  ;;  %v801_v9 = vmul.f32 0.5, %v3067_v54 }
 0x38d   :  { %v805_v14 = vmul.f32 %v3070_v11, %v3070_v11 }
 0x38e   :  { %v797_v16 = vpop.f32.mrf.mxu2 }
 0x38f   :  { %v3074_v17 = vmin.f32 %v805_v14, 16.0  ;;  %v3076_v18 = vadd.f32 %v797_v16, %v692_v12  ;;  %v2271_v12 = vor.u32 %v2587_v10, %v2268_v23  ;;  %v2586_v14 = vld [vmem:[#allocation7 + $0x164] sm:$0xf0] }
 0x390   :  { %v786_v35 = vpop.f32.mrf.mxu1 }
 0x391   :  { %v807_v20 = vmul.f32 2.1237322e-06, %v3074_v17  ;;  %v818_v21 = vmul.f32 3.8918573e-05, %v3074_v17  ;;  %v3081_v24 = vmul.f32 0.70710677, %v3076_v18  ;;  %1170 = vmatpush.bf16.msra.mxu2 %v2271_v12 }
 0x392   :  { %v802_v54 = vmul.f32 0.5, %v3076_v18  ;;  %v2663_v18 = vld [vmem:[%s3251_s8 + $0x1] ss:$0 sm:$0xff] }
 0x393   :  { %v808_v25 = vadd.f32 0.00028619796, %v807_v20  ;;  %v819_v27 = vadd.f32 0.001143296, %v818_v21  ;;  %v845_v30 = vmul.f32 %v3081_v24, %v3081_v24  ;;  %v2259_v20 = vor.u32 %v2586_v14, %v2258_v13  ;;  %v2260_v21 = vld [vmem:[#allocation7 + $0x168] sm:$0xf0] }
 0x395   :  { %v809_v31 = vmul.f32 %v808_v25, %v3074_v17  ;;  %v820_v29 = vmul.f32 %v819_v27, %v3074_v17  ;;  %v3087_v34 = vmin.f32 %v845_v30, 16.0  ;;  %v2263_v25 = vor.u32 %v2585_v15, %v2260_v21  ;;  %v2250_v27 = vld [vmem:[#allocation7 + $0x150] sm:$0xf]  ;;  %1158 = vmatpush.bf16.msra.mxu1 %v2259_v20 }
 0x396   :  { %v799_v36 = vpop.f32.mrf.mxu2  ;;  %v2231_v15 = vor.u32 %v2577_v6, %v2228_v7  ;;  %v2601_v7 = vld [vmem:[#allocation10 + $0x160] sm:$0xff] }
 0x397   :  { %v810_v37 = vadd.f32 0.0036580483, %v809_v31  ;;  %v821_v38 = vadd.f32 0.014752088, %v820_v29  ;;  %v847_v43 = vmul.f32 2.1237322e-06, %v3087_v34  ;;  %1171 = vmatpush.bf16.msra.mxu2 %v2263_v25 }
 0x398   :  { %v858_v44 = vmul.f32 3.8918573e-05, %v3087_v34  ;;  %v2583_v31 = vld [vmem:[#allocation7 + $0x154] sm:$0xf]  ;;  %v2252_v29 = vld [vmem:[#allocation7 + $0x158] sm:$0xf0] }
 0x399   :  { %v822_v45 = vmul.f32 %v821_v38, %v3074_v17  ;;  %v811_v46 = vmul.f32 %v810_v37, %v3074_v17  ;;  %v848_v47 = vadd.f32 0.00028619796, %v847_v43  ;;  %v2251_v37 = vor.u32 %v2584_v28, %v2250_v27  ;;  %v2242_v43 = vld [vmem:[#allocation7 + $0x140] sm:$0xf]  ;;  %v2218_v28 = vld [vmem:[#allocation7 + $0x110] sm:$0xf] }
 0x39a   :  { %v859_v48 = vadd.f32 0.001143296, %v858_v44  ;;  %v2255_v40 = vor.u32 %v2583_v31, %v2252_v29  ;;  %v2582_v44 = vld [vmem:[#allocation7 + $0x144] sm:$0xf0]  ;;  %v2220_v29 = vld [vmem:[#allocation7 + $0x118] sm:$0xf0] }
 0x39b   :  { %v823_v49 = vadd.f32 0.112945676, %v822_v45  ;;  %v849_v51 = vmul.f32 %v848_v47, %v3087_v34  ;;  %v812_v55 = vadd.f32 0.05243302, %v811_v46  ;;  %v2581_v46 = vld [vmem:[#allocation7 + $0x144] sm:$0xf]  ;;  %1159 = vmatpush.bf16.msra.mxu1 %v2251_v37 }
 0x39c   :  { %v860_v52 = vmul.f32 %v859_v48, %v3087_v34  ;;  %v2244_v47 = vld [vmem:[#allocation7 + $0x148] sm:$0xf0]  ;;  %1172 = vmatpush.bf16.msra.mxu2 %v2255_v40  ;;  %v2573_v37 = vld [vmem:[#allocation7 + $0x104] sm:$0xf] }
 0x39d   :  { %v824_v53 = vmul.f32 %v823_v49, %v3074_v17  ;;  %v850_v56 = vadd.f32 0.0036580483, %v849_v51  ;;  %v813_v42 = vmul.f32 %v812_v55, %v3074_v17  ;;  %v2243_v51 = vor.u32 %v2582_v44, %v2242_v43  ;;  %v2234_v55 = vld [vmem:[#allocation7 + $0x130] sm:$0xf]  ;;  %v2212_v40 = vld [vmem:[#allocation7 + $0x108] sm:$0xf0] }
 0x39e   :  { %v861_v57 = vadd.f32 0.014752088, %v860_v52  ;;  %v2247_v33 = vor.u32 %v2581_v46, %v2244_v47  ;;  %v2215_v43 = vor.u32 %v2573_v37, %v2212_v40 }
 0x39f   :  { %v825_v41 = vadd.f32 0.4994258, %v824_v53  ;;  %v851_v61 = vmul.f32 %v850_v56, %v3087_v34  ;;  %v814_v3 = vadd.f32 0.18741608, %v813_v42  ;;  %v2580_v56 = vld [vmem:[#allocation7 + $0x134] sm:$0xf0]  ;;  %1160 = vmatpush.bf16.msra.mxu1 %v2243_v51 }
 0x3a0   :  { %v862_v59 = vmul.f32 %v861_v57, %v3087_v34  ;;  %1173 = vmatpush.bf16.msra.mxu2 %v2247_v33  ;;  %v2596_v51 = vld [vmem:[#allocation10 + $0x138] sm:$0xff]  ;;  %v2595_v33 = vld [vmem:[#allocation10 + $0x130] sm:$0xff] }
 0x3a1   :  { %v826_v60 = vmul.f32 %v825_v41, %v3074_v17  ;;  %v852_v4 = vadd.f32 0.05243302, %v851_v61  ;;  %v815_v16 = vmul.f32 %v814_v3, %v3074_v17  ;;  %1372 = vmatpush.bf16.msra.mxu3 %v2596_v51 }
 0x3a2   :  { %v863_v62 = vadd.f32 0.112945676, %v862_v59  ;;  %v2236_v59 = vld [vmem:[#allocation7 + $0x138] sm:$0xf0] }
 0x3a3   :  { %v3100_v63 = vadd.f32 1.0, %v826_v60  ;;  %v853_v19 = vmul.f32 %v852_v4, %v3087_v34  ;;  %v816_v32 = vadd.f32 1.1283791, %v815_v16  ;;  %v2239_v3 = vor.u32 %v2579_v58, %v2236_v59  ;;  %v2226_v4 = vld [vmem:[#allocation7 + $0x120] sm:$0xf]  ;;  %v2603_v59 = vld [vmem:[#allocation10 + $0x170] sm:$0xff] }
 0x3a4   :  { %v864_v2 = vmul.f32 %v863_v62, %v3087_v34 }
 0x3a5   :  { %2677 = vrcp.f32 %v3100_v63  ;;  %v854_v36 = vadd.f32 0.18741608, %v853_v19  ;;  %v839_v38 = vand.u32 2147483648, %v3100_v63  ;;  %v837_v39 = vand.u32 2147483647, %v3100_v63  ;;  %1174 = vmatpush.bf16.msra.mxu2 %v2239_v3  ;;  %1373 = vmatpush.bf16.msra.mxu3 %v2595_v33 }
 0x3a6   :  { %v865_v5 = vadd.f32 0.4994258, %v864_v2  ;;  %vm833_vm13 = vweird.f32 %v3100_v63  ;;  %v817_v57 = vmul.f32 %v816_v32, %v3070_v11  ;;  %v2578_v11 = vld [vmem:[#allocation7 + $0x124] sm:$0xf0] }
 0x3a7   :  { %v855_v50 = vmul.f32 %v854_v36, %v3087_v34  ;;  %v840_v52 = vor.u32 1.1754944e-38, %v839_v38  ;;  %vm838_vm15 = vcmp.eq.f32.partialorder %v837_v39, 8.507059e+37  ;;  %v2227_v12 = vor.u32 %v2578_v11, %v2226_v4  ;;  %v2574_v36 = vld [vmem:[#allocation7 + $0x104] sm:$0xf0]  ;;  %v2592_v4 = vld [vmem:[#allocation10 + $0x118] sm:$0xff] }
 0x3a8   :  { %v866_v8 = vmul.f32 %v865_v5, %v3087_v34 }
 0x3a9   :  { %v856_v34 = vadd.f32 1.1283791, %v855_v50  ;;  %1175 = vmatpush.bf16.msra.mxu2 %v2231_v15 }
 0x3aa   :  { %v3107_v35 = vadd.f32 1.0, %v866_v8 }
 0x3ab   :  { %v2678_v22 = vpop.eup %2677  ;;  %v857_v13 = vmul.f32 %v856_v34, %v3081_v24  ;;  %v2576_v24 = vld [vmem:[#allocation7 + $0x114] sm:$0xf0] }
 0x3ac   :  { %v829_v30 = vmul.f32 %v2678_v22, %v3100_v63  ;;  %2679 = vrcp.f32 %v3107_v35  ;;  %vm834_vm12 = vweird.f32 %v2678_v22  ;;  %v879_v62 = vand.u32 2147483648, %v3107_v35 }
 0x3ad   :  { %vm835_vm14 = vmor %vm833_vm13, %vm834_vm12  ;;  %v2235_v63 = vor.u32 %v2580_v56, %v2234_v55  ;;  %v877_v2 = vand.u32 2147483647, %v3107_v35  ;;  %vm873_vm1 = vweird.f32 %v3107_v35  ;;  %v2219_v31 = vor.u32 %v2576_v24, %v2218_v28  ;;  %v2604_v55 = vld [vmem:[#allocation10 + $0x178] sm:$0xff]  ;;  %v2599_v28 = vld [vmem:[#allocation10 + $0x150] sm:$0xff] }
 0x3ae   :  { %v830_v17 = vsub.f32 1.0, %v829_v30  ;;  %v880_v10 = vor.u32 1.1754944e-38, %v879_v62  ;;  %v2575_v30 = vld [vmem:[#allocation7 + $0x114] sm:$0xf]  ;;  %1385 = vmatpush.bf16.msrb.mxu0 %v2604_v55 }
 0x3af   :  { %1161 = vmatpush.bf16.msra.mxu1 %v2235_v63  ;;  %vm878_vm3 = vcmp.eq.f32.partialorder %v877_v2, 8.507059e+37  ;;  %v2223_v32 = vor.u32 %v2575_v30, %v2220_v29  ;;  %v2602_v63 = vld [vmem:[#allocation10 + $0x168] sm:$0xff]  ;;  %v2589_v29 = vld [vmem:[#allocation10 + $0x100] sm:$0xff] }
 0x3b0   :  { %v831_v45 = vmul.f32 %v2678_v22, %v830_v17  ;;  %v2210_v17 = vld [vmem:[#allocation7 + $0x100] sm:$0xf] }
 0x3b1   :  { %1176 = vmatpush.bf16.msra.mxu2 %v2223_v32  ;;  %v2211_v38 = vor.u32 %v2574_v36, %v2210_v17 }
 0x3b2   :  { %v2680_v48 = vpop.eup %2679  ;;  %v832_v49 = vadd.f32 %v2678_v22, %v831_v45  ;;  %1386 = vmatpush.bf16.msrb.mxu0 %v2603_v59  ;;  %v2389_v59 = vld [vmem:[#allocation7 + $0x1e0] sm:$0xf] }
 0x3b3   :  { %v869_v53 = vmul.f32 %v2680_v48, %v3107_v35  ;;  %vm874_vm0 = vweird.f32 %v2680_v48  ;;  %1162 = vmatpush.bf16.msra.mxu1 %v2227_v12 }
 0x3b4   :  { %v836_v41 = vsel %vm835_vm14, %v2678_v22, %v832_v49  ;;  %vm875_vm2 = vmor %vm873_vm1, %vm874_vm0 }
 0x3b5   :  { %v841_v60 = vsel %vm838_vm15, %v840_v52, %v836_v41  ;;  %v870_v42 = vsub.f32 1.0, %v869_v53  ;;  %1177 = vmatpush.bf16.msra.mxu2 %v2215_v43  ;;  %v1035_v52 = vld [vmem:[#allocation8 + $0x4] sm:$0x3] }
 0x3b6   :  { %v842_v61 = vmul.f32 %v841_v60, %v817_v57  ;;  %v1073_v53 = vperm.slane %v1035_v52, 0  ;;  %v1074_v58 = vperm.slane %v1035_v52, 1  ;;  %1387 = vmatpush.bf16.msrb.mxu0 %v2602_v63  ;;  %v2397_v52 = vld [vmem:[#allocation7 + $0x1f0] sm:$0xf] }
 0x3b7   :  { %v871_v0 = vmul.f32 %v2680_v48, %v870_v42  ;;  %1163 = vmatpush.bf16.msra.mxu1 %v2219_v31  ;;  %v2593_v42 = vld [vmem:[#allocation10 + $0x120] sm:$0xff] }
 0x3b8   :  { %v2141_v5 = vclamps-f32 %v842_v61, 1.0 }
 0x3b9   :  { %v872_v8 = vadd.f32 %v2680_v48, %v871_v0 }
 0x3ba   :  { %v885_v23 = vadd.f32 1.0, %v2141_v5  ;;  %1388 = vmatpush.bf16.msrb.mxu0 %v2601_v7  ;;  %v2616_v7 = vld [vmem:[#allocation7 + $0x1d4] sm:$0xf0] }
 0x3bb   :  { %v876_v14 = vsel %vm875_vm2, %v2680_v48, %v872_v8  ;;  %1164 = vmatpush.bf16.msra.mxu1 %v2211_v38  ;;  %v2598_v38 = vld [vmem:[#allocation10 + $0x148] sm:$0xff] }
 0x3bc   :  { %v881_v16 = vsel %vm878_vm3, %v880_v10, %v876_v14  ;;  %v887_v19 = vmul.f32 %v885_v23, %v801_v9  ;;  %v2591_v23 = vld [vmem:[#allocation10 + $0x110] sm:$0xff] }
 0x3bd   :  { %v882_v20 = vmul.f32 %v881_v16, %v857_v13  ;;  %v2600_v16 = vld [vmem:[#allocation10 + $0x158] sm:$0xff] }
 0x3be   :  { %v889_v21 = vpack.c.bf16 %v887_v19, %v887_v19  ;;  %1389 = vmatpush.bf16.msrb.mxu0 %v2600_v16 }
 0x3bf   :  { %v2142_v22 = vclamps-f32 %v882_v20, 1.0 }
 0x3c0   :  { %998 = vmatmul.bf16.vlgmr.msrb.gmra.mxu3 %v889_v21 }
 0x3c1   :  { %v886_v35 = vadd.f32 1.0, %v2142_v22  ;;  %v2590_v22 = vld [vmem:[#allocation10 + $0x108] sm:$0xff] }
 0x3c2   :  { %1390 = vmatpush.bf16.msrb.mxu0 %v2599_v28 }
 0x3c3   :  { %v888_v25 = vmul.f32 %v886_v35, %v802_v54 }
 0x3c5   :  { %v890_v27 = vpack.c.bf16 %v888_v25, %v888_v25 }
 0x3c6   :  { %1391 = vmatpush.bf16.msrb.mxu0 %v2598_v38  ;;  %v2611_v38 = vld [vmem:[#allocation7 + $0x1b4] sm:$0xf] }
 0x3c7   :  { %1011 = vmatmul.bf16.vlgmr.msra.gmra.mxu0 %v890_v27 }
 0x443   :  { %v999_v44 = vpop.f32.mrf.mxu3 }
 0x444   :  { %v1000_v45 = vadd.f32 %v2663_v18, %v999_v44  ;;  %v1012_v39 = vpop.f32.mrf.mxu0 }
 0x446   :  { %v1013_v46 = vadd.f32 %v1012_v39, %v1000_v45 }
 0x448   :  { %v3127_v47 = vadd.f32 %v1013_v46, %v3063_v1  ;;  %v2594_v1 = vld [vmem:[#allocation10 + $0x128] sm:$0xff]  ;;  %v2597_v46 = vld [vmem:[#allocation10 + $0x140] sm:$0xff] }
 0x449   :  { %1374 = vmatpush.bf16.msra.mxu3 %v2594_v1  ;;  %1392 = vmatpush.bf16.msrb.mxu0 %v2597_v46  ;;  %v2399_v1 = vld [vmem:[#allocation7 + $0x1f8] sm:$0xf0] }
 0x44a   :  { %v1071_v48 = vpack.c.bf16 %v3127_v47, %v3127_v47 }
 0x44b   :  { %v1001_v49 = vpop.f32.mrf.mxu3 }
 0x44c   :  { %v1014_v50 = vpop.f32.mrf.mxu0  ;;  %1165 = vmatmul.bf16.vlgmr.msra.gmra.mxu1 %v1071_v48  ;;  %1178 = vmatmul.bf16.vlgmr.msra.gmra.mxu2 %v1071_v48 }
 0x44d   :  { %1375 = vmatpush.bf16.msra.mxu3 %v2593_v42  ;;  %v2617_v42 = vld [vmem:[#allocation7 + $0x1e4] sm:$0xf] }
 0x451   :  { %1376 = vmatpush.bf16.msra.mxu3 %v2592_v4 }
 0x455   :  { %1377 = vmatpush.bf16.msra.mxu3 %v2591_v23 }
 0x459   :  { %1378 = vmatpush.bf16.msra.mxu3 %v2590_v22 }
 0x45d   :  { %1379 = vmatpush.bf16.msra.mxu3 %v2589_v29 }
 0x4c9   :  { %v1166_v56 = vpop.f32.mrf.mxu1 }
 0x4ca   :  { %v3131_v57 = vadd.f32 %v1166_v56, %v1073_v53  ;;  %v2620_v53 = vld [vmem:[#allocation7 + $0x1f4] sm:$0xf0]  ;;  %v2619_v56 = vld [vmem:[#allocation7 + $0x1f4] sm:$0xf] }
 0x4cb   :  { %v2398_v55 = vor.u32 %v2620_v53, %v2397_v52  ;;  %v2609_v52 = vld [vmem:[#allocation7 + $0x1a4] sm:$0xf]  ;;  %v2359_v53 = vld [vmem:[#allocation7 + $0x1a8] sm:$0xf0] }
 0x4cc   :  { %v3134_v41 = vmul.f32 0.70710677, %v3131_v57 }
 0x4cd   :  { %1539 = vmatpush.bf16.msrb.mxu1 %v2398_v55  ;;  %v1183_v55 = vmul.f32 0.5, %v3131_v57 }
 0x4ce   :  { %v1187_v60 = vmul.f32 %v3134_v41, %v3134_v41 }
 0x4cf   :  { %v1179_v61 = vpop.f32.mrf.mxu2 }
 0x4d0   :  { %v3138_v34 = vmin.f32 %v1187_v60, 16.0  ;;  %v3140_v62 = vadd.f32 %v1179_v61, %v1074_v58  ;;  %v2402_v58 = vor.u32 %v2619_v56, %v2399_v1  ;;  %v2618_v60 = vld [vmem:[#allocation7 + $0x1e4] sm:$0xf0] }
 0x4d1   :  { %v1168_v0 = vpop.f32.mrf.mxu1 }
 0x4d2   :  { %v1189_v2 = vmul.f32 2.1237322e-06, %v3138_v34  ;;  %v1200_v3 = vmul.f32 3.8918573e-05, %v3138_v34  ;;  %v3145_v11 = vmul.f32 0.70710677, %v3140_v62  ;;  %1552 = vmatpush.bf16.msrb.mxu2 %v2402_v58 }
 0x4d3   :  { %v1184_v57 = vmul.f32 0.5, %v3140_v62  ;;  %v2664_v62 = vld [vmem:[%s3251_s8 + $0x2] ss:$0 sm:$0xff] }
 0x4d4   :  { %v1190_v5 = vadd.f32 0.00028619796, %v1189_v2  ;;  %v1201_v6 = vadd.f32 0.001143296, %v1200_v3  ;;  %v1227_v8 = vmul.f32 %v3145_v11, %v3145_v11  ;;  %v2390_v2 = vor.u32 %v2618_v60, %v2389_v59  ;;  %v2391_v3 = vld [vmem:[#allocation7 + $0x1e8] sm:$0xf0] }
 0x4d6   :  { %v1191_v9 = vmul.f32 %v1190_v5, %v3138_v34  ;;  %v1202_v10 = vmul.f32 %v1201_v6, %v3138_v34  ;;  %v3151_v12 = vmin.f32 %v1227_v8, 16.0  ;;  %v2394_v5 = vor.u32 %v2617_v42, %v2391_v3  ;;  %v2381_v6 = vld [vmem:[#allocation7 + $0x1d0] sm:$0xf]  ;;  %1540 = vmatpush.bf16.msrb.mxu1 %v2390_v2 }
 0x4d7   :  { %v1181_v13 = vpop.f32.mrf.mxu2  ;;  %v2362_v42 = vor.u32 %v2609_v52, %v2359_v53  ;;  %v2633_v53 = vld [vmem:[#allocation10 + $0x1e0] sm:$0xff] }
 0x4d8   :  { %v1192_v14 = vadd.f32 0.0036580483, %v1191_v9  ;;  %v1203_v15 = vadd.f32 0.014752088, %v1202_v10  ;;  %v1229_v19 = vmul.f32 2.1237322e-06, %v3151_v12  ;;  %1553 = vmatpush.bf16.msrb.mxu2 %v2394_v5 }
 0x4d9   :  { %v1240_v20 = vmul.f32 3.8918573e-05, %v3151_v12  ;;  %v2615_v9 = vld [vmem:[#allocation7 + $0x1d4] sm:$0xf]  ;;  %v2383_v10 = vld [vmem:[#allocation7 + $0x1d8] sm:$0xf0] }
 0x4da   :  { %v1204_v21 = vmul.f32 %v1203_v15, %v3138_v34  ;;  %v1193_v54 = vmul.f32 %v1192_v14, %v3138_v34  ;;  %v1230_v35 = vadd.f32 0.00028619796, %v1229_v19  ;;  %v2382_v14 = vor.u32 %v2616_v7, %v2381_v6  ;;  %v2373_v19 = vld [vmem:[#allocation7 + $0x1c0] sm:$0xf]  ;;  %v2349_v7 = vld [vmem:[#allocation7 + $0x190] sm:$0xf] }
 0x4db   :  { %v1241_v25 = vadd.f32 0.001143296, %v1240_v20  ;;  %v2386_v16 = vor.u32 %v2615_v9, %v2383_v10  ;;  %v2614_v20 = vld [vmem:[#allocation7 + $0x1c4] sm:$0xf0]  ;;  %v2351_v10 = vld [vmem:[#allocation7 + $0x198] sm:$0xf0] }
 0x4dc   :  { %v1205_v27 = vadd.f32 0.112945676, %v1204_v21  ;;  %v1231_v24 = vmul.f32 %v1230_v35, %v3151_v12  ;;  %v1194_v32 = vadd.f32 0.05243302, %v1193_v54  ;;  %v2613_v54 = vld [vmem:[#allocation7 + $0x1c4] sm:$0xf]  ;;  %1541 = vmatpush.bf16.msrb.mxu1 %v2382_v14 }
 0x4dd   :  { %v1242_v30 = vmul.f32 %v1241_v25, %v3151_v12  ;;  %v2375_v35 = vld [vmem:[#allocation7 + $0x1c8] sm:$0xf0]  ;;  %1554 = vmatpush.bf16.msrb.mxu2 %v2386_v16  ;;  %v2605_v14 = vld [vmem:[#allocation7 + $0x184] sm:$0xf] }
 0x4de   :  { %v1206_v31 = vmul.f32 %v1205_v27, %v3138_v34  ;;  %v1232_v17 = vadd.f32 0.0036580483, %v1231_v24  ;;  %v1195_v18 = vmul.f32 %v1194_v32, %v3138_v34  ;;  %v2374_v24 = vor.u32 %v2614_v20, %v2373_v19  ;;  %v2365_v32 = vld [vmem:[#allocation7 + $0x1b0] sm:$0xf]  ;;  %v2343_v16 = vld [vmem:[#allocation7 + $0x188] sm:$0xf0] }
 0x4df   :  { %v1243_v36 = vadd.f32 0.014752088, %v1242_v30  ;;  %v2378_v29 = vor.u32 %v2613_v54, %v2375_v35  ;;  %v2346_v19 = vor.u32 %v2605_v14, %v2343_v16  ;;  %v2630_v14 = vld [vmem:[#allocation10 + $0x1c8] sm:$0xff] }
 0x4e0   :  { %v1207_v37 = vadd.f32 0.4994258, %v1206_v31  ;;  %v1233_v44 = vmul.f32 %v1232_v17, %v3151_v12  ;;  %v1196_v49 = vadd.f32 0.18741608, %v1195_v18  ;;  %v2612_v17 = vld [vmem:[#allocation7 + $0x1b4] sm:$0xf0]  ;;  %1542 = vmatpush.bf16.msrb.mxu1 %v2374_v24 }
 0x4e1   :  { %v1244_v40 = vmul.f32 %v1243_v36, %v3151_v12  ;;  %1555 = vmatpush.bf16.msrb.mxu2 %v2378_v29  ;;  %v2628_v24 = vld [vmem:[#allocation10 + $0x1b8] sm:$0xff]  ;;  %v2627_v29 = vld [vmem:[#allocation10 + $0x1b0] sm:$0xff] }
 0x4e2   :  { %v1208_v43 = vmul.f32 %v1207_v37, %v3138_v34  ;;  %v1234_v50 = vadd.f32 0.05243302, %v1233_v44  ;;  %v1197_v61 = vmul.f32 %v1196_v49, %v3138_v34  ;;  %1754 = vmatpush.bf16.msrb.mxu3 %v2628_v24 }
 0x4e3   :  { %v1245_v45 = vadd.f32 0.112945676, %v1244_v40  ;;  %v2367_v40 = vld [vmem:[#allocation7 + $0x1b8] sm:$0xf0] }
 0x4e4   :  { %v3164_v39 = vadd.f32 1.0, %v1208_v43  ;;  %v1235_v63 = vmul.f32 %v1234_v50, %v3151_v12  ;;  %v1198_v23 = vadd.f32 1.1283791, %v1197_v61  ;;  %v2370_v49 = vor.u32 %v2611_v38, %v2367_v40  ;;  %v2357_v50 = vld [vmem:[#allocation7 + $0x1a0] sm:$0xf]  ;;  %v2635_v40 = vld [vmem:[#allocation10 + $0x1f0] sm:$0xff] }
 0x4e5   :  { %v1246_v48 = vmul.f32 %v1245_v45, %v3151_v12 }
 0x4e6   :  { %2681 = vrcp.f32 %v3164_v39  ;;  %v1236_v13 = vadd.f32 0.18741608, %v1235_v63  ;;  %v1221_v15 = vand.u32 2147483648, %v3164_v39  ;;  %v1219_v22 = vand.u32 2147483647, %v3164_v39  ;;  %1556 = vmatpush.bf16.msrb.mxu2 %v2370_v49  ;;  %1755 = vmatpush.bf16.msrb.mxu3 %v2627_v29 }
 0x4e7   :  { %v1247_v51 = vadd.f32 0.4994258, %v1246_v48  ;;  %vm1215_vm5 = vweird.f32 %v3164_v39  ;;  %v1199_v36 = vmul.f32 %v1198_v23, %v3134_v41  ;;  %v2610_v41 = vld [vmem:[#allocation7 + $0x1a4] sm:$0xf0] }
 0x4e8   :  { %v1237_v28 = vmul.f32 %v1236_v13, %v3151_v12  ;;  %v1222_v30 = vor.u32 1.1754944e-38, %v1221_v15  ;;  %vm1220_vm7 = vcmp.eq.f32.partialorder %v1219_v22, 8.507059e+37  ;;  %v2358_v58 = vor.u32 %v2610_v41, %v2357_v50  ;;  %v2606_v13 = vld [vmem:[#allocation7 + $0x184] sm:$0xf0]  ;;  %v2624_v50 = vld [vmem:[#allocation10 + $0x198] sm:$0xff] }
 0x4e9   :  { %v1248_v33 = vmul.f32 %v1247_v51, %v3151_v12 }
 0x4ea   :  { %v1238_v12 = vadd.f32 1.1283791, %v1237_v28  ;;  %1557 = vmatpush.bf16.msrb.mxu2 %v2362_v42  ;;  %v2632_v42 = vld [vmem:[#allocation10 + $0x1d8] sm:$0xff] }
 0x4eb   :  { %v3171_v0 = vadd.f32 1.0, %v1248_v33 }
 0x4ec   :  { %v2682_v4 = vpop.eup %2681  ;;  %v1239_v59 = vmul.f32 %v1238_v12, %v3145_v11  ;;  %v2608_v11 = vld [vmem:[#allocation7 + $0x194] sm:$0xf0] }
 0x4ed   :  { %v1211_v8 = vmul.f32 %v2682_v4, %v3164_v39  ;;  %2683 = vrcp.f32 %v3171_v0  ;;  %vm1216_vm4 = vweird.f32 %v2682_v4  ;;  %v1261_v45 = vand.u32 2147483648, %v3171_v0 }
 0x4ee   :  { %vm1217_vm6 = vmor %vm1215_vm5, %vm1216_vm4  ;;  %v2366_v39 = vor.u32 %v2612_v17, %v2365_v32  ;;  %v1259_v48 = vand.u32 2147483647, %v3171_v0  ;;  %vm1255_vm9 = vweird.f32 %v3171_v0  ;;  %v2350_v9 = vor.u32 %v2608_v11, %v2349_v7  ;;  %v2636_v32 = vld [vmem:[#allocation10 + $0x1f8] sm:$0xff] }
 0x4ef   :  { %v1212_v34 = vsub.f32 1.0, %v1211_v8  ;;  %v1262_v1 = vor.u32 1.1754944e-38, %v1261_v45  ;;  %v2607_v8 = vld [vmem:[#allocation7 + $0x194] sm:$0xf]  ;;  %1767 = vmatpush.bf16.msra.mxu0 %v2636_v32 }
 0x4f0   :  { %1543 = vmatpush.bf16.msrb.mxu1 %v2366_v39  ;;  %vm1260_vm11 = vcmp.eq.f32.partialorder %v1259_v48, 8.507059e+37  ;;  %v2354_v23 = vor.u32 %v2607_v8, %v2351_v10  ;;  %v2634_v39 = vld [vmem:[#allocation10 + $0x1e8] sm:$0xff]  ;;  %v2621_v10 = vld [vmem:[#allocation10 + $0x180] sm:$0xff] }
 0x4f1   :  { %v1213_v21 = vmul.f32 %v2682_v4, %v1212_v34  ;;  %v2341_v34 = vld [vmem:[#allocation7 + $0x180] sm:$0xf] }
 0x4f2   :  { %1558 = vmatpush.bf16.msrb.mxu2 %v2354_v23  ;;  %v2342_v15 = vor.u32 %v2606_v13, %v2341_v34 }
 0x4f3   :  { %v2684_v25 = vpop.eup %2683  ;;  %v1214_v27 = vadd.f32 %v2682_v4, %v1213_v21  ;;  %1768 = vmatpush.bf16.msra.mxu0 %v2635_v40 }
 0x4f4   :  { %v1251_v31 = vmul.f32 %v2684_v25, %v3171_v0  ;;  %vm1256_vm8 = vweird.f32 %v2684_v25  ;;  %1544 = vmatpush.bf16.msrb.mxu1 %v2358_v58 }
 0x4f5   :  { %v1218_v37 = vsel %vm1217_vm6, %v2682_v4, %v1214_v27  ;;  %vm1257_vm10 = vmor %vm1255_vm9, %vm1256_vm8 }
 0x4f6   :  { %v1223_v43 = vsel %vm1220_vm7, %v1222_v30, %v1218_v37  ;;  %v1252_v18 = vsub.f32 1.0, %v1251_v31  ;;  %1559 = vmatpush.bf16.msrb.mxu2 %v2346_v19  ;;  %v1417_v30 = vld [vmem:[#allocation8 + $0x6] sm:$0x3] }
 0x4f7   :  { %v1224_v44 = vmul.f32 %v1223_v43, %v1199_v36  ;;  %v1455_v31 = vperm.slane %v1417_v30, 0  ;;  %v1456_v38 = vperm.slane %v1417_v30, 1  ;;  %1769 = vmatpush.bf16.msra.mxu0 %v2634_v39 }
 0x4f8   :  { %v1253_v46 = vmul.f32 %v2684_v25, %v1252_v18  ;;  %1545 = vmatpush.bf16.msrb.mxu1 %v2350_v9  ;;  %v2625_v18 = vld [vmem:[#allocation10 + $0x1a0] sm:$0xff] }
 0x4f9   :  { %v2272_v51 = vclamps-f32 %v1224_v44, 1.0 }
 0x4fa   :  { %v1254_v33 = vadd.f32 %v2684_v25, %v1253_v46 }
 0x4fb   :  { %v1267_v56 = vadd.f32 1.0, %v2272_v51  ;;  %1770 = vmatpush.bf16.msra.mxu0 %v2633_v53 }
 0x4fc   :  { %v1258_v60 = vsel %vm1257_vm10, %v2684_v25, %v1254_v33  ;;  %1546 = vmatpush.bf16.msrb.mxu1 %v2342_v15 }
 0x4fd   :  { %v1269_v61 = vmul.f32 %v1267_v56, %v1183_v55  ;;  %v1263_v63 = vsel %vm1260_vm11, %v1262_v1, %v1258_v60  ;;  %v2623_v1 = vld [vmem:[#allocation10 + $0x190] sm:$0xff] }
 0x4fe   :  { %v1264_v2 = vmul.f32 %v1263_v63, %v1239_v59 }
 0x4ff   :  { %v1271_v3 = vpack.c.bf16 %v1269_v61, %v1269_v61  ;;  %1771 = vmatpush.bf16.msra.mxu0 %v2632_v42 }
 0x500   :  { %v2273_v4 = vclamps-f32 %v1264_v2, 1.0 }
 0x501   :  { %1380 = vmatmul.bf16.vlgmr.msra.gmra.mxu3 %v1271_v3 }
 0x502   :  { %v1268_v0 = vadd.f32 1.0, %v2273_v4  ;;  %v2622_v4 = vld [vmem:[#allocation10 + $0x188] sm:$0xff] }
 0x504   :  { %v1270_v5 = vmul.f32 %v1268_v0, %v1184_v57 }
 0x506   :  { %v1272_v6 = vpack.c.bf16 %v1270_v5, %v1270_v5 }
 0x508   :  { %1393 = vmatmul.bf16.vlgmr.msrb.gmra.mxu0 %v1272_v6  ;;  %v2631_v6 = vld [vmem:[#allocation10 + $0x1d0] sm:$0xff] }
 0x509   :  { %1772 = vmatpush.bf16.msra.mxu0 %v2631_v6 }
 0x50d   :  { %1773 = vmatpush.bf16.msra.mxu0 %v2630_v14 }
 0x584   :  { %v1381_v20 = vpop.f32.mrf.mxu3 }
 0x585   :  { %v1382_v21 = vadd.f32 %v2664_v62, %v1381_v20  ;;  %v1394_v22 = vpop.f32.mrf.mxu0 }
 0x587   :  { %v1395_v54 = vadd.f32 %v1394_v22, %v1382_v21  ;;  %v2629_v22 = vld [vmem:[#allocation10 + $0x1c0] sm:$0xff] }
 0x588   :  { %1774 = vmatpush.bf16.msra.mxu0 %v2629_v22  ;;  %v2642_v22 = vld [vmem:[#allocation11 + $0x28] sm:$0xff] }
 0x589   :  { %v3191_v35 = vadd.f32 %v1395_v54, %v3127_v47  ;;  %v2626_v47 = vld [vmem:[#allocation10 + $0x1a8] sm:$0xff] }
 0x58a   :  { %1756 = vmatpush.bf16.msrb.mxu3 %v2626_v47 }
 0x58b   :  { %v1453_v25 = vpack.c.bf16 %v3191_v35, %v3191_v35 }
 0x58c   :  { %v1383_v27 = vpop.f32.mrf.mxu3 }
 0x58d   :  { %v1396_v28 = vpop.f32.mrf.mxu0  ;;  %1547 = vmatmul.bf16.vlgmr.msrb.gmra.mxu1 %v1453_v25  ;;  %1560 = vmatmul.bf16.vlgmr.msrb.gmra.mxu2 %v1453_v25 }
 0x58e   :  { %1757 = vmatpush.bf16.msrb.mxu3 %v2625_v18 }
 0x592   :  { %1758 = vmatpush.bf16.msrb.mxu3 %v2624_v50 }
 0x596   :  { %1759 = vmatpush.bf16.msrb.mxu3 %v2623_v1 }
 0x59a   :  { %1760 = vmatpush.bf16.msrb.mxu3 %v2622_v4 }
 0x59e   :  { %1761 = vmatpush.bf16.msrb.mxu3 %v2621_v10 }
 0x60a   :  { %v1548_v17 = vpop.f32.mrf.mxu1 }
 0x60b   :  { %v3195_v36 = vadd.f32 %v1548_v17, %v1455_v31 }
 0x60d   :  { %v3198_v37 = vmul.f32 0.70710677, %v3195_v36 }
 0x60f   :  { %v1569_v43 = vmul.f32 %v3198_v37, %v3198_v37 }
 0x610   :  { %v1561_v44 = vpop.f32.mrf.mxu2 }
 0x611   :  { %v3202_v12 = vmin.f32 %v1569_v43, 16.0  ;;  %v3204_v45 = vadd.f32 %v1561_v44, %v1456_v38 }
 0x612   :  { %v1550_v46 = vpop.f32.mrf.mxu1 }
 0x613   :  { %v1571_v48 = vmul.f32 2.1237322e-06, %v3202_v12  ;;  %v1582_v49 = vmul.f32 3.8918573e-05, %v3202_v12  ;;  %v3209_v41 = vmul.f32 0.70710677, %v3204_v45 }
 0x615   :  { %v1572_v51 = vadd.f32 0.00028619796, %v1571_v48  ;;  %v1583_v52 = vadd.f32 0.001143296, %v1582_v49  ;;  %v1609_v33 = vmul.f32 %v3209_v41, %v3209_v41 }
 0x617   :  { %v1573_v55 = vmul.f32 %v1572_v51, %v3202_v12  ;;  %v1584_v56 = vmul.f32 %v1583_v52, %v3202_v12  ;;  %v1610_v58 = vmin.f32 %v1609_v33, 16.0 }
 0x618   :  { %v1563_v59 = vpop.f32.mrf.mxu2 }
 0x619   :  { %v1585_v60 = vadd.f32 0.014752088, %v1584_v56  ;;  %v1574_v61 = vadd.f32 0.0036580483, %v1573_v55  ;;  %v1611_v63 = vmul.f32 2.1237322e-06, %v1610_v58 }
 0x61a   :  { %v1622_v2 = vmul.f32 3.8918573e-05, %v1610_v58 }
 0x61b   :  { %v1586_v3 = vmul.f32 %v1585_v60, %v3202_v12  ;;  %v1612_v57 = vadd.f32 0.00028619796, %v1611_v63  ;;  %v1575_v7 = vmul.f32 %v1574_v61, %v3202_v12  ;;  %v1565_v63 = vmul.f32 0.5, %v3195_v36  ;;  %v2665_v36 = vld [vmem:[%s3251_s8 + $0x3] ss:$0 sm:$0xff] }
 0x61c   :  { %v1623_v0 = vadd.f32 0.001143296, %v1622_v2 }
 0x61d   :  { %v1587_v5 = vadd.f32 0.112945676, %v1586_v3  ;;  %v1613_v11 = vmul.f32 %v1612_v57, %v1610_v58  ;;  %v1576_v15 = vadd.f32 0.05243302, %v1575_v7  ;;  %v1566_v7 = vmul.f32 0.5, %v3204_v45 }
 0x61e   :  { %v1624_v8 = vmul.f32 %v1623_v0, %v1610_v58 }
 0x61f   :  { %v1588_v9 = vmul.f32 %v1587_v5, %v3202_v12  ;;  %v1614_v13 = vadd.f32 0.0036580483, %v1613_v11  ;;  %v1577_v54 = vmul.f32 %v1576_v15, %v3202_v12 }
 0x620   :  { %v1625_v23 = vadd.f32 0.014752088, %v1624_v8 }
 0x621   :  { %v1589_v34 = vadd.f32 0.4994258, %v1588_v9  ;;  %v1615_v21 = vmul.f32 %v1614_v13, %v1610_v58  ;;  %v1578_v24 = vadd.f32 0.18741608, %v1577_v54  ;;  %v2641_v54 = vld [vmem:[#allocation11 + $0x20] sm:$0xff] }
 0x622   :  { %v1626_v16 = vmul.f32 %v1625_v23, %v1610_v58 }
 0x623   :  { %v1590_v19 = vmul.f32 %v1589_v34, %v3202_v12  ;;  %v1616_v28 = vadd.f32 0.05243302, %v1615_v21  ;;  %v1579_v17 = vmul.f32 %v1578_v24, %v3202_v12  ;;  %v2643_v21 = vld [vmem:[#allocation11 + $0x30] sm:$0xff] }
 0x624   :  { %v1627_v62 = vadd.f32 0.112945676, %v1626_v16  ;;  %v2644_v16 = vld [vmem:[#allocation11 + $0x38] sm:$0xff] }
 0x625   :  { %v1591_v20 = vadd.f32 1.0, %v1590_v19  ;;  %v1617_v32 = vmul.f32 %v1616_v28, %v1610_v58  ;;  %v1580_v18 = vadd.f32 1.1283791, %v1579_v17  ;;  %1880 = vmatpush.bf16.msra.mxu1 %v2644_v16  ;;  %v2637_v28 = vld [vmem:[#allocation11] sm:$0xff] }
 0x626   :  { %v1628_v25 = vmul.f32 %v1627_v62, %v1610_v58 }
 0x627   :  { %2685 = vrcp.f32 %v1591_v20  ;;  %v1603_v40 = vand.u32 2147483648, %v1591_v20  ;;  %v1618_v43 = vadd.f32 0.18741608, %v1617_v32  ;;  %v1601_v39 = vand.u32 2147483647, %v1591_v20 }
 0x628   :  { %v1629_v27 = vadd.f32 0.4994258, %v1628_v25  ;;  %vm1597_vm13 = vweird.f32 %v1591_v20  ;;  %v1581_v52 = vmul.f32 %v1580_v18, %v3198_v37  ;;  %v2640_v25 = vld [vmem:[#allocation11 + $0x18] sm:$0xff] }
 0x629   :  { %v1604_v49 = vor.u32 1.1754944e-38, %v1603_v40  ;;  %v1619_v50 = vmul.f32 %v1618_v43, %v1610_v58  ;;  %vm1602_vm15 = vcmp.eq.f32.partialorder %v1601_v39, 8.507059e+37  ;;  %1881 = vmatpush.bf16.msra.mxu1 %v2643_v21  ;;  %v2666_v43 = vld [vmem:[%s3252_s9] ss:$0 sm:$0xff]  ;;  %s1901_s9 = sshll.u32 %s3256_s13, 4  ;;  %s1902_s9 = int_to_ptr.hbm [resolvable:$true] %s1901_s9 }
 0x62a   :  { %v1630_v30 = vmul.f32 %v1629_v27, %v1610_v58  ;;  %v2638_v27 = vld [vmem:[#allocation11 + $0x8] sm:$0xff] }
 0x62b   :  { %v1620_v1 = vadd.f32 1.1283791, %v1619_v50 }
 0x62c   :  { %v1631_v31 = vadd.f32 1.0, %v1630_v30 }
 0x62d   :  { %v2686_v29 = vpop.eup %2685  ;;  %v1621_v37 = vmul.f32 %v1620_v1, %v3209_v41  ;;  %1882 = vmatpush.bf16.msra.mxu1 %v2642_v22 }
 0x62e   :  { %v1593_v47 = vmul.f32 %v2686_v29, %v1591_v20  ;;  %2687 = vrcp.f32 %v1631_v31  ;;  %vm1598_vm12 = vweird.f32 %v2686_v29  ;;  %v1643_v56 = vand.u32 2147483648, %v1631_v31 }
 0x62f   :  { %vm1599_vm14 = vmor %vm1597_vm13, %vm1598_vm12  ;;  %v1641_v60 = vand.u32 2147483647, %v1631_v31  ;;  %vm1637_vm1 = vweird.f32 %v1631_v31 }
 0x630   :  { %v1594_v38 = vsub.f32 1.0, %v1593_v47  ;;  %v1644_v58 = vor.u32 1.1754944e-38, %v1643_v56 }
 0x631   :  { %vm1642_vm3 = vcmp.eq.f32.partialorder %v1641_v60, 8.507059e+37  ;;  %1883 = vmatpush.bf16.msra.mxu1 %v2641_v54 }
 0x632   :  { %v1595_v44 = vmul.f32 %v2686_v29, %v1594_v38 }
 0x634   :  { %v2688_v46 = vpop.eup %2687  ;;  %v1596_v48 = vadd.f32 %v2686_v29, %v1595_v44 }
 0x635   :  { %v1633_v51 = vmul.f32 %v2688_v46, %v1631_v31  ;;  %vm1638_vm0 = vweird.f32 %v2688_v46  ;;  %1884 = vmatpush.bf16.msra.mxu1 %v2640_v25 }
 0x636   :  { %v1600_v53 = vsel %vm1599_vm14, %v2686_v29, %v1596_v48  ;;  %vm1639_vm2 = vmor %vm1637_vm1, %vm1638_vm0 }
 0x637   :  { %v1605_v12 = vsel %vm1602_vm15, %v1604_v49, %v1600_v53  ;;  %v1634_v33 = vsub.f32 1.0, %v1633_v51  ;;  %v2668_v49 = vld [vmem:[%s3255_s12] ss:$0 sm:$0xff] }
 0x638   :  { %v1606_v55 = vmul.f32 %v1605_v12, %v1581_v52 }
 0x639   :  { %v1635_v59 = vmul.f32 %v2688_v46, %v1634_v33 }
 0x63a   :  { %v2403_v42 = vclamps-f32 %v1606_v55, 1.0 }
 0x63b   :  { %v1636_v61 = vadd.f32 %v2688_v46, %v1635_v59 }
 0x63c   :  { %v1649_v2 = vadd.f32 1.0, %v2403_v42 }
 0x63d   :  { %v1640_v3 = vsel %vm1639_vm2, %v2688_v46, %v1636_v61 }
 0x63e   :  { %v1651_v4 = vmul.f32 %v1649_v2, %v1565_v63  ;;  %v1645_v57 = vsel %vm1642_vm3, %v1644_v58, %v1640_v3 }
 0x63f   :  { %v1646_v0 = vmul.f32 %v1645_v57, %v1621_v37 }
 0x640   :  { %v1653_v5 = vpack.c.bf16 %v1651_v4, %v1651_v4 }
 0x641   :  { %v2404_v6 = vclamps-f32 %v1646_v0, 1.0 }
 0x642   :  { %1762 = vmatmul.bf16.vlgmr.msrb.gmra.mxu3 %v1653_v5 }
 0x643   :  { %v1650_v11 = vadd.f32 1.0, %v2404_v6 }
 0x645   :  { %v1652_v8 = vmul.f32 %v1650_v11, %v1566_v7 }
 0x647   :  { %v1654_v9 = vpack.c.bf16 %v1652_v8, %v1652_v8 }
 0x649   :  { %1775 = vmatmul.bf16.vlgmr.msra.gmra.mxu0 %v1654_v9 }
 0x6c5   :  { %v1763_v10 = vpop.f32.mrf.mxu3 }
 0x6c6   :  { %v1764_v41 = vadd.f32 %v2665_v36, %v1763_v10  ;;  %v1776_v23 = vpop.f32.mrf.mxu0 }
 0x6c8   :  { %v1777_v34 = vadd.f32 %v1776_v23, %v1764_v41 }
 0x6ca   :  { %v1780_v13 = vadd.f32 %v1777_v34, %v3191_v35  ;;  %v2639_v35 = vld [vmem:[#allocation11 + $0x10] sm:$0xff] }
 0x6cb   :  { %1885 = vmatpush.bf16.msra.mxu1 %v2639_v35 }
 0x6cc   :  { %1783 = vadd.xlane.f32.xlu1 %v1780_v13 }
 0x6cd   :  { %v1765_v14 = vpop.f32.mrf.mxu3 }
 0x6ce   :  { %v1778_v15 = vpop.f32.mrf.mxu0 }
 0x6cf   :  { %1886 = vmatpush.bf16.msra.mxu1 %v2638_v27 }
 0x6d3   :  { %1887 = vmatpush.bf16.msra.mxu1 %v2637_v28 }
 0x73f   :  { %v1784_v45 = vpop.xlane.xlu1 %1783 }
 0x740   :  { %v1785_v19 = vmul.f32 %v1784_v45, %v2983_v26 }
 0x742   :  { %v1786_v62 = vsub.f32 %v1780_v13, %v1785_v19 }
 0x744   :  { %v1787_v20 = vmul.f32 %v1786_v62, %v1786_v62 }
 0x746   :  { %1788 = vadd.xlane.f32.xlu1 %v1787_v20 }
 0x7b9   :  { %v1789_v24 = vpop.xlane.xlu1 %1788 }
 0x7ba   :  { %v1790_v30 = vmul.f32 %v1789_v24, %v2983_v26  ;;  %v2667_v26 = vld [vmem:[%s3253_s10] ss:$0 sm:$0xff] }
 0x7bc   :  { %v1791_v31 = vadd.f32 1e-05, %v1790_v30 }
 0x7be   :  { %2689 = vrsqrt.f32 %v1791_v31  ;;  %vm1798_vm5 = vweird.f32 %v1791_v31 }
 0x7c4   :  { %v2690_v29 = vpop.eup %2689 }
 0x7c5   :  { %v1793_v32 = vmul.f32 %v2690_v29, %v1791_v31  ;;  %vm1799_vm4 = vweird.f32 %v2690_v29 }
 0x7c6   :  { %vm1800_vm6 = vmor %vm1798_vm5, %vm1799_vm4 }
 0x7c7   :  { %v1794_v17 = vmul.f32 %v2690_v29, %v1793_v32 }
 0x7c9   :  { %v1795_v47 = vmul.f32 0.5, %v1794_v17 }
 0x7cb   :  { %v1796_v38 = vsub.f32 1.5, %v1795_v47 }
 0x7cd   :  { %v1797_v40 = vmul.f32 %v2690_v29, %v1796_v38 }
 0x7cf   :  { %v1801_v18 = vsel %vm1800_vm6, %v2690_v29, %v1797_v40 }
 0x7d0   :  { %v1802_v44 = vmul.f32 %v1801_v18, %v1786_v62 }
 0x7d2   :  { %v1806_v39 = vmul.f32 %v2666_v43, %v1802_v44 }
 0x7d4   :  { %v1810_v46 = vadd.f32 %v2667_v26, %v1806_v39 }
 0x7d6   :  { %v1827_v48 = vpack.c.bf16 %v1810_v46, %v1810_v46 }
 0x7d8   :  { %1888 = vmatmul.bf16.vlgmr.msra.gmra.mxu1 %v1827_v48 }
 0x855   :  { %v1889_v50 = vpop.f32.mrf.mxu1 }
 0x856   :  { %v1890_v51 = vadd.f32 %v2668_v49, %v1889_v50 }
 0x858   :  { %1893 = vst [vmem:[#allocation13] sm:$0xff] %v1890_v51 }
 0x859   :  { %1904 = dma.vmem_to_hbm [thread:$0]  %s1900_s1, 128, %s1902_s9, [#allocation4]  }
 0x85d   :  { %v1891_v52 = vpop.f32.mrf.mxu1 }
 0x85e   :  { %2867 = dma.done.wait [#allocation4], 128  }
 0x85f   :  { %2868 = vsyncadd [#allocation4], 4294967168 }
 0x860   :  { %1909 = vsyncpa [#allocation3], 1 }
 0x861   :  { %1910 = vsyncpa [#allocation6], 1 }
 0x862   :  { %1911 = vsyncpa [#allocation9], 1 }
 0x863   :  { %1912 = vsyncpa [#allocation12], 1 }
 0x864   :  { %1913 = vsyncpa [#allocation4], 1 }

</bundles_post_ra>
